<compile_context>
chip_gen: v7x
topology: tpu7x:2x2x1
jax: 0.10.0
libtpu: 0.0.40
codegen_flags: <defaults>
</compile_context>

<pallas_src>
import jax
import jax.numpy as jnp
import numpy as np
from jax.experimental import pallas as pl
from jax.experimental.pallas import tpu as pltpu

_LANE = 128


# ----------------------------------------------------------------------------
# Kernel helpers
# ----------------------------------------------------------------------------
def _leaky_relu(x, slope=0.2):
    return jnp.where(x > 0, x, slope * x)


def _fill_patches(pp_ref, a, H, W, c):
    """Write activation `a` (H, W, c) into the (H+2, W, 3*c) bf16 patch scratch
    as three horizontally-shifted copies (kx = 0,1,2 lane blocks), i.e. the kx
    half of the im2col slab, in a single store pass (no later unaligned
    W-window slab copies).  Only halo cells (top/bottom rows + the two
    shifted-in columns) are zeroed; every interior cell is overwritten each
    grid step, so this stays correct under "parallel" grid semantics."""
    a = a.astype(jnp.bfloat16)
    zrow = jnp.zeros((1, W, 3 * c), jnp.bfloat16)
    zcol = jnp.zeros((H, 1, c), jnp.bfloat16)
    pp_ref[0:1, :, :] = zrow                                # top halo row
    pp_ref[H + 1:H + 2, :, :] = zrow                        # bottom halo row
    pp_ref[1:H + 1, 0:1, 0:c] = zcol                        # kx=0 left halo col
    pp_ref[1:H + 1, W - 1:W, 2 * c:3 * c] = zcol            # kx=2 right halo col
    pp_ref[1:H + 1, 1:W, 0:c] = a[:, 0:W - 1, :]            # kx = 0
    pp_ref[1:H + 1, :, c:2 * c] = a                         # kx = 1
    pp_ref[1:H + 1, 0:W - 1, 2 * c:3 * c] = a[:, 1:W, :]    # kx = 2


def _conv3x3(pp_ref, w_ref, bias, H, W, cin_p, cout_p):
    """3x3 'same' conv from the kx-blocked patch scratch.

    pp_ref: (H+2, W, 3*cin_p) bf16   (see _fill_patches)
    w_ref:  (9*cin_p, cout_p) bf16   natural HWIO flatten: rows = (ky, kx, ci)
    bias:   (1, cout_p) f32
    Three K = 3*cin_p MXU dots (fills the 256-deep MXU on v6e/v7x) summed with
    the bias folded in — no accumulator scratch, no zero-init, no per-tap
    read-modify-write passes.  Returns (H*W, cout_p) f32.
    """
    k3 = 3 * cin_p
    out = bias                                               # (1, cout_p) f32
    for ky in range(3):
        patch = pp_ref[ky:ky + H, :, :].reshape(H * W, k3)   # leading-axis slice
        w_ky = w_ref[ky * k3:(ky + 1) * k3, :]
        out = out + jnp.dot(patch, w_ky, preferred_element_type=jnp.float32)
    return out


def _make_kernel(H, W, cin_p, cmid_p, cout_p, learned_shortcut):
    def kernel(*refs):
        if learned_shortcut:
            (x_ref, w0_ref, b0_ref, w1_ref, b1_ref, ws_ref,
             o_ref, pp0_ref, pp1_ref) = refs
        else:
            (x_ref, w0_ref, b0_ref, w1_ref, b1_ref,
             o_ref, pp0_ref, pp1_ref) = refs
            ws_ref = None

        x = x_ref[0]                                   # (H, W, cin_p) bf16

        # ---- dx = conv_0(leaky_relu(x)) -------------------------------------
        _fill_patches(pp0_ref, _leaky_relu(x), H, W, cin_p)
        dx = _conv3x3(pp0_ref, w0_ref, b0_ref[...], H, W, cin_p, cmid_p)

        # ---- dx = conv_1(leaky_relu(dx)) ------------------------------------
        _fill_patches(pp1_ref, _leaky_relu(dx).reshape(H, W, cmid_p),
                      H, W, cmid_p)
        dx = _conv3x3(pp1_ref, w1_ref, b1_ref[...], H, W, cmid_p, cout_p)

        # ---- shortcut --------------------------------------------------------
        if learned_shortcut:
            x_s = jnp.dot(x.reshape(H * W, cin_p), ws_ref[...],
                          preferred_element_type=jnp.float32)
        else:                                           # cin_p == cout_p here
            x_s = x.astype(jnp.float32).reshape(H * W, cout_p)

        o_ref[0] = (x_s + dx).reshape(H, W, cout_p).astype(o_ref.dtype)

    return kernel


# ----------------------------------------------------------------------------
# Wrapper (PyTorch-like NCHW API, NHWC + lane-padded bf16 inside)
# ----------------------------------------------------------------------------
def _round_up(x, m):
    return ((x + m - 1) // m) * m


def _pad_axis(a, target, axis):
    pad = target - a.shape[axis]
    if pad == 0:
        return a
    widths = [(0, 0)] * a.ndim
    widths[axis] = (0, pad)
    return jnp.pad(a, widths)


@jax.jit
def spade_resnet_block_non_spade(x_nchw, seg, degraded_image, params):
    del seg, degraded_image  # unused by the non-spade block's forward
    x = jnp.transpose(x_nchw, (0, 2, 3, 1))           # NCHW -> NHWC
    N, H, W, cin = x.shape
    w0, b0, w1, b1 = params["w0"], params["b0"], params["w1"], params["b1"]
    cmid, cout = w0.shape[-1], w1.shape[-1]
    learned = "ws" in params

    cin_p = _round_up(cin, _LANE)
    cmid_p = _round_up(cmid, _LANE)
    cout_p = _round_up(cout, _LANE)

    # Lane-dense bf16 input + 2D lane-dense bf16 weight slabs (layout-only).
    xp = _pad_axis(x, cin_p, 3).astype(jnp.bfloat16)
    w0p = _pad_axis(_pad_axis(w0, cin_p, 2), cmid_p, 3) \
        .reshape(9 * cin_p, cmid_p).astype(jnp.bfloat16)
    w1p = _pad_axis(_pad_axis(w1, cmid_p, 2), cout_p, 3) \
        .reshape(9 * cmid_p, cout_p).astype(jnp.bfloat16)
    b0p = _pad_axis(b0.reshape(1, -1), cmid_p, 1).astype(jnp.float32)
    b1p = _pad_axis(b1.reshape(1, -1), cout_p, 1).astype(jnp.float32)

    inputs = [xp, w0p, b0p, w1p, b1p]
    in_specs = [
        pl.BlockSpec((1, H, W, cin_p), lambda n: (n, 0, 0, 0)),
        pl.BlockSpec((9 * cin_p, cmid_p), lambda n: (0, 0)),
        pl.BlockSpec((1, cmid_p), lambda n: (0, 0)),
        pl.BlockSpec((9 * cmid_p, cout_p), lambda n: (0, 0)),
        pl.BlockSpec((1, cout_p), lambda n: (0, 0)),
    ]
    if learned:
        wsp = _pad_axis(_pad_axis(params["ws"], cin_p, 0), cout_p, 1) \
            .astype(jnp.bfloat16)
        inputs.append(wsp)
        in_specs.append(pl.BlockSpec((cin_p, cout_p), lambda n: (0, 0)))

    kernel = _make_kernel(H, W, cin_p, cmid_p, cout_p, learned)

    flops = 2 * N * H * W * (9 * cin_p * cmid_p + 9 * cmid_p * cout_p
                             + (cin_p * cout_p if learned else 0))
    bytes_accessed = (xp.size * 2 + N * H * W * cout_p * 2
                      + w0p.size * 2 + w1p.size * 2
                      + b0p.size * 4 + b1p.size * 4
                      + (cin_p * cout_p * 2 if learned else 0))
    cost = pl.CostEstimate(flops=flops, transcendentals=0,
                           bytes_accessed=bytes_accessed)

    out = pl.pallas_call(
        kernel,
        out_shape=jax.ShapeDtypeStruct((N, H, W, cout_p), jnp.bfloat16),
        grid_spec=pltpu.PrefetchScalarGridSpec(
            num_scalar_prefetch=0,
            grid=(N,),
            in_specs=in_specs,
            out_specs=pl.BlockSpec((1, H, W, cout_p), lambda n: (n, 0, 0, 0)),
            scratch_shapes=[
                pltpu.VMEM((H + 2, W, 3 * cin_p), jnp.bfloat16),   # x patches
                pltpu.VMEM((H + 2, W, 3 * cmid_p), jnp.bfloat16),  # mid patches
            ],
        ),
        compiler_params=pltpu.CompilerParams(
            dimension_semantics=("parallel",)),
        cost_estimate=cost,
    )(*inputs)

    out = out[..., :cout].astype(jnp.float32)          # drop lane padding
    return jnp.transpose(out, (0, 3, 1, 2))            # back to NCHW


# ----------------------------------------------------------------------------
# Parameter setup (deterministic, synthetic); spectral norm applied in plain
# JAX at setup time (inference-time w / sigma semantics).
# ----------------------------------------------------------------------------
def _spectral_normalize(w_oihw, n_iter=30, eps=1e-12):
    out_c = w_oihw.shape[0]
    wm = w_oihw.reshape(out_c, -1)
    u = jnp.ones((out_c,), jnp.float32)
    u = u / (jnp.linalg.norm(u) + eps)
    v = None
    for _ in range(n_iter):
        v = wm.T @ u
        v = v / (jnp.linalg.norm(v) + eps)
        u = wm @ v
        u = u / (jnp.linalg.norm(u) + eps)
    sigma = u @ (wm @ v)
    return w_oihw / sigma


def init_params(key, fin, fout, use_spectral=True):
    fmid = min(fin, fout)
    k0, k1, k2, k3, k4 = jax.random.split(key, 5)
    w0 = jax.random.normal(k0, (fmid, fin, 3, 3), jnp.float32) * 0.1   # OIHW
    b0 = jax.random.normal(k1, (fmid,), jnp.float32) * 0.1
    w1 = jax.random.normal(k2, (fout, fmid, 3, 3), jnp.float32) * 0.1
    b1 = jax.random.normal(k3, (fout,), jnp.float32) * 0.1
    if use_spectral:
        w0 = _spectral_normalize(w0)
        w1 = _spectral_normalize(w1)
    params = {
        "w0": jnp.transpose(w0, (2, 3, 1, 0)),   # OIHW -> HWIO
        "b0": b0,
        "w1": jnp.transpose(w1, (2, 3, 1, 0)),
        "b1": b1,
    }
    if fin != fout:
        ws = jax.random.normal(k4, (fout, fin, 1, 1), jnp.float32) * 0.1
        if use_spectral:
            ws = _spectral_normalize(ws)
        params["ws"] = jnp.transpose(ws, (2, 3, 1, 0))[0, 0]   # (fin, fout)
    return params


# ----------------------------------------------------------------------------
# Pure-JAX reference (f32) for a sanity check
# ----------------------------------------------------------------------------
def _reference(x_nchw, params):
    x = jnp.transpose(x_nchw, (0, 2, 3, 1))
    lrelu = lambda v: jnp.where(v > 0, v, 0.2 * v)

    def conv3(v, w, b):
        return jax.lax.conv_general_dilated(
            v, w, (1, 1), "SAME",
            dimension_numbers=("NHWC", "HWIO", "NHWC")) + b.reshape(1, 1, 1, -1)

    if "ws" in params:
        x_s = jnp.einsum("nhwc,cd->nhwd", x, params["ws"])
    else:
        x_s = x
    dx = conv3(lrelu(x), params["w0"], params["b0"])
    dx = conv3(lrelu(dx), params["w1"], params["b1"])
    return jnp.transpose(x_s + dx, (0, 3, 1, 2))


# ----------------------------------------------------------------------------
if __name__ == "__main__":
    key = jax.random.PRNGKey(0)
    kx, kseg, kdeg, kp = jax.random.split(key, 4)

    N, fin, fout, H, W = 2, 4, 8, 16, 16
    semantic_nc = 3

    x = jax.random.normal(kx, (N, fin, H, W), jnp.float32)          # NCHW
    seg = jax.random.normal(kseg, (N, semantic_nc, H, W), jnp.float32)
    degraded = jax.random.normal(kdeg, (N, semantic_nc, H, W), jnp.float32)

    # --- learned-shortcut path (fin != fout) ---------------------------------
    params = init_params(kp, fin, fout, use_spectral=True)
    out = spade_resnet_block_non_spade(x, seg, degraded, params)
    out = jax.block_until_ready(out)
    assert out.shape == (N, fout, H, W)
    ref = _reference(x, params)
    np.testing.assert_allclose(np.asarray(out), np.asarray(ref),
                               rtol=2e-2, atol=2e-2)

    # --- identity-shortcut path (fin == fout) --------------------------------
    params_id = init_params(kp, fout, fout, use_spectral=True)
    x_id = jax.random.normal(kx, (N, fout, H, W), jnp.float32)
    out_id = spade_resnet_block_non_spade(x_id, seg, degraded, params_id)
    out_id = jax.block_until_ready(out_id)
    assert out_id.shape == (N, fout, H, W)
    ref_id = _reference(x_id, params_id)
    np.testing.assert_allclose(np.asarray(out_id), np.asarray(ref_id),
                               rtol=2e-2, atol=2e-2)

    print("KERNEL_OK")
</pallas_src>

<mosaic_0001>
module attributes {stable_mosaic.version = 11 : i64} {
  func.func @kernel(%arg0: i32, %arg1: memref<1x16x16x128xbf16, #tpu.memory_space<vmem>>, %arg2: memref<1152x128xbf16, #tpu.memory_space<vmem>>, %arg3: memref<1x128xf32, #tpu.memory_space<vmem>>, %arg4: memref<1152x128xbf16, #tpu.memory_space<vmem>>, %arg5: memref<1x128xf32, #tpu.memory_space<vmem>>, %arg6: memref<128x128xbf16, #tpu.memory_space<vmem>>, %arg7: memref<1x16x16x128xbf16, #tpu.memory_space<vmem>>, %arg8: memref<18x16x384xbf16, #tpu.memory_space<vmem>>, %arg9: memref<18x16x384xbf16, #tpu.memory_space<vmem>>) attributes {dimension_semantics = [#tpu.dimension_semantics<parallel>], iteration_bounds = array<i64: 2>, scalar_prefetch = 0 : i64, scratch_operands = 2 : i64, tpu.core_type = #tpu.core_type<tc>, window_params = [{transform_indices = @transform_0, window_bounds = array<i64: 1, 16, 16, 128>}, {pipeline_mode = #tpu.pipeline_mode<synchronous>, transform_indices = @transform_1, window_bounds = array<i64: 1152, 128>}, {pipeline_mode = #tpu.pipeline_mode<synchronous>, transform_indices = @transform_2, window_bounds = array<i64: 1, 128>}, {pipeline_mode = #tpu.pipeline_mode<synchronous>, transform_indices = @transform_3, window_bounds = array<i64: 1152, 128>}, {pipeline_mode = #tpu.pipeline_mode<synchronous>, transform_indices = @transform_4, window_bounds = array<i64: 1, 128>}, {pipeline_mode = #tpu.pipeline_mode<synchronous>, transform_indices = @transform_5, window_bounds = array<i64: 128, 128>}, {transform_indices = @transform_6, window_bounds = array<i64: 1, 16, 16, 128>}]} {
    %c0 = arith.constant 0 : index
    %c0_0 = arith.constant 0 : index
    %c0_1 = arith.constant 0 : index
    %c0_2 = arith.constant 0 : index
    %0 = vector.load %arg1[%c0, %c0_0, %c0_1, %c0_2] : memref<1x16x16x128xbf16, #tpu.memory_space<vmem>>, vector<1x16x16x128xbf16>
    %1 = vector.shape_cast %0 : vector<1x16x16x128xbf16> to vector<16x16x128xbf16>
    %cst = arith.constant 0.000000e+00 : bf16
    %2 = vector.broadcast %cst : bf16 to vector<16x16x128xbf16>
    %3 = arith.cmpf ogt, %1, %2 : vector<16x16x128xbf16>
    %cst_3 = arith.constant 2.001950e-01 : bf16
    %4 = vector.broadcast %cst_3 : bf16 to vector<16x16x128xbf16>
    %5 = arith.mulf %4, %1 : vector<16x16x128xbf16>
    %6 = arith.select %3, %1, %5 : vector<16x16x128xi1>, vector<16x16x128xbf16>
    %cst_4 = arith.constant 0.000000e+00 : bf16
    %7 = vector.broadcast %cst_4 : bf16 to vector<1x16x384xbf16>
    %cst_5 = arith.constant 0.000000e+00 : bf16
    %8 = vector.broadcast %cst_5 : bf16 to vector<16x1x128xbf16>
    %c0_6 = arith.constant 0 : index
    %c0_7 = arith.constant 0 : index
    %c0_8 = arith.constant 0 : index
    %9 = vector.load %arg8[%c0_6, %c0_7, %c0_8] : memref<18x16x384xbf16, #tpu.memory_space<vmem>>, vector<1x16x384xbf16>
    tpu.vector_store %arg8[%c0_6, %c0_7, %c0_8], %7 {strides = array<i32>} : memref<18x16x384xbf16, #tpu.memory_space<vmem>>, vector<1x16x384xbf16>,
    %c17 = arith.constant 17 : index
    %c0_9 = arith.constant 0 : index
    %c0_10 = arith.constant 0 : index
    %10 = vector.load %arg8[%c17, %c0_9, %c0_10] : memref<18x16x384xbf16, #tpu.memory_space<vmem>>, vector<1x16x384xbf16>
    tpu.vector_store %arg8[%c17, %c0_9, %c0_10], %7 {strides = array<i32>} : memref<18x16x384xbf16, #tpu.memory_space<vmem>>, vector<1x16x384xbf16>,
    %c1 = arith.constant 1 : index
    %c0_11 = arith.constant 0 : index
    %c0_12 = arith.constant 0 : index
    %11 = vector.load %arg8[%c1, %c0_11, %c0_12] : memref<18x16x384xbf16, #tpu.memory_space<vmem>>, vector<16x1x128xbf16>
    tpu.vector_store %arg8[%c1, %c0_11, %c0_12], %8 {strides = array<i32>} : memref<18x16x384xbf16, #tpu.memory_space<vmem>>, vector<16x1x128xbf16>,
    %c1_13 = arith.constant 1 : index
    %c15 = arith.constant 15 : index
    %c256 = arith.constant 256 : index
    %12 = vector.load %arg8[%c1_13, %c15, %c256] : memref<18x16x384xbf16, #tpu.memory_space<vmem>>, vector<16x1x128xbf16>
    tpu.vector_store %arg8[%c1_13, %c15, %c256], %8 {strides = array<i32>} : memref<18x16x384xbf16, #tpu.memory_space<vmem>>, vector<16x1x128xbf16>,
    %13 = vector.extract_strided_slice %6 {offsets = [0, 0, 0], sizes = [16, 15, 128], strides = [1, 1, 1]} : vector<16x16x128xbf16> to vector<16x15x128xbf16>
    %c1_14 = arith.constant 1 : index
    %c1_15 = arith.constant 1 : index
    %c0_16 = arith.constant 0 : index
    %14 = vector.load %arg8[%c1_14, %c1_15, %c0_16] : memref<18x16x384xbf16, #tpu.memory_space<vmem>>, vector<16x15x128xbf16>
    tpu.vector_store %arg8[%c1_14, %c1_15, %c0_16], %13 {strides = array<i32>} : memref<18x16x384xbf16, #tpu.memory_space<vmem>>, vector<16x15x128xbf16>,
    %c1_17 = arith.constant 1 : index
    %c0_18 = arith.constant 0 : index
    %c128 = arith.constant 128 : index
    %15 = vector.load %arg8[%c1_17, %c0_18, %c128] : memref<18x16x384xbf16, #tpu.memory_space<vmem>>, vector<16x16x128xbf16>
    tpu.vector_store %arg8[%c1_17, %c0_18, %c128], %6 {strides = array<i32>} : memref<18x16x384xbf16, #tpu.memory_space<vmem>>, vector<16x16x128xbf16>,
    %16 = vector.extract_strided_slice %6 {offsets = [0, 1, 0], sizes = [16, 15, 128], strides = [1, 1, 1]} : vector<16x16x128xbf16> to vector<16x15x128xbf16>
    %c1_19 = arith.constant 1 : index
    %c0_20 = arith.constant 0 : index
    %c256_21 = arith.constant 256 : index
    %17 = vector.load %arg8[%c1_19, %c0_20, %c256_21] : memref<18x16x384xbf16, #tpu.memory_space<vmem>>, vector<16x15x128xbf16>
    tpu.vector_store %arg8[%c1_19, %c0_20, %c256_21], %16 {strides = array<i32>} : memref<18x16x384xbf16, #tpu.memory_space<vmem>>, vector<16x15x128xbf16>,
    %c0_22 = arith.constant 0 : index
    %c0_23 = arith.constant 0 : index
    %18 = vector.load %arg3[%c0_22, %c0_23] : memref<1x128xf32, #tpu.memory_space<vmem>>, vector<1x128xf32>
    %c0_24 = arith.constant 0 : index
    %c0_25 = arith.constant 0 : index
    %c0_26 = arith.constant 0 : index
    %19 = vector.load %arg8[%c0_24, %c0_25, %c0_26] : memref<18x16x384xbf16, #tpu.memory_space<vmem>>, vector<16x16x384xbf16>
    %20 = vector.shape_cast %19 : vector<16x16x384xbf16> to vector<256x384xbf16>
    %c0_27 = arith.constant 0 : index
    %c0_28 = arith.constant 0 : index
    %21 = vector.load %arg2[%c0_27, %c0_28] : memref<1152x128xbf16, #tpu.memory_space<vmem>>, vector<384x128xbf16>
    %cst_29 = arith.constant dense<0.000000e+00> : vector<256x128xf32>
    %22 = tpu.matmul %20, %21, %cst_29 {dimension_numbers = #tpu.dot_dimension_numbers<[1], [0], [0], [1], [0, 0, 1, 1], [], []>} : vector<256x384xbf16>, vector<384x128xbf16>, vector<256x128xf32> -> vector<256x128xf32>
    %23 = vector.broadcast %18 : vector<1x128xf32> to vector<256x128xf32>
    %24 = arith.addf %23, %22 : vector<256x128xf32>
    %c1_30 = arith.constant 1 : index
    %c0_31 = arith.constant 0 : index
    %c0_32 = arith.constant 0 : index
    %25 = vector.load %arg8[%c1_30, %c0_31, %c0_32] : memref<18x16x384xbf16, #tpu.memory_space<vmem>>, vector<16x16x384xbf16>
    %26 = vector.shape_cast %25 : vector<16x16x384xbf16> to vector<256x384xbf16>
    %c384 = arith.constant 384 : index
    %c0_33 = arith.constant 0 : index
    %27 = vector.load %arg2[%c384, %c0_33] : memref<1152x128xbf16, #tpu.memory_space<vmem>>, vector<384x128xbf16>
    %cst_34 = arith.constant dense<0.000000e+00> : vector<256x128xf32>
    %28 = tpu.matmul %26, %27, %cst_34 {dimension_numbers = #tpu.dot_dimension_numbers<[1], [0], [0], [1], [0, 0, 1, 1], [], []>} : vector<256x384xbf16>, vector<384x128xbf16>, vector<256x128xf32> -> vector<256x128xf32>
    %29 = arith.addf %24, %28 : vector<256x128xf32>
    %c2 = arith.constant 2 : index
    %c0_35 = arith.constant 0 : index
    %c0_36 = arith.constant 0 : index
    %30 = vector.load %arg8[%c2, %c0_35, %c0_36] : memref<18x16x384xbf16, #tpu.memory_space<vmem>>, vector<16x16x384xbf16>
    %31 = vector.shape_cast %30 : vector<16x16x384xbf16> to vector<256x384xbf16>
    %c768 = arith.constant 768 : index
    %c0_37 = arith.constant 0 : index
    %32 = vector.load %arg2[%c768, %c0_37] : memref<1152x128xbf16, #tpu.memory_space<vmem>>, vector<384x128xbf16>
    %cst_38 = arith.constant dense<0.000000e+00> : vector<256x128xf32>
    %33 = tpu.matmul %31, %32, %cst_38 {dimension_numbers = #tpu.dot_dimension_numbers<[1], [0], [0], [1], [0, 0, 1, 1], [], []>} : vector<256x384xbf16>, vector<384x128xbf16>, vector<256x128xf32> -> vector<256x128xf32>
    %34 = arith.addf %29, %33 : vector<256x128xf32>
    %cst_39 = arith.constant 0.000000e+00 : f32
    %35 = vector.broadcast %cst_39 : f32 to vector<256x128xf32>
    %36 = arith.cmpf ogt, %34, %35 : vector<256x128xf32>
    %cst_40 = arith.constant 2.000000e-01 : f32
    %37 = vector.broadcast %cst_40 : f32 to vector<256x128xf32>
    %38 = arith.mulf %37, %34 : vector<256x128xf32>
    %39 = arith.select %36, %34, %38 : vector<256x128xi1>, vector<256x128xf32>
    %40 = vector.shape_cast %39 : vector<256x128xf32> to vector<16x16x128xf32>
    %41 = arith.truncf %40 : vector<16x16x128xf32> to vector<16x16x128xbf16>
    %cst_41 = arith.constant 0.000000e+00 : bf16
    %42 = vector.broadcast %cst_41 : bf16 to vector<1x16x384xbf16>
    %cst_42 = arith.constant 0.000000e+00 : bf16
    %43 = vector.broadcast %cst_42 : bf16 to vector<16x1x128xbf16>
    %c0_43 = arith.constant 0 : index
    %c0_44 = arith.constant 0 : index
    %c0_45 = arith.constant 0 : index
    %44 = vector.load %arg9[%c0_43, %c0_44, %c0_45] : memref<18x16x384xbf16, #tpu.memory_space<vmem>>, vector<1x16x384xbf16>
    tpu.vector_store %arg9[%c0_43, %c0_44, %c0_45], %42 {strides = array<i32>} : memref<18x16x384xbf16, #tpu.memory_space<vmem>>, vector<1x16x384xbf16>,
    %c17_46 = arith.constant 17 : index
    %c0_47 = arith.constant 0 : index
    %c0_48 = arith.constant 0 : index
    %45 = vector.load %arg9[%c17_46, %c0_47, %c0_48] : memref<18x16x384xbf16, #tpu.memory_space<vmem>>, vector<1x16x384xbf16>
    tpu.vector_store %arg9[%c17_46, %c0_47, %c0_48], %42 {strides = array<i32>} : memref<18x16x384xbf16, #tpu.memory_space<vmem>>, vector<1x16x384xbf16>,
    %c1_49 = arith.constant 1 : index
    %c0_50 = arith.constant 0 : index
    %c0_51 = arith.constant 0 : index
    %46 = vector.load %arg9[%c1_49, %c0_50, %c0_51] : memref<18x16x384xbf16, #tpu.memory_space<vmem>>, vector<16x1x128xbf16>
    tpu.vector_store %arg9[%c1_49, %c0_50, %c0_51], %43 {strides = array<i32>} : memref<18x16x384xbf16, #tpu.memory_space<vmem>>, vector<16x1x128xbf16>,
    %c1_52 = arith.constant 1 : index
    %c15_53 = arith.constant 15 : index
    %c256_54 = arith.constant 256 : index
    %47 = vector.load %arg9[%c1_52, %c15_53, %c256_54] : memref<18x16x384xbf16, #tpu.memory_space<vmem>>, vector<16x1x128xbf16>
    tpu.vector_store %arg9[%c1_52, %c15_53, %c256_54], %43 {strides = array<i32>} : memref<18x16x384xbf16, #tpu.memory_space<vmem>>, vector<16x1x128xbf16>,
    %48 = vector.extract_strided_slice %41 {offsets = [0, 0, 0], sizes = [16, 15, 128], strides = [1, 1, 1]} : vector<16x16x128xbf16> to vector<16x15x128xbf16>
    %c1_55 = arith.constant 1 : index
    %c1_56 = arith.constant 1 : index
    %c0_57 = arith.constant 0 : index
    %49 = vector.load %arg9[%c1_55, %c1_56, %c0_57] : memref<18x16x384xbf16, #tpu.memory_space<vmem>>, vector<16x15x128xbf16>
    tpu.vector_store %arg9[%c1_55, %c1_56, %c0_57], %48 {strides = array<i32>} : memref<18x16x384xbf16, #tpu.memory_space<vmem>>, vector<16x15x128xbf16>,
    %c1_58 = arith.constant 1 : index
    %c0_59 = arith.constant 0 : index
    %c128_60 = arith.constant 128 : index
    %50 = vector.load %arg9[%c1_58, %c0_59, %c128_60] : memref<18x16x384xbf16, #tpu.memory_space<vmem>>, vector<16x16x128xbf16>
    tpu.vector_store %arg9[%c1_58, %c0_59, %c128_60], %41 {strides = array<i32>} : memref<18x16x384xbf16, #tpu.memory_space<vmem>>, vector<16x16x128xbf16>,
    %51 = vector.extract_strided_slice %41 {offsets = [0, 1, 0], sizes = [16, 15, 128], strides = [1, 1, 1]} : vector<16x16x128xbf16> to vector<16x15x128xbf16>
    %c1_61 = arith.constant 1 : index
    %c0_62 = arith.constant 0 : index
    %c256_63 = arith.constant 256 : index
    %52 = vector.load %arg9[%c1_61, %c0_62, %c256_63] : memref<18x16x384xbf16, #tpu.memory_space<vmem>>, vector<16x15x128xbf16>
    tpu.vector_store %arg9[%c1_61, %c0_62, %c256_63], %51 {strides = array<i32>} : memref<18x16x384xbf16, #tpu.memory_space<vmem>>, vector<16x15x128xbf16>,
    %c0_64 = arith.constant 0 : index
    %c0_65 = arith.constant 0 : index
    %53 = vector.load %arg5[%c0_64, %c0_65] : memref<1x128xf32, #tpu.memory_space<vmem>>, vector<1x128xf32>
    %c0_66 = arith.constant 0 : index
    %c0_67 = arith.constant 0 : index
    %c0_68 = arith.constant 0 : index
    %54 = vector.load %arg9[%c0_66, %c0_67, %c0_68] : memref<18x16x384xbf16, #tpu.memory_space<vmem>>, vector<16x16x384xbf16>
    %55 = vector.shape_cast %54 : vector<16x16x384xbf16> to vector<256x384xbf16>
    %c0_69 = arith.constant 0 : index
    %c0_70 = arith.constant 0 : index
    %56 = vector.load %arg4[%c0_69, %c0_70] : memref<1152x128xbf16, #tpu.memory_space<vmem>>, vector<384x128xbf16>
    %cst_71 = arith.constant dense<0.000000e+00> : vector<256x128xf32>
    %57 = tpu.matmul %55, %56, %cst_71 {dimension_numbers = #tpu.dot_dimension_numbers<[1], [0], [0], [1], [0, 0, 1, 1], [], []>} : vector<256x384xbf16>, vector<384x128xbf16>, vector<256x128xf32> -> vector<256x128xf32>
    %58 = vector.broadcast %53 : vector<1x128xf32> to vector<256x128xf32>
    %59 = arith.addf %58, %57 : vector<256x128xf32>
    %c1_72 = arith.constant 1 : index
    %c0_73 = arith.constant 0 : index
    %c0_74 = arith.constant 0 : index
    %60 = vector.load %arg9[%c1_72, %c0_73, %c0_74] : memref<18x16x384xbf16, #tpu.memory_space<vmem>>, vector<16x16x384xbf16>
    %61 = vector.shape_cast %60 : vector<16x16x384xbf16> to vector<256x384xbf16>
    %c384_75 = arith.constant 384 : index
    %c0_76 = arith.constant 0 : index
    %62 = vector.load %arg4[%c384_75, %c0_76] : memref<1152x128xbf16, #tpu.memory_space<vmem>>, vector<384x128xbf16>
    %cst_77 = arith.constant dense<0.000000e+00> : vector<256x128xf32>
    %63 = tpu.matmul %61, %62, %cst_77 {dimension_numbers = #tpu.dot_dimension_numbers<[1], [0], [0], [1], [0, 0, 1, 1], [], []>} : vector<256x384xbf16>, vector<384x128xbf16>, vector<256x128xf32> -> vector<256x128xf32>
    %64 = arith.addf %59, %63 : vector<256x128xf32>
    %c2_78 = arith.constant 2 : index
    %c0_79 = arith.constant 0 : index
    %c0_80 = arith.constant 0 : index
    %65 = vector.load %arg9[%c2_78, %c0_79, %c0_80] : memref<18x16x384xbf16, #tpu.memory_space<vmem>>, vector<16x16x384xbf16>
    %66 = vector.shape_cast %65 : vector<16x16x384xbf16> to vector<256x384xbf16>
    %c768_81 = arith.constant 768 : index
    %c0_82 = arith.constant 0 : index
    %67 = vector.load %arg4[%c768_81, %c0_82] : memref<1152x128xbf16, #tpu.memory_space<vmem>>, vector<384x128xbf16>
    %cst_83 = arith.constant dense<0.000000e+00> : vector<256x128xf32>
    %68 = tpu.matmul %66, %67, %cst_83 {dimension_numbers = #tpu.dot_dimension_numbers<[1], [0], [0], [1], [0, 0, 1, 1], [], []>} : vector<256x384xbf16>, vector<384x128xbf16>, vector<256x128xf32> -> vector<256x128xf32>
    %69 = arith.addf %64, %68 : vector<256x128xf32>
    %70 = vector.shape_cast %1 : vector<16x16x128xbf16> to vector<256x128xbf16>
    %c0_84 = arith.constant 0 : index
    %c0_85 = arith.constant 0 : index
    %71 = vector.load %arg6[%c0_84, %c0_85] : memref<128x128xbf16, #tpu.memory_space<vmem>>, vector<128x128xbf16>
    %cst_86 = arith.constant dense<0.000000e+00> : vector<256x128xf32>
    %72 = tpu.matmul %70, %71, %cst_86 {dimension_numbers = #tpu.dot_dimension_numbers<[1], [0], [0], [1], [0, 0, 1, 1], [], []>} : vector<256x128xbf16>, vector<128x128xbf16>, vector<256x128xf32> -> vector<256x128xf32>
    %73 = arith.addf %72, %69 : vector<256x128xf32>
    %74 = vector.shape_cast %73 : vector<256x128xf32> to vector<16x16x128xf32>
    %75 = arith.truncf %74 : vector<16x16x128xf32> to vector<16x16x128xbf16>
    %c0_87 = arith.constant 0 : index
    %c0_88 = arith.constant 0 : index
    %c0_89 = arith.constant 0 : index
    %c0_90 = arith.constant 0 : index
    %76 = vector.load %arg7[%c0_87, %c0_88, %c0_89, %c0_90] : memref<1x16x16x128xbf16, #tpu.memory_space<vmem>>, vector<1x16x16x128xbf16>
    %77 = vector.shape_cast %76 : vector<1x16x16x128xbf16> to vector<16x16x128xbf16>
    %78 = vector.shape_cast %75 : vector<16x16x128xbf16> to vector<1x16x16x128xbf16>
    tpu.vector_store %arg7[%c0_87, %c0_88, %c0_89, %c0_90], %78 {strides = array<i32>} : memref<1x16x16x128xbf16, #tpu.memory_space<vmem>>, vector<1x16x16x128xbf16>,
    return
  }
  func.func @transform_0(%arg0: i32) -> (i32, i32, i32, i32) {
    %c0_i32 = arith.constant 0 : i32
    %c0_i32_0 = arith.constant 0 : i32
    %c0_i32_1 = arith.constant 0 : i32
    %c0_i32_2 = arith.constant 0 : i32
    return %arg0, %c0_i32, %c0_i32_0, %c0_i32_1 : i32, i32, i32, i32
  }
  func.func @transform_1(%arg0: i32) -> (i32, i32) {
    %c0_i32 = arith.constant 0 : i32
    %c0_i32_0 = arith.constant 0 : i32
    %c0_i32_1 = arith.constant 0 : i32
    return %c0_i32, %c0_i32_0 : i32, i32
  }
  func.func @transform_2(%arg0: i32) -> (i32, i32) {
    %c0_i32 = arith.constant 0 : i32
    %c0_i32_0 = arith.constant 0 : i32
    %c0_i32_1 = arith.constant 0 : i32
    return %c0_i32, %c0_i32_0 : i32, i32
  }
  func.func @transform_3(%arg0: i32) -> (i32, i32) {
    %c0_i32 = arith.constant 0 : i32
    %c0_i32_0 = arith.constant 0 : i32
    %c0_i32_1 = arith.constant 0 : i32
    return %c0_i32, %c0_i32_0 : i32, i32
  }
  func.func @transform_4(%arg0: i32) -> (i32, i32) {
    %c0_i32 = arith.constant 0 : i32
    %c0_i32_0 = arith.constant 0 : i32
    %c0_i32_1 = arith.constant 0 : i32
    return %c0_i32, %c0_i32_0 : i32, i32
  }
  func.func @transform_5(%arg0: i32) -> (i32, i32) {
    %c0_i32 = arith.constant 0 : i32
    %c0_i32_0 = arith.constant 0 : i32
    %c0_i32_1 = arith.constant 0 : i32
    return %c0_i32, %c0_i32_0 : i32, i32
  }
  func.func @transform_6(%arg0: i32) -> (i32, i32, i32, i32) {
    %c0_i32 = arith.constant 0 : i32
    %c0_i32_0 = arith.constant 0 : i32
    %c0_i32_1 = arith.constant 0 : i32
    %c0_i32_2 = arith.constant 0 : i32
    return %arg0, %c0_i32, %c0_i32_0, %c0_i32_1 : i32, i32, i32, i32
  }
}

</mosaic_0001>

<bundles_post_ra>
// kernel: spade_resnet_block_non_spade.1
= control target key start
LH: loop header
LB: loop body
LE: loop exit
PB: predicated region body
PF: predicated region fallthrough
CT: control target
= control target key end

     0   :  { %s7732_s21 = smov 0   ;;  %s9837_s0 = inlined_call_operand.vmem [shape: bf16[2,16,16,128], index: 0, kind: input, shape index: {}]   ;;  %s9838_s1 = inlined_call_operand.vmem [shape: bf16[1152,128], index: 1, kind: input, shape index: {}]   ;;  %s9839_s2 = inlined_call_operand.vmem [shape: f32[1,128], index: 2, kind: input, shape index: {}]   ;;  %s9840_s3 = inlined_call_operand.vmem [shape: bf16[1152,128], index: 3, kind: input, shape index: {}]   ;;  %s9841_s4 = inlined_call_operand.vmem [shape: f32[1,128], index: 4, kind: input, shape index: {}]   ;;  %s9842_s5 = inlined_call_operand.vmem [shape: bf16[128,128], index: 5, kind: input, shape index: {}]   ;;  %s9843_s6 = inlined_call_operand.vmem [shape: bf16[2,16,16,128], index: 6, kind: output, shape index: {}]  }
   0x1 LB: > { %s5501_s22 = sadd.s32 4294967295, %s7694_s21   ;;  %p5505_p0 = scmp.ge.s32.totalorder %s7694_s21, 1  ;;  %s7694_s21 = sphi %s7732_s21, %s16_s21  }
   0x2   : > { %p212_p1 = scmp.lt.s32.totalorder %s7694_s21, 3 }
   0x4   : > { %p213_p2 = pnand %p5505_p0, %p212_p1 }
   0x6   : > { %216 = sbr.rel (%p213_p2) target bundleno = 1156 (0x484), region = 44 }
   0xd   : > { %v7476_v0 = vld [vmem:[%s9838_s1 + $0x40] sm:$0xff]   ;;  %v7696_v2 = vmov 0   ;;  %v7479_v4 = vld [vmem:[%s9838_s1 + $0x48] sm:$0xff]   ;;  %v7482_v7 = vld [vmem:[%s9838_s1 + $0x50] sm:$0xff]   ;;  %p242_p3 = scmp.lt.s32.totalorder %s5501_s22, 1  ;;  %vm441_vm0 = vcmask 1047559  }
   0xe   : > { %v7477_v1 = vld [vmem:[%s9838_s1 + $0x80] sm:$0xff]   ;;  %383 = vst [vmem:[#allocation2 + $0x8] sm:$0xff] %v7696_v2  ;;  %1154 = vmatprep.mubr.bf16.mxu0 %v7696_v2  ;;  %6715 = vmatprep.mubr.bf16.mxu1 %v7696_v2  ;;  %v7480_v5 = vld [vmem:[%s9838_s1 + $0x88] sm:$0xff]   ;;  %v7483_v8 = vld [vmem:[%s9838_s1 + $0x90] sm:$0xff]   ;;  %vm390_vm1 = vcmask 1040384   ;;  %vm700_vm8 = vcmask 1047552  }
   0xf   : > { %5859 = vmatprep.subr.bf16.mxu0 %v7476_v0  ;;  %v7478_v3 = vld [vmem:[%s9838_s1] sm:$0xff]   ;;  %6699 = vmatprep.subr.bf16.mxu1 %v7477_v1  ;;  %v7481_v6 = vld [vmem:[%s9838_s1 + $0x8] sm:$0xff]   ;;  %v7484_v9 = vld [vmem:[%s9838_s1 + $0x10] sm:$0xff]   ;;  %s9891_s22 = smov (!%p242_p3, %s5501_s22), 1  ;;  %vm442_vm2 = vsmask.f32 7966 }
  0x10   : > { %5860 = vmatpush3.bf16.msra.mxu0 %v7478_v3  ;;  %6700 = vmatpush3.bf16.msra.mxu1 %v7477_v1  ;;  %v7485_v10 = vld [vmem:[%s9838_s1 + $0x58] sm:$0xff]   ;;  %v7488_v13 = vld [vmem:[%s9838_s1 + $0x60] sm:$0xff]   ;;  %v7491_v16 = vld [vmem:[%s9838_s1 + $0x68] sm:$0xff]   ;;  %s5730_s11 = sshll.u32 %s9891_s22, 7  ;;  %vm831_vm6 = vsmask.f32 7424 }
  0x11   : > { %5861 = vmatprep.subr.bf16.mxu0 %v7479_v4  ;;  %6701 = vmatprep.subr.bf16.mxu1 %v7480_v5  ;;  %v7486_v11 = vld [vmem:[%s9838_s1 + $0x98] sm:$0xff]   ;;  %v7489_v14 = vld [vmem:[%s9838_s1 + $0xa0] sm:$0xff]   ;;  %v7492_v17 = vld [vmem:[%s9838_s1 + $0xa8] sm:$0xff]   ;;  %s7815_s20 = scalar_lea.vmem %s9837_s0, %s5730_s11  ;;  %vm391_vm7 = vsmask.f32 256  ;;  %s9787_s8 = scalar_lea.vmem %s9843_s6, %s5730_s11 }
  0x12   : > { %v7487_v12 = vld [vmem:[%s9838_s1 + $0x18] sm:$0xff]   ;;  %v7490_v15 = vld [vmem:[%s9838_s1 + $0x20] sm:$0xff]   ;;  %v7493_v18 = vld [vmem:[%s9838_s1 + $0x28] sm:$0xff]   ;;  %vm701_vm12 = vsmask.f32 7938 }
  0x13   : > { %v7494_v19 = vld [vmem:[%s9838_s1 + $0x70] sm:$0xff]   ;;  %v7497_v22 = vld [vmem:[%s9838_s1 + $0x78] sm:$0xff]   ;;  %v254_v24 = vld [vmem:[%s7815_s20] sm:$0xf] }
  0x14   : > { %5862 = vmatpush3.bf16.msra.mxu0 %v7481_v6  ;;  %6702 = vmatpush3.bf16.msra.mxu1 %v7480_v5  ;;  %v7495_v20 = vld [vmem:[%s9838_s1 + $0xb0] sm:$0xff]   ;;  %v7498_v23 = vld [vmem:[%s9838_s1 + $0xb8] sm:$0xff]   ;;  %v255_v25 = vld [vmem:[%s7815_s20 + $0x4] sm:$0xf]  ;;  %vm286_vm3 = vcmp.gt.bf16.partialorder %v254_v24, 0 }
  0x15   : > { %5863 = vmatprep.subr.bf16.mxu0 %v7482_v7  ;;  %6703 = vmatprep.subr.bf16.mxu1 %v7483_v8  ;;  %v7496_v21 = vld [vmem:[%s9838_s1 + $0x30] sm:$0xff]   ;;  %vm287_vm4 = vcmp.gt.bf16.partialorder %v255_v25, 0  ;;  %v318_v26 = vmul.bf16 1045249613, %v254_v24  ;;  %v319_v27 = vmul.bf16 1045249613, %v255_v25  ;;  %vm7829_vm5 = vmand %vm441_vm0, %vm442_vm2 }
  0x16   : > { %v444_v29 = vld [vmem:[#allocation2 + $0x28] sm:$0x80]  ;;  %v7499_v30 = vld [vmem:[%s9838_s1 + $0x38] sm:$0xff]   ;;  %v7500_v35 = vld [vmem:[%s9838_s1 + $0x100] sm:$0xff]  }
  0x17   : > { %v350_v31 = vsel %vm286_vm3, %v254_v24, %v318_v26  ;;  %v351_v32 = vsel %vm287_vm4, %v255_v25, %v319_v27  ;;  %v445_v33 = vsel %vm7829_vm5, 0, %v444_v29  ;;  %v256_v36 = vld [vmem:[%s7815_s20 + $0x8] sm:$0xf]  ;;  %v257_v37 = vld [vmem:[%s7815_s20 + $0xc] sm:$0xf]  ;;  %vm7845_vm11 = vmand %vm390_vm1, %vm391_vm7 }
  0x18   : > { %5864 = vmatpush3.bf16.msra.mxu0 %v7484_v9  ;;  %6704 = vmatpush3.bf16.msra.mxu1 %v7483_v8  ;;  %446 = vst [vmem:[#allocation2 + $0x28] sm:$0x80] %v445_v33  ;;  %v5510_v34 = vcombine.low %v350_v31, %v351_v32  ;;  %v447_v38 = vld [vmem:[#allocation2 + $0x40] sm:$0x80]  ;;  %vm288_vm9 = vcmp.gt.bf16.partialorder %v256_v36, 0  ;;  %vm289_vm10 = vcmp.gt.bf16.partialorder %v257_v37, 0  ;;  %vm7856_vm13 = vmand %vm700_vm8, %vm831_vm6 }
  0x19   : > { %5865 = vmatprep.subr.bf16.mxu0 %v7485_v10  ;;  %6705 = vmatprep.subr.bf16.mxu1 %v7486_v11  ;;  %v393_v42 = vld [vmem:[#allocation2 + $0x18] sm:$0x1]  ;;  %v320_v43 = vmul.bf16 1045249613, %v256_v36  ;;  %v321_v44 = vmul.bf16 1045249613, %v257_v37  ;;  %vm7883_vm1 = vmand %vm700_vm8, %vm701_vm12 }
  0x1a   : > { %v573_v39 = vshrl.u32 %v5510_v34, 16  ;;  %v576_v40 = vshll.u32 %v5510_v34, 16  ;;  %767 = vst [vmem:[#allocation2 + $0x20] sm:$0xff] %v5510_v34  ;;  %v448_v45 = vsel %vm7829_vm5, 0, %v447_v38  ;;  %v394_v46 = vsel %vm7845_vm11, 0, %v393_v42  ;;  %v7501_v51 = vld [vmem:[%s9838_s1 + $0xc0] sm:$0xff]  }
  0x1b   : > { %449 = vst [vmem:[#allocation2 + $0x40] sm:$0x80] %v448_v45  ;;  %395 = vst [vmem:[#allocation2 + $0x18] sm:$0x1] %v394_v46  ;;  %v258_v49 = vld [vmem:[%s7815_s20 + $0x10] sm:$0xf]  ;;  %v352_v52 = vsel %vm288_vm9, %v256_v36, %v320_v43  ;;  %v353_v53 = vsel %vm289_vm10, %v257_v37, %v321_v44 }
  0x1c   : > { %5866 = vmatpush3.bf16.msra.mxu0 %v7487_v12  ;;  %6706 = vmatpush3.bf16.msra.mxu1 %v7486_v11  ;;  %v783_v47 = vrot.slane %v576_v40, 1  ;;  %v575_v48 = vrot.slane %v573_v39, 7  ;;  %v259_v54 = vld [vmem:[%s7815_s20 + $0x14] sm:$0xf]  ;;  %vm290_vm14 = vcmp.gt.bf16.partialorder %v258_v49, 0  ;;  %v7866_v57 = vcombine.low %v352_v52, %v353_v53  ;;  %v7502_v60 = vld [vmem:[%s9838_s1 + $0x108] sm:$0xff]  }
  0x1d   : > { %5867 = vmatprep.subr.bf16.mxu0 %v7488_v13  ;;  %6707 = vmatprep.subr.bf16.mxu1 %v7489_v14  ;;  %v322_v55 = vmul.bf16 1045249613, %v258_v49  ;;  %vm291_vm15 = vcmp.gt.bf16.partialorder %v259_v54, 0  ;;  %v450_v58 = vld [vmem:[#allocation2 + $0x58] sm:$0x80]  ;;  %v7505_v31 = vld [vmem:[%s9838_s1 + $0xd0] sm:$0xff]  }
  0x1e   : > { %v784_v56 = vor.u32 %v783_v47, %v573_v39  ;;  %v260_v59 = vld [vmem:[%s7815_s20 + $0x18] sm:$0xf]  ;;  %v578_v62 = vor.u32 %v576_v40, %v575_v48  ;;  %v323_v63 = vmul.bf16 1045249613, %v259_v54  ;;  %v451_v1 = vsel %vm7829_vm5, 0, %v450_v58  ;;  %768 = vst [vmem:[#allocation2 + $0x38] sm:$0xff] %v7866_v57 }
  0x1f   : > { %v833_v61 = vld [vmem:[#allocation2 + $0x28] sm:$0xff]  ;;  %v354_v0 = vsel %vm290_vm14, %v258_v49, %v322_v55  ;;  %v261_v3 = vld [vmem:[%s7815_s20 + $0x1c] sm:$0xf]  ;;  %v580_v5 = vshrl.u32 %v7866_v57, 16  ;;  %v583_v6 = vshll.u32 %v7866_v57, 16  ;;  %vm292_vm0 = vcmp.gt.bf16.partialorder %v260_v59, 0 }
  0x20   : > { %5868 = vmatpush3.bf16.msra.mxu0 %v7490_v15  ;;  %6708 = vmatpush3.bf16.msra.mxu1 %v7489_v14  ;;  %v834_v4 = vsel %vm7856_vm13, %v784_v56, %v833_v61  ;;  %452 = vst [vmem:[#allocation2 + $0x58] sm:$0x80] %v451_v1  ;;  %v355_v8 = vsel %vm291_vm15, %v259_v54, %v323_v63  ;;  %vm293_vm2 = vcmp.gt.bf16.partialorder %v261_v3, 0  ;;  %v324_v9 = vmul.bf16 1045249613, %v260_v59  ;;  %v7503_v15 = vld [vmem:[%s9838_s1 + $0xc8] sm:$0xff]  }
  0x21   : > { %5869 = vmatprep.subr.bf16.mxu0 %v7491_v16  ;;  %6709 = vmatprep.subr.bf16.mxu1 %v7492_v17  ;;  %835 = vst [vmem:[#allocation2 + $0x28] sm:$0xff] %v834_v4  ;;  %v325_v10 = vmul.bf16 1045249613, %v261_v3  ;;  %v785_v11 = vrot.slane %v583_v6, 1  ;;  %v7888_v12 = vcombine.low %v354_v0, %v355_v8  ;;  %v396_v14 = vld [vmem:[#allocation2 + $0x30] sm:$0x1] }
  0x22   : > { %v7504_v16 = vld [vmem:[%s9838_s1 + $0x110] sm:$0xff]   ;;  %v263_v29 = vld [vmem:[%s7815_s20 + $0x24] sm:$0xf]  ;;  %v7506_v37 = vld [vmem:[%s9838_s1 + $0x118] sm:$0xff]  }
  0x23   : > { %v786_v24 = vor.u32 %v785_v11, %v580_v5  ;;  %v587_v26 = vshrl.u32 %v7888_v12, 16  ;;  %v590_v27 = vshll.u32 %v7888_v12, 16  ;;  %769 = vst [vmem:[#allocation2 + $0x50] sm:$0xff] %v7888_v12  ;;  %vm295_vm4 = vcmp.gt.bf16.partialorder %v263_v29, 0  ;;  %v264_v47 = vld [vmem:[%s7815_s20 + $0x28] sm:$0xf] }
  0x24   : > { %5870 = vmatpush3.bf16.msra.mxu0 %v7493_v18  ;;  %6710 = vmatpush3.bf16.msra.mxu1 %v7492_v17  ;;  %v836_v17 = vld [vmem:[#allocation2 + $0x40] sm:$0xff]  ;;  %v703_v18 = vld [vmem:[#allocation2 + $0x18] sm:$0xff]  ;;  %v327_v36 = vmul.bf16 1045249613, %v263_v29  ;;  %v265_v48 = vld [vmem:[%s7815_s20 + $0x2c] sm:$0xf] }
  0x25   : > { %5871 = vmatprep.subr.bf16.mxu0 %v7494_v19  ;;  %6711 = vmatprep.subr.bf16.mxu1 %v7495_v20  ;;  %v356_v19 = vsel %vm292_vm0, %v260_v59, %v324_v9  ;;  %v704_v25 = vsel %vm7883_vm1, %v578_v62, %v703_v18  ;;  %v837_v33 = vsel %vm7856_vm13, %v786_v24, %v836_v17  ;;  %v7507_v49 = vld [vmem:[%s9838_s1 + $0xd8] sm:$0xff]   ;;  %vm296_vm6 = vcmp.gt.bf16.partialorder %v264_v47, 0  ;;  %v459_v53 = vld [vmem:[#allocation2 + $0xa0] sm:$0x80]  ;;  %v399_v0 = vld [vmem:[#allocation2 + $0x48] sm:$0x1] }
  0x26   : > { %705 = vst [vmem:[#allocation2 + $0x18] sm:$0xff] %v704_v25  ;;  %838 = vst [vmem:[#allocation2 + $0x40] sm:$0xff] %v837_v33  ;;  %v359_v46 = vsel %vm295_vm4, %v263_v29, %v327_v36  ;;  %vm297_vm7 = vcmp.gt.bf16.partialorder %v265_v48, 0  ;;  %v7508_v54 = vld [vmem:[%s9838_s1 + $0x120] sm:$0xff]   ;;  %v329_v58 = vmul.bf16 1045249613, %v265_v48 }
  0x27   : > { %v839_v38 = vld [vmem:[#allocation2 + $0x58] sm:$0xff]  ;;  %v460_v59 = vsel %vm7829_vm5, 0, %v459_v53  ;;  %v589_v1 = vrot.slane %v587_v26, 7  ;;  %v267_v8 = vld [vmem:[%s7815_s20 + $0x34] sm:$0xf]  ;;  %v7509_v9 = vld [vmem:[%s9838_s1 + $0xe0] sm:$0xff]  }
  0x28   : > { %5872 = vmatpush3.bf16.msra.mxu0 %v7496_v21  ;;  %6712 = vmatpush3.bf16.msra.mxu1 %v7495_v20  ;;  %v357_v20 = vsel %vm293_vm2, %v261_v3, %v325_v10  ;;  %v397_v21 = vsel %vm7845_vm11, 0, %v396_v14  ;;  %461 = vst [vmem:[#allocation2 + $0xa0] sm:$0x80] %v460_v59  ;;  %v7510_v17 = vld [vmem:[%s9838_s1 + $0x128] sm:$0xff]   ;;  %vm299_vm9 = vcmp.gt.bf16.partialorder %v267_v8, 0  ;;  %v7593_v41 = vld [vmem:[%s9840_s3 + $0xf0] sm:$0xff]  }
  0x29   : > { %5873 = vmatprep.subr.bf16.mxu0 %v7497_v22  ;;  %6713 = vmatprep.subr.bf16.mxu1 %v7498_v23  ;;  %v582_v22 = vrot.slane %v580_v5, 7  ;;  %398 = vst [vmem:[#allocation2 + $0x30] sm:$0x1] %v397_v21  ;;  %v7911_v32 = vcombine.low %v356_v19, %v357_v20  ;;  %v361_v5 = vsel %vm297_vm7, %v265_v48, %v329_v58  ;;  %v331_v19 = vmul.bf16 1045249613, %v267_v8  ;;  %v7599_v50 = vld [vmem:[%s9840_s3 + $0x188] sm:$0xff]  }
  0x2a   : > { %v7968_v14 = vor.u32 %v590_v27, %v589_v1  ;;  %v465_v29 = vld [vmem:[#allocation2 + $0xd0] sm:$0x80]  ;;  %v270_v36 = vld [vmem:[%s7815_s20 + $0x40] sm:$0xf] }
  0x2b   : > { %v594_v39 = vshrl.u32 %v7911_v32, 16  ;;  %v597_v40 = vshll.u32 %v7911_v32, 16  ;;  %770 = vst [vmem:[#allocation2 + $0x68] sm:$0xff] %v7911_v32  ;;  %v585_v42 = vor.u32 %v583_v6, %v582_v22  ;;  %v400_v6 = vsel %vm7845_vm11, 0, %v399_v0 }
  0x2c   : > { %5874 = vmatpush3.bf16.msra.mxu0 %v7499_v30  ;;  %6714 = vmatpush3.bf16.msra.mxu1 %v7498_v23  ;;  %v262_v23 = vld [vmem:[%s7815_s20 + $0x20] sm:$0xf]  ;;  %v456_v30 = vld [vmem:[#allocation2 + $0x88] sm:$0x80]  ;;  %401 = vst [vmem:[#allocation2 + $0x48] sm:$0x1] %v400_v6 }
  0x2d   : > { %5995 = vmatprep.subr.bf16.mxu0 %v7500_v35  ;;  %7035 = vmatprep.subr.bf16.mxu1 %v7500_v35  ;;  %vm294_vm3 = vcmp.gt.bf16.partialorder %v262_v23, 0  ;;  %v326_v35 = vmul.bf16 1045249613, %v262_v23  ;;  %v457_v43 = vsel %vm7829_vm5, 0, %v456_v30  ;;  %v402_v30 = vld [vmem:[#allocation2 + $0x60] sm:$0x1] }
  0x2e   : > { %458 = vst [vmem:[#allocation2 + $0x88] sm:$0x80] %v457_v43  ;;  %v403_v43 = vsel %vm7845_vm11, 0, %v402_v30  ;;  %vm302_vm14 = vcmp.gt.bf16.partialorder %v270_v36, 0 }
  0x2f   : > { %1155 = vmatmul.mubr.bf16.vlgmr.msra.gmra.mrb[0].mxu0 %v7696_v2  ;;  %v453_v2 = vld [vmem:[#allocation2 + $0x70] sm:$0x80]  ;;  %6716 = vmatmul.mubr.bf16.vlgmr.msra.gmra.mrb[0].mxu1 %v834_v4  ;;  %v358_v45 = vsel %vm294_vm3, %v262_v23, %v326_v35  ;;  %404 = vst [vmem:[#allocation2 + $0x60] sm:$0x1] %v403_v43 }
  0x30   : > { %5996 = vmatpush3.bf16.msra.mxu0 %v7501_v51  ;;  %1162 = vmatprep.mubr.bf16.mxu0 %v5510_v34  ;;  %v454_v13 = vsel %vm7829_vm5, 0, %v453_v2  ;;  %v787_v34 = vrot.slane %v590_v27, 1  ;;  %v7935_v52 = vcombine.low %v358_v45, %v359_v46  ;;  %v706_v61 = vld [vmem:[#allocation2 + $0x30] sm:$0xff]  ;;  %v363_v27 = vsel %vm299_vm9, %v267_v8, %v331_v19 }
  0x31   : > { %5997 = vmatprep.subr.bf16.mxu0 %v7502_v60  ;;  %7043 = vmatpush3.bf16.msra.mxu1 %v7501_v51  ;;  %455 = vst [vmem:[#allocation2 + $0x70] sm:$0x80] %v454_v13  ;;  %v789_v51 = vrot.slane %v597_v40, 1  ;;  %v707_v3 = vsel %vm7883_vm1, %v585_v42, %v706_v61  ;;  %v266_v2 = vld [vmem:[%s7815_s20 + $0x30] sm:$0xf]  ;;  %v466_v42 = vsel %vm7829_vm5, 0, %v465_v29 }
  0x32   : > { %7036 = vmatprep.subr.bf16.mxu1 %v7502_v60  ;;  %6719 = vmatprep.mubr.bf16.mxu1 %v837_v33  ;;  %v788_v44 = vor.u32 %v787_v34, %v587_v26  ;;  %v601_v62 = vshrl.u32 %v7935_v52, 16  ;;  %v604_v63 = vshll.u32 %v7935_v52, 16  ;;  %771 = vst [vmem:[#allocation2 + $0x80] sm:$0xff] %v7935_v52  ;;  %708 = vst [vmem:[#allocation2 + $0x30] sm:$0xff] %v707_v3  ;;  %vm298_vm8 = vcmp.gt.bf16.partialorder %v266_v2, 0 }
  0x33   : > { %v790_v60 = vor.u32 %v789_v51, %v594_v39  ;;  %v330_v18 = vmul.bf16 1045249613, %v266_v2  ;;  %467 = vst [vmem:[#allocation2 + $0xd0] sm:$0x80] %v466_v42  ;;  %v468_v51 = vld [vmem:[#allocation2 + $0xe8] sm:$0x80] }
  0x34   : > { %5998 = vmatpush3.bf16.msra.mxu0 %v7503_v15  ;;  %v840_v55 = vsel %vm7856_vm13, %v788_v44, %v839_v38  ;;  %v791_v11 = vrot.slane %v604_v63, 1  ;;  %v596_v44 = vrot.slane %v594_v39, 7  ;;  %v709_v53 = vld [vmem:[#allocation2 + $0x48] sm:$0xff]  ;;  %v469_v0 = vsel %vm7829_vm5, 0, %v468_v51  ;;  %v474_v29 = vld [vmem:[#allocation2 + $0x118] sm:$0x80] }
  0x35   : > { %5999 = vmatprep.subr.bf16.mxu0 %v7504_v16  ;;  %7044 = vmatpush3.bf16.msra.mxu1 %v7503_v15  ;;  %841 = vst [vmem:[#allocation2 + $0x58] sm:$0xff] %v840_v55  ;;  %v462_v15 = vld [vmem:[#allocation2 + $0xb8] sm:$0x80]  ;;  %v845_v21 = vld [vmem:[#allocation2 + $0x88] sm:$0xff]  ;;  %v362_v26 = vsel %vm298_vm8, %v266_v2, %v330_v18  ;;  %v603_v1 = vrot.slane %v601_v62, 7  ;;  %v475_v43 = vsel %vm7829_vm5, 0, %v474_v29 }
  0x36   : > { %7037 = vmatprep.subr.bf16.mxu1 %v7504_v16  ;;  %v268_v16 = vld [vmem:[%s7815_s20 + $0x38] sm:$0xf]  ;;  %v792_v20 = vor.u32 %v791_v11, %v601_v62  ;;  %v463_v24 = vsel %vm7829_vm5, 0, %v462_v15  ;;  %v7987_v34 = vcombine.low %v362_v26, %v363_v27  ;;  %470 = vst [vmem:[#allocation2 + $0xe8] sm:$0x80] %v469_v0  ;;  %v712_v19 = vld [vmem:[#allocation2 + $0x60] sm:$0xff] }
  0x37   : > { %1163 = vmatmul.mubr.bf16.gmra.mrb[4].mxu0 %v704_v25  ;;  %6720 = vmatmul.mubr.bf16.gmra.mrb[4].mxu1 %v840_v55  ;;  %v269_v25 = vld [vmem:[%s7815_s20 + $0x3c] sm:$0xf]  ;;  %464 = vst [vmem:[#allocation2 + $0xb8] sm:$0x80] %v463_v24  ;;  %vm300_vm10 = vcmp.gt.bf16.partialorder %v268_v16, 0  ;;  %v7512_v55 = vld [vmem:[%s9838_s1 + $0x130] sm:$0xff]  }
  0x38   : > { %1170 = vmatprep.mubr.bf16.mxu0 %v7866_v57  ;;  %6000 = vmatpush3.bf16.msra.mxu0 %v7505_v31  ;;  %v842_v56 = vld [vmem:[#allocation2 + $0x70] sm:$0xff]  ;;  %v328_v57 = vmul.bf16 1045249613, %v264_v47  ;;  %vm301_vm12 = vcmp.gt.bf16.partialorder %v269_v25, 0  ;;  %v332_v35 = vmul.bf16 1045249613, %v268_v16 }
  0x39   : > { %6001 = vmatprep.subr.bf16.mxu0 %v7506_v37  ;;  %7045 = vmatpush3.bf16.msra.mxu1 %v7505_v31  ;;  %v843_v10 = vsel %vm7856_vm13, %v790_v60, %v842_v56  ;;  %v846_v31 = vsel %vm7856_vm13, %v792_v20, %v845_v21  ;;  %v333_v38 = vmul.bf16 1045249613, %v269_v25  ;;  %v615_v46 = vshrl.u32 %v7987_v34, 16  ;;  %773 = vst [vmem:[#allocation2 + $0xb0] sm:$0xff] %v7987_v34  ;;  %v471_v11 = vld [vmem:[#allocation2 + $0x100] sm:$0x80] }
  0x3a   : > { %7038 = vmatprep.subr.bf16.mxu1 %v7506_v37  ;;  %v360_v4 = vsel %vm296_vm6, %v264_v47, %v328_v57  ;;  %844 = vst [vmem:[#allocation2 + $0x70] sm:$0xff] %v843_v10  ;;  %6723 = vmatprep.mubr.bf16.mxu1 %v843_v10  ;;  %847 = vst [vmem:[#allocation2 + $0x88] sm:$0xff] %v846_v31  ;;  %v848_v37 = vld [vmem:[#allocation2 + $0xa0] sm:$0xff]  ;;  %v618_v47 = vshll.u32 %v7987_v34, 16  ;;  %v364_v48 = vsel %vm300_vm10, %v268_v16, %v332_v35  ;;  %v273_v10 = vld [vmem:[%s7815_s20 + $0x4c] sm:$0xf] }
  0x3b   : > { %v7964_v13 = vcombine.low %v360_v4, %v361_v5  ;;  %v365_v39 = vsel %vm301_vm12, %v269_v25, %v333_v38  ;;  %v710_v57 = vsel %vm7883_vm1, %v7968_v14, %v709_v53  ;;  %v334_v60 = vmul.bf16 1045249613, %v270_v36  ;;  %v854_v18 = vld [vmem:[#allocation2 + $0xd0] sm:$0xff]  ;;  %476 = vst [vmem:[#allocation2 + $0x118] sm:$0x80] %v475_v43 }
  0x3c   : > { %6002 = vmatpush3.bf16.msra.mxu0 %v7507_v49  ;;  %v795_v58 = vrot.slane %v618_v47, 1  ;;  %v8021_v59 = vcombine.low %v364_v48, %v365_v39  ;;  %711 = vst [vmem:[#allocation2 + $0x48] sm:$0xff] %v710_v57  ;;  %vm305_vm2 = vcmp.gt.bf16.partialorder %v273_v10, 0  ;;  %v472_v21 = vsel %vm7829_vm5, 0, %v471_v11  ;;  %v275_v27 = vld [vmem:[%s7815_s20 + $0x54] sm:$0xf] }
  0x3d   : > { %6003 = vmatprep.subr.bf16.mxu0 %v7508_v54  ;;  %7046 = vmatpush3.bf16.msra.mxu1 %v7507_v49  ;;  %v608_v22 = vshrl.u32 %v7964_v13, 16  ;;  %v611_v23 = vshll.u32 %v7964_v13, 16  ;;  %772 = vst [vmem:[#allocation2 + $0x98] sm:$0xff] %v7964_v13  ;;  %v271_v49 = vld [vmem:[%s7815_s20 + $0x44] sm:$0xf]  ;;  %v366_v62 = vsel %vm302_vm14, %v270_v36, %v334_v60  ;;  %vm307_vm4 = vcmp.gt.bf16.partialorder %v275_v27, 0 }
  0x3e   : > { %7039 = vmatprep.subr.bf16.mxu1 %v7508_v54  ;;  %v599_v54 = vor.u32 %v597_v40, %v596_v44  ;;  %vm303_vm15 = vcmp.gt.bf16.partialorder %v271_v49, 0  ;;  %v7513_v40 = vld [vmem:[%s9838_s1 + $0xf0] sm:$0xff]   ;;  %v335_v61 = vmul.bf16 1045249613, %v271_v49  ;;  %v851_v4 = vld [vmem:[#allocation2 + $0xb8] sm:$0xff]  ;;  %v622_v5 = vshrl.u32 %v8021_v59, 16 }
  0x3f   : > { %1171 = vmatmul.mubr.bf16.gmra.mrb[8].mxu0 %v707_v3  ;;  %v793_v33 = vrot.slane %v611_v23, 1  ;;  %6724 = vmatmul.mubr.bf16.gmra.mrb[8].mxu1 %v846_v31  ;;  %v796_v3 = vor.u32 %v795_v58, %v615_v46  ;;  %v625_v6 = vshll.u32 %v8021_v59, 16  ;;  %774 = vst [vmem:[#allocation2 + $0xc8] sm:$0xff] %v8021_v59  ;;  %v8039_v2 = vrot.slane %v608_v22, 7  ;;  %473 = vst [vmem:[#allocation2 + $0x100] sm:$0x80] %v472_v21 }
  0x40   : > { %1178 = vmatprep.mubr.bf16.mxu0 %v7888_v12  ;;  %6004 = vmatpush3.bf16.msra.mxu0 %v7509_v9  ;;  %v7511_v12 = vld [vmem:[%s9838_s1 + $0xe8] sm:$0xff]   ;;  %v367_v8 = vsel %vm303_vm15, %v271_v49, %v335_v61  ;;  %v713_v24 = vsel %vm7883_vm1, %v599_v54, %v712_v19  ;;  %v337_v30 = vmul.bf16 1045249613, %v273_v10  ;;  %v339_v42 = vmul.bf16 1045249613, %v275_v27 }
  0x41   : > { %6005 = vmatprep.subr.bf16.mxu0 %v7510_v17  ;;  %7047 = vmatpush3.bf16.msra.mxu1 %v7509_v9  ;;  %v794_v45 = vor.u32 %v793_v33, %v608_v22  ;;  %v272_v9 = vld [vmem:[%s7815_s20 + $0x48] sm:$0xf]  ;;  %v8048_v14 = vsel %vm7856_vm13, %v796_v3, %v851_v4  ;;  %v797_v15 = vrot.slane %v625_v6, 1  ;;  %v8052_v16 = vcombine.low %v366_v62, %v367_v8  ;;  %v276_v51 = vld [vmem:[%s7815_s20 + $0x58] sm:$0xf] }
  0x42   : > { %7040 = vmatprep.subr.bf16.mxu1 %v7510_v17  ;;  %vm304_vm0 = vcmp.gt.bf16.partialorder %v272_v9, 0  ;;  %v405_v17 = vld [vmem:[#allocation2 + $0x78] sm:$0x1]  ;;  %853 = vst [vmem:[#allocation2 + $0xb8] sm:$0xff] %v8048_v14  ;;  %v336_v20 = vmul.bf16 1045249613, %v272_v9  ;;  %v369_v38 = vsel %vm305_vm2, %v273_v10, %v337_v30  ;;  %v606_v48 = vor.u32 %v604_v63, %v603_v1 }
  0x43   : > { %v8014_v56 = vsel %vm7856_vm13, %v794_v45, %v848_v37  ;;  %v798_v22 = vor.u32 %v797_v15, %v622_v5  ;;  %v629_v25 = vshrl.u32 %v8052_v16, 16  ;;  %v632_v26 = vshll.u32 %v8052_v16, 16  ;;  %775 = vst [vmem:[#allocation2 + $0xe0] sm:$0xff] %v8052_v16  ;;  %714 = vst [vmem:[#allocation2 + $0x60] sm:$0xff] %v713_v24  ;;  %v857_v37 = vld [vmem:[#allocation2 + $0xe8] sm:$0xff]  ;;  %v7514_v62 = vld [vmem:[%s9838_s1 + $0x138] sm:$0xff]  }
  0x44   : > { %6006 = vmatpush3.bf16.msra.mxu0 %v7511_v12  ;;  %850 = vst [vmem:[#allocation2 + $0xa0] sm:$0xff] %v8014_v56  ;;  %6727 = vmatprep.mubr.bf16.mxu1 %v8014_v56  ;;  %v368_v31 = vsel %vm304_vm0, %v272_v9, %v336_v20  ;;  %v406_v33 = vsel %vm7845_vm11, 0, %v405_v17  ;;  %v277_v53 = vld [vmem:[%s7815_s20 + $0x5c] sm:$0xf]  ;;  %v371_v39 = vsel %vm307_vm4, %v275_v27, %v339_v42  ;;  %vm308_vm6 = vcmp.gt.bf16.partialorder %v276_v51, 0 }
  0x45   : > { %7048 = vmatpush3.bf16.msra.mxu1 %v7511_v12  ;;  %6007 = vmatprep.subr.bf16.mxu0 %v7512_v55  ;;  %v8072_v35 = vsel %vm7856_vm13, %v798_v22, %v854_v18  ;;  %v799_v36 = vrot.slane %v632_v26, 1  ;;  %407 = vst [vmem:[#allocation2 + $0x78] sm:$0x1] %v406_v33  ;;  %v8083_v45 = vcombine.low %v368_v31, %v369_v38  ;;  %vm309_vm7 = vcmp.gt.bf16.partialorder %v277_v53, 0  ;;  %v408_v60 = vld [vmem:[#allocation2 + $0x90] sm:$0x1] }
  0x46   : > { %7041 = vmatprep.subr.bf16.mxu1 %v7512_v55  ;;  %856 = vst [vmem:[#allocation2 + $0xd0] sm:$0xff] %v8072_v35  ;;  %v340_v54 = vmul.bf16 1045249613, %v276_v51  ;;  %v477_v55 = vld [vmem:[#allocation2 + $0x130] sm:$0x80]  ;;  %v860_v61 = vld [vmem:[#allocation2 + $0x100] sm:$0xff]  ;;  %v613_v30 = vor.u32 %v611_v23, %v8039_v2 }
  0x47   : > { %1179 = vmatmul.mubr.bf16.gmra.mrb[12].mxu0 %v710_v57  ;;  %6728 = vmatmul.mubr.bf16.gmra.mrb[12].mxu1 %v8048_v14  ;;  %v800_v44 = vor.u32 %v799_v36, %v629_v25  ;;  %v636_v63 = vshrl.u32 %v8083_v45, 16  ;;  %v639_v58 = vshll.u32 %v8083_v45, 16  ;;  %776 = vst [vmem:[#allocation2 + $0xf8] sm:$0xff] %v8083_v45  ;;  %v341_v0 = vmul.bf16 1045249613, %v277_v53  ;;  %v7515_v27 = vld [vmem:[%s9838_s1 + $0xf8] sm:$0xff]  }
  0x48   : > { %1186 = vmatprep.mubr.bf16.mxu0 %v7911_v32  ;;  %v274_v32 = vld [vmem:[%s7815_s20 + $0x50] sm:$0xf]  ;;  %6008 = vmatpush3.bf16.msra.mxu0 %v7513_v40  ;;  %v372_v1 = vsel %vm308_vm6, %v276_v51, %v340_v54  ;;  %v478_v3 = vsel %vm7829_vm5, 0, %v477_v55  ;;  %v409_v4 = vsel %vm7845_vm11, 0, %v408_v60  ;;  %v279_v11 = vld [vmem:[%s7815_s20 + $0x64] sm:$0xf] }
  0x49   : > { %7049 = vmatpush3.bf16.msra.mxu1 %v7513_v40  ;;  %vm306_vm3 = vcmp.gt.bf16.partialorder %v274_v32, 0  ;;  %v338_v12 = vmul.bf16 1045249613, %v274_v32  ;;  %6731 = vmatprep.mubr.bf16.mxu1 %v8072_v35  ;;  %v8094_v57 = vsel %vm7856_vm13, %v800_v44, %v857_v37  ;;  %v801_v8 = vrot.slane %v639_v58, 1  ;;  %479 = vst [vmem:[#allocation2 + $0x130] sm:$0x80] %v478_v3 }
  0x4a   : > { %859 = vst [vmem:[#allocation2 + $0xe8] sm:$0xff] %v8094_v57  ;;  %410 = vst [vmem:[#allocation2 + $0x90] sm:$0x1] %v409_v4  ;;  %v373_v17 = vsel %vm309_vm7, %v277_v53, %v341_v0  ;;  %vm311_vm9 = vcmp.gt.bf16.partialorder %v279_v11, 0  ;;  %v343_v18 = vmul.bf16 1045249613, %v279_v11  ;;  %7042 = vmatprep.subr.bf16.mxu1 %v7514_v62  ;;  %6009 = vmatprep.subr.bf16.mxu0 %v7514_v62 }
  0x4b   : > { %v370_v49 = vsel %vm306_vm3, %v274_v32, %v338_v12  ;;  %v802_v19 = vor.u32 %v801_v8, %v636_v63  ;;  %v8124_v22 = vcombine.low %v372_v1, %v373_v17  ;;  %v863_v29 = vld [vmem:[#allocation2 + $0x118] sm:$0xff]  ;;  %v280_v44 = vld [vmem:[%s7815_s20 + $0x68] sm:$0xf]  ;;  %v617_v3 = vrot.slane %v615_v46, 7  ;;  %v8175_v4 = vld [vmem:[%s9838_s1 + $0x140] sm:$0xff]  }
  0x4c   : > { %v8099_v40 = vcombine.low %v370_v49, %v371_v39  ;;  %v715_v15 = vld [vmem:[#allocation2 + $0x78] sm:$0xff]  ;;  %v375_v33 = vsel %vm311_vm9, %v279_v11, %v343_v18  ;;  %6010 = vmatpush3.bf16.msra.mxu0 %v7515_v27  ;;  %vm312_vm10 = vcmp.gt.bf16.partialorder %v280_v44, 0  ;;  %v344_v55 = vmul.bf16 1045249613, %v280_v44  ;;  %v411_v1 = vld [vmem:[#allocation2 + $0xa8] sm:$0x1] }
  0x4d   : > { %v716_v20 = vsel %vm7883_vm1, %v606_v48, %v715_v15  ;;  %v8137_v12 = vsel %vm7856_vm13, %v802_v19, %v860_v61  ;;  %v650_v38 = vshrl.u32 %v8124_v22, 16  ;;  %v653_v23 = vshll.u32 %v8124_v22, 16  ;;  %778 = vst [vmem:[#allocation2 + $0x128] sm:$0xff] %v8124_v22  ;;  %7050 = vmatpush3.bf16.msra.mxu1 %v7515_v27  ;;  %v281_v48 = vld [vmem:[%s7815_s20 + $0x6c] sm:$0xf] }
  0x4e   : > { %v643_v9 = vshrl.u32 %v8099_v40, 16  ;;  %v646_v10 = vshll.u32 %v8099_v40, 16  ;;  %777 = vst [vmem:[#allocation2 + $0x110] sm:$0xff] %v8099_v40  ;;  %717 = vst [vmem:[#allocation2 + $0x78] sm:$0xff] %v716_v20  ;;  %vm313_vm12 = vcmp.gt.bf16.partialorder %v281_v48, 0  ;;  %v376_v8 = vsel %vm312_vm10, %v280_v44, %v344_v55  ;;  %6747 = vmatprep.subr.bf16.mxu1 %v8175_v4 }
  0x4f   : > { %1187 = vmatmul.mubr.bf16.gmra.mrb[16].mxu0 %v713_v24  ;;  %6732 = vmatmul.mubr.bf16.gmra.mrb[16].mxu1 %v8094_v57  ;;  %v480_v24 = vld [vmem:[#allocation2 + $0x148] sm:$0x80]  ;;  %862 = vst [vmem:[#allocation2 + $0x100] sm:$0xff] %v8137_v12  ;;  %v805_v43 = vrot.slane %v653_v23, 1  ;;  %v345_v60 = vmul.bf16 1045249613, %v281_v48 }
  0x50   : > { %1194 = vmatprep.mubr.bf16.mxu0 %v7935_v52  ;;  %v278_v52 = vld [vmem:[%s7815_s20 + $0x60] sm:$0xf]  ;;  %v803_v21 = vrot.slane %v646_v10, 1  ;;  %v481_v36 = vsel %vm7829_vm5, 0, %v480_v24  ;;  %6735 = vmatprep.mubr.bf16.mxu1 %v8137_v12  ;;  %v866_v49 = vld [vmem:[#allocation2 + $0x130] sm:$0xff]  ;;  %v412_v15 = vsel %vm7845_vm11, 0, %v411_v1 }
  0x51   : > { %vm310_vm8 = vcmp.gt.bf16.partialorder %v278_v52, 0  ;;  %v342_v32 = vmul.bf16 1045249613, %v278_v52  ;;  %482 = vst [vmem:[#allocation2 + $0x148] sm:$0x80] %v481_v36  ;;  %v718_v51 = vld [vmem:[#allocation2 + $0x90] sm:$0xff]  ;;  %v806_v39 = vor.u32 %v805_v43, %v650_v38  ;;  %v377_v11 = vsel %vm313_vm12, %v281_v48, %v345_v60 }
  0x52   : > { %v804_v37 = vor.u32 %v803_v21, %v643_v9  ;;  %v719_v54 = vsel %vm7883_vm1, %v613_v30, %v718_v51  ;;  %v282_v17 = vld [vmem:[%s7815_s20 + $0x70] sm:$0xf]  ;;  %v8189_v19 = vcombine.low %v376_v8, %v377_v11  ;;  %413 = vst [vmem:[#allocation2 + $0xa8] sm:$0x1] %v412_v15  ;;  %v620_v43 = vor.u32 %v618_v47, %v617_v3  ;;  %v429_v51 = vld [vmem:[#allocation2 + $0x138] sm:$0x1] }
  0x53   : > { %v374_v31 = vsel %vm310_vm8, %v278_v52, %v342_v32  ;;  %v483_v52 = vld [vmem:[#allocation2 + $0x160] sm:$0x80]  ;;  %720 = vst [vmem:[#allocation2 + $0x90] sm:$0xff] %v719_v54  ;;  %v8179_v62 = vsel %vm7856_vm13, %v806_v39, %v866_v49  ;;  %v283_v32 = vld [vmem:[%s7815_s20 + $0x74] sm:$0xf]  ;;  %vm314_vm14 = vcmp.gt.bf16.partialorder %v282_v17, 0 }
  0x54   : > { %v8147_v2 = vcombine.low %v374_v31, %v375_v33  ;;  %v8151_v42 = vsel %vm7856_vm13, %v804_v37, %v863_v29  ;;  %v484_v0 = vsel %vm7829_vm5, 0, %v483_v52  ;;  %868 = vst [vmem:[#allocation2 + $0x130] sm:$0xff] %v8179_v62  ;;  %vm315_vm15 = vcmp.gt.bf16.partialorder %v283_v32, 0  ;;  %780 = vst [vmem:[#allocation2 + $0x158] sm:$0xff] %v8189_v19  ;;  %v414_v49 = vld [vmem:[#allocation2 + $0xc0] sm:$0x1] }
  0x55   : > { %865 = vst [vmem:[#allocation2 + $0x118] sm:$0xff] %v8151_v42  ;;  %485 = vst [vmem:[#allocation2 + $0x160] sm:$0x80] %v484_v0  ;;  %v346_v21 = vmul.bf16 1045249613, %v282_v17  ;;  %v664_v30 = vshrl.u32 %v8189_v19, 16 }
  0x56   : > { %v657_v53 = vshrl.u32 %v8147_v2, 16  ;;  %779 = vst [vmem:[#allocation2 + $0x140] sm:$0xff] %v8147_v2  ;;  %v347_v24 = vmul.bf16 1045249613, %v283_v32  ;;  %v667_v31 = vshll.u32 %v8189_v19, 16  ;;  %v624_v48 = vrot.slane %v622_v5, 7 }
  0x57   : > { %1195 = vmatmul.mubr.bf16.gmra.mrb[20].mxu0 %v716_v20  ;;  %6736 = vmatmul.mubr.bf16.gmra.mrb[20].mxu1 %v8151_v42  ;;  %v486_v20 = vld [vmem:[#allocation2 + $0x178] sm:$0x80]  ;;  %v378_v33 = vsel %vm314_vm14, %v282_v17, %v346_v21  ;;  %v430_v5 = vsel %vm7845_vm11, 0, %v429_v51  ;;  %v417_v3 = vld [vmem:[#allocation2 + $0xd8] sm:$0x1]  ;;  %v631_v17 = vrot.slane %v629_v25, 7 }
  0x58   : > { %1202 = vmatprep.mubr.bf16.mxu0 %v7964_v13  ;;  %v660_v13 = vshll.u32 %v8147_v2, 16  ;;  %6739 = vmatprep.mubr.bf16.mxu1 %v8179_v62  ;;  %v869_v18 = vld [vmem:[#allocation2 + $0x148] sm:$0xff]  ;;  %v487_v27 = vsel %vm7829_vm5, 0, %v486_v20  ;;  %v379_v36 = vsel %vm315_vm15, %v283_v32, %v347_v24  ;;  %v809_v37 = vrot.slane %v667_v31, 1  ;;  %431 = vst [vmem:[#allocation2 + $0x138] sm:$0x1] %v430_v5 }
  0x59   : > { %488 = vst [vmem:[#allocation2 + $0x178] sm:$0x80] %v487_v27  ;;  %v8205_v44 = vcombine.low %v378_v33, %v379_v36  ;;  %v721_v47 = vld [vmem:[#allocation2 + $0xa8] sm:$0xff]  ;;  %v659_v52 = vrot.slane %v657_v53, 7  ;;  %v418_v8 = vsel %vm7845_vm11, 0, %v417_v3 }
  0x5a   : > { %v807_v61 = vrot.slane %v660_v13, 1  ;;  %v810_v39 = vor.u32 %v809_v37, %v664_v30  ;;  %v8225_v0 = vsel %vm7883_vm1, %v620_v43, %v721_v47  ;;  %v432_v11 = vld [vmem:[#allocation2 + $0x150] sm:$0x1]  ;;  %419 = vst [vmem:[#allocation2 + $0xd8] sm:$0x1] %v418_v8 }
  0x5b   : > { %v671_v55 = vshrl.u32 %v8205_v44, 16  ;;  %v674_v60 = vshll.u32 %v8205_v44, 16  ;;  %781 = vst [vmem:[#allocation2 + $0x170] sm:$0xff] %v8205_v44  ;;  %723 = vst [vmem:[#allocation2 + $0xa8] sm:$0xff] %v8225_v0  ;;  %v433_v32 = vsel %vm7845_vm11, 0, %v432_v11  ;;  %v662_v24 = vor.u32 %v660_v13, %v659_v52 }
  0x5c   : > { %v808_v46 = vor.u32 %v807_v61, %v657_v53  ;;  %434 = vst [vmem:[#allocation2 + $0x150] sm:$0x1] %v433_v32  ;;  %v420_v20 = vld [vmem:[#allocation2 + $0xf0] sm:$0x1]  ;;  %v435_v27 = vld [vmem:[#allocation2 + $0x168] sm:$0x1]  ;;  %v634_v13 = vor.u32 %v632_v26, %v631_v17 }
  0x5d   : > { %v811_v1 = vrot.slane %v674_v60, 1  ;;  %v421_v25 = vsel %vm7845_vm11, 0, %v420_v20  ;;  %v673_v33 = vrot.slane %v671_v55, 7  ;;  %v284_v36 = vld [vmem:[%s7815_s20 + $0x78] sm:$0xf]  ;;  %v7518_v20 = vld [vmem:[%s9838_s1 + $0x150] sm:$0xff]  }
  0x5e   : > { %v8196_v29 = vsel %vm7856_vm13, %v808_v46, %v869_v18  ;;  %v627_v46 = vor.u32 %v625_v6, %v624_v48  ;;  %v666_v18 = vrot.slane %v664_v30, 7  ;;  %422 = vst [vmem:[#allocation2 + $0xf0] sm:$0x1] %v421_v25  ;;  %v436_v6 = vsel %vm7845_vm11, 0, %v435_v27  ;;  %v438_v5 = vld [vmem:[#allocation2 + $0x180] sm:$0x1] }
  0x5f   : > { %1203 = vmatmul.mubr.bf16.gmra.mrb[24].mxu0 %v719_v54  ;;  %871 = vst [vmem:[#allocation2 + $0x148] sm:$0xff] %v8196_v29  ;;  %6740 = vmatmul.mubr.bf16.gmra.mrb[24].mxu1 %v8196_v29  ;;  %v872_v54 = vld [vmem:[#allocation2 + $0x160] sm:$0xff]  ;;  %v812_v15 = vor.u32 %v811_v1, %v671_v55  ;;  %437 = vst [vmem:[#allocation2 + $0x168] sm:$0x1] %v436_v6  ;;  %v739_v43 = vld [vmem:[#allocation2 + $0x138] sm:$0xff]  ;;  %vm316_vm0 = vcmp.gt.bf16.partialorder %v284_v36, 0  ;;  %v676_v1 = vor.u32 %v674_v60, %v673_v33 }
  0x60   : > { %1210 = vmatprep.mubr.bf16.mxu0 %v7987_v34  ;;  %v415_v34 = vsel %vm7845_vm11, 0, %v414_v49  ;;  %v8221_v61 = vsel %vm7856_vm13, %v810_v39, %v872_v54  ;;  %v875_v53 = vld [vmem:[#allocation2 + $0x178] sm:$0xff]  ;;  %v669_v48 = vor.u32 %v667_v31, %v666_v18  ;;  %v8268_v51 = vsel %vm7883_vm1, %v662_v24, %v739_v43  ;;  %v423_v39 = vld [vmem:[#allocation2 + $0x108] sm:$0x1]  ;;  %v426_v11 = vld [vmem:[#allocation2 + $0x120] sm:$0x1] }
  0x61   : > { %416 = vst [vmem:[#allocation2 + $0xc0] sm:$0x1] %v415_v34  ;;  %874 = vst [vmem:[#allocation2 + $0x160] sm:$0xff] %v8221_v61  ;;  %6743 = vmatprep.mubr.bf16.mxu1 %v8221_v61  ;;  %v8244_v21 = vsel %vm7856_vm13, %v812_v15, %v875_v53  ;;  %v285_v49 = vld [vmem:[%s7815_s20 + $0x7c] sm:$0xf]  ;;  %v645_v54 = vrot.slane %v643_v9, 7 }
  0x62   : > { %877 = vst [vmem:[#allocation2 + $0x178] sm:$0xff] %v8244_v21  ;;  %vm317_vm2 = vcmp.gt.bf16.partialorder %v285_v49, 0  ;;  %v349_v26 = vmul.bf16 1045249613, %v285_v49  ;;  %741 = vst [vmem:[#allocation2 + $0x138] sm:$0xff] %v8268_v51  ;;  %v727_v31 = vld [vmem:[#allocation2 + $0xd8] sm:$0xff] }
  0x63   : > { %v424_v47 = vsel %vm7845_vm11, 0, %v423_v39  ;;  %v8281_v52 = vsel %vm7883_vm1, %v634_v13, %v727_v31  ;;  %v742_v9 = vld [vmem:[#allocation2 + $0x150] sm:$0xff]  ;;  %v7517_v53 = vld [vmem:[%s9838_s1 + $0x148] sm:$0xff]   ;;  %v427_v18 = vsel %vm7845_vm11, 0, %v426_v11  ;;  %v648_v25 = vor.u32 %v646_v10, %v645_v54  ;;  %v7519_v33 = vld [vmem:[%s9838_s1 + $0x158] sm:$0xff]  }
  0x64   : > { %v381_v3 = vsel %vm317_vm2, %v285_v49, %v349_v26  ;;  %425 = vst [vmem:[#allocation2 + $0x108] sm:$0x1] %v424_v47  ;;  %729 = vst [vmem:[#allocation2 + $0xd8] sm:$0xff] %v8281_v52  ;;  %v652_v27 = vrot.slane %v650_v38, 7  ;;  %v7520_v43 = vld [vmem:[%s9838_s1 + $0x160] sm:$0xff]   ;;  %v7523_v54 = vld [vmem:[%s9838_s1 + $0x178] sm:$0xff]  }
  0x65   : > { %v730_v60 = vld [vmem:[#allocation2 + $0xf0] sm:$0xff]  ;;  %428 = vst [vmem:[#allocation2 + $0x120] sm:$0x1] %v427_v18  ;;  %v1484_v31 = vld [vmem:[#allocation2 + $0x28] sm:$0xff]  ;;  %v8376_v47 = vld [vmem:[#allocation2 + $0x40] sm:$0xff] }
  0x66   : > { %v745_v17 = vld [vmem:[#allocation2 + $0x168] sm:$0xff]  ;;  %v655_v13 = vor.u32 %v653_v23, %v652_v27  ;;  %v489_v49 = vld [vmem:[#allocation2 + $0x190] sm:$0x80]  ;;  %v7539_v18 = vld [vmem:[%s9838_s1 + $0x198] sm:$0xff]  }
  0x67   : > { %1211 = vmatmul.mubr.bf16.gmra.mrb[28].mxu0 %v8225_v0  ;;  %6744 = vmatmul.mubr.bf16.gmra.mrb[28].mxu1 %v8244_v21  ;;  %v8316_v24 = vsel %vm7883_vm1, %v676_v1, %v745_v17  ;;  %v7528_v1 = vld [vmem:[%s9838_s1 + $0x210] sm:$0xff]   ;;  %v7531_v11 = vld [vmem:[%s9838_s1 + $0x188] sm:$0xff]  }
  0x68   : > { %1218 = vmatprep.mubr.bf16.mxu0 %v8021_v59  ;;  %v638_v59 = vrot.slane %v636_v63, 7  ;;  %1850 = vmatprep.mubr.bf16.mxu1 %v8147_v2  ;;  %v724_v30 = vld [vmem:[#allocation2 + $0xc0] sm:$0xff]  ;;  %v348_v63 = vmul.bf16 1045249613, %v284_v36  ;;  %747 = vst [vmem:[#allocation2 + $0x168] sm:$0xff] %v8316_v24  ;;  %v7534_v17 = vld [vmem:[%s9838_s1 + $0x1d0] sm:$0xff]  }
  0x69   : > { %v8262_v37 = vsel %vm7883_vm1, %v627_v46, %v724_v30  ;;  %v7543_v27 = vld [vmem:[%s9838_s1 + $0x1a8] sm:$0xff]  }
  0x6a   : > { %726 = vst [vmem:[#allocation2 + $0xc0] sm:$0xff] %v8262_v37  ;;  %v641_v55 = vor.u32 %v639_v58, %v638_v59  ;;  %v380_v34 = vsel %vm316_vm0, %v284_v36, %v348_v63  ;;  %v439_v58 = vsel %vm7845_vm11, 0, %v438_v5  ;;  %v7524_v59 = vld [vmem:[%s9838_s1 + $0x1c0] sm:$0xff]   ;;  %v490_v63 = vsel %vm7829_vm5, 0, %v489_v49  ;;  %v8379_v5 = vld [vmem:[#allocation2 + $0x58] sm:$0xff]  ;;  %v2097_v49 = vld [vmem:[#allocation2 + $0xd0] sm:$0xff] }
  0x6b   : > { %v8295_v8 = vcombine.low %v380_v34, %v381_v3  ;;  %440 = vst [vmem:[#allocation2 + $0x180] sm:$0x1] %v439_v58  ;;  %v733_v6 = vld [vmem:[#allocation2 + $0x108] sm:$0xff]  ;;  %6131 = vmatprep.subr.bf16.mxu0 %v7524_v59  ;;  %491 = vst [vmem:[#allocation2 + $0x190] sm:$0x80] %v490_v63  ;;  %v8389_v3 = vld [vmem:[#allocation2 + $0x70] sm:$0xff] }
  0x6c   : > { %v8301_v15 = vsel %vm7883_vm1, %v641_v55, %v730_v60  ;;  %v8330_v10 = vsel %vm7883_vm1, %v648_v25, %v733_v6  ;;  %v7530_v58 = vld [vmem:[%s9838_s1 + $0x218] sm:$0xff]   ;;  %v7542_v25 = vld [vmem:[%s9838_s1 + $0x1e8] sm:$0xff]   ;;  %v8480_v59 = vld [vmem:[#allocation2 + $0x80] sm:$0xff] }
  0x6d   : > { %v678_v32 = vshrl.u32 %v8295_v8, 16  ;;  %v681_v46 = vshll.u32 %v8295_v8, 16  ;;  %782 = vst [vmem:[#allocation2 + $0x188] sm:$0xff] %v8295_v8  ;;  %732 = vst [vmem:[#allocation2 + $0xf0] sm:$0xff] %v8301_v15  ;;  %v8421_v60 = vld [vmem:[#allocation2 + $0x38] sm:$0xff]  ;;  %v8506_v63 = vld [vmem:[#allocation2 + $0xe0] sm:$0xff] }
  0x6e   : > { %735 = vst [vmem:[#allocation2 + $0x108] sm:$0xff] %v8330_v10  ;;  %v7546_v6 = vld [vmem:[%s9838_s1 + $0x1f8] sm:$0xff]  }
  0x6f   : > { %1219 = vmatmul.mubr.bf16.gmra.mrb[32].mxu0 %v8262_v37  ;;  %1851 = vmatmul.mubr.bf16.vlgmr.msra.gmra.mrb[32].mxu1 %v8268_v51  ;;  %v813_v26 = vrot.slane %v681_v46, 1 }
  0x70   : > { %1226 = vmatprep.mubr.bf16.mxu0 %v8052_v16  ;;  %v8293_v16 = vsel %vm7883_vm1, %v669_v48, %v742_v9  ;;  %6748 = vmatpush3.bf16.msra.mxu1 %v8175_v4  ;;  %v680_v4 = vrot.slane %v678_v32, 7  ;;  %v7521_v48 = vld [vmem:[%s9838_s1 + $0x168] sm:$0xff]  }
  0x71   : > { %744 = vst [vmem:[#allocation2 + $0x150] sm:$0xff] %v8293_v16  ;;  %1858 = vmatprep.mubr.bf16.mxu1 %v8189_v19  ;;  %6749 = vmatprep.subr.bf16.mxu1 %v7517_v53  ;;  %v814_v39 = vor.u32 %v813_v26, %v678_v32  ;;  %v7527_v9 = vld [vmem:[%s9838_s1 + $0x208] sm:$0xff]   ;;  %v8440_v32 = vld [vmem:[#allocation2 + $0x50] sm:$0xff] }
  0x72   : > { %v683_v30 = vor.u32 %v681_v46, %v680_v4  ;;  %v748_v38 = vld [vmem:[#allocation2 + $0x180] sm:$0xff]  ;;  %v878_v55 = vld [vmem:[#allocation2 + $0x190] sm:$0xff]  ;;  %v7538_v46 = vld [vmem:[%s9838_s1 + $0x1d8] sm:$0xff]  }
  0x73   : > { %v8369_v34 = vsel %vm7856_vm13, %v814_v39, %v878_v55  ;;  %v8474_v4 = vld [vmem:[#allocation2 + $0x60] sm:$0xff]  ;;  %v2100_v26 = vld [vmem:[#allocation2 + $0xe8] sm:$0xff]  ;;  %v8510_v39 = vld [vmem:[#allocation2 + $0xf8] sm:$0xff] }
  0x74   : > { %6750 = vmatpush3.bf16.msra.mxu1 %v7517_v53  ;;  %v749_v36 = vsel %vm7883_vm1, %v683_v30, %v748_v38  ;;  %880 = vst [vmem:[#allocation2 + $0x190] sm:$0xff] %v8369_v34  ;;  %v7532_v53 = vld [vmem:[%s9838_s1 + $0x220] sm:$0xff]   ;;  %v7547_v30 = vld [vmem:[%s9838_s1 + $0x1b8] sm:$0xff]   ;;  %v8519_v55 = vld [vmem:[#allocation2 + $0x128] sm:$0xff] }
  0x75   : > { %6751 = vmatprep.subr.bf16.mxu1 %v7518_v20  ;;  %750 = vst [vmem:[#allocation2 + $0x180] sm:$0xff] %v749_v36  ;;  %v8493_v38 = vld [vmem:[#allocation2 + $0x98] sm:$0xff] }
  0x77   : > { %1227 = vmatmul.mubr.bf16.gmra.mrb[36].mxu0 %v8281_v52  ;;  %1859 = vmatmul.mubr.bf16.gmra.mrb[36].mxu1 %v8293_v16 }
  0x78   : > { %1234 = vmatprep.mubr.bf16.mxu0 %v8083_v45  ;;  %v736_v45 = vld [vmem:[#allocation2 + $0x120] sm:$0xff]  ;;  %6752 = vmatpush3.bf16.msra.mxu1 %v7518_v20  ;;  %v8454_v20 = vld [vmem:[#allocation2 + $0x48] sm:$0xff] }
  0x79   : > { %1866 = vmatprep.mubr.bf16.mxu1 %v8205_v44  ;;  %v8344_v23 = vsel %vm7883_vm1, %v655_v13, %v736_v45  ;;  %6753 = vmatprep.subr.bf16.mxu1 %v7519_v33  ;;  %v7644_v13 = vld [vmem:[#allocation2 + $0x78] sm:$0xff]  ;;  %v2091_v45 = vld [vmem:[#allocation2 + $0xa0] sm:$0xff] }
  0x7a   : > { %738 = vst [vmem:[#allocation2 + $0x120] sm:$0xff] %v8344_v23 }
  0x7c   : > { %6754 = vmatpush3.bf16.msra.mxu1 %v7519_v33  ;;  %v8498_v33 = vld [vmem:[#allocation2 + $0xb0] sm:$0xff] }
  0x7d   : > { %6755 = vmatprep.subr.bf16.mxu1 %v7520_v43 }
  0x7f   : > { %1235 = vmatmul.mubr.bf16.gmra.mrb[40].mxu0 %v8301_v15  ;;  %1867 = vmatmul.mubr.bf16.gmra.mrb[40].mxu1 %v8316_v24 }
  0x80   : > { %1242 = vmatprep.mubr.bf16.mxu0 %v8099_v40  ;;  %6756 = vmatpush3.bf16.msra.mxu1 %v7520_v43  ;;  %v7522_v40 = vld [vmem:[%s9838_s1 + $0x170] sm:$0xff]   ;;  %v8502_v43 = vld [vmem:[#allocation2 + $0xc8] sm:$0xff] }
  0x81   : > { %1874 = vmatprep.mubr.bf16.mxu1 %v8295_v8  ;;  %6757 = vmatprep.subr.bf16.mxu1 %v7521_v48  ;;  %v7535_v8 = vld [vmem:[%s9838_s1 + $0x230] sm:$0xff]  }
  0x84   : > { %6758 = vmatpush3.bf16.msra.mxu1 %v7521_v48  ;;  %v2094_v48 = vld [vmem:[#allocation2 + $0xb8] sm:$0xff] }
  0x85   : > { %6759 = vmatprep.subr.bf16.mxu1 %v7522_v40 }
  0x87   : > { %1243 = vmatmul.mubr.bf16.gmra.mrb[44].mxu0 %v8330_v10  ;;  %1875 = vmatmul.mubr.bf16.gmra.mrb[44].mxu1 %v749_v36  ;;  %v7645_v36 = vld [vmem:[#allocation2 + $0x90] sm:$0xff] }
  0x88   : > { %1250 = vmatprep.mubr.bf16.mxu0 %v8124_v22  ;;  %6760 = vmatpush3.bf16.msra.mxu1 %v7522_v40  ;;  %v7525_v22 = vld [vmem:[%s9838_s1 + $0x200] sm:$0xff]  }
  0x89   : > { %6763 = vmatprep.mubr.bf16.mxu1 %v1484_v31  ;;  %6761 = vmatprep.subr.bf16.mxu1 %v7523_v54  ;;  %v2103_v40 = vld [vmem:[#allocation2 + $0x100] sm:$0xff]  ;;  %v8514_v31 = vld [vmem:[#allocation2 + $0x110] sm:$0xff] }
  0x8c   : > { %6762 = vmatpush3.bf16.msra.mxu1 %v7523_v54  ;;  %v7646_v54 = vld [vmem:[#allocation2 + $0x130] sm:$0xff] }
  0x8d   : > { %6795 = vmatprep.subr.bf16.mxu1 %v7525_v22 }
  0x8f   : > { %1251 = vmatmul.mubr.bf16.gmra.mrb[48].mxu0 %v8344_v23  ;;  %6764 = vmatmul.mubr.bf16.vlgmr.msra.gmra.mrb[0].mxu1 %v8376_v47 }
  0x90   : > { %1258 = vmatprep.mubr.bf16.mxu0 %v8147_v2  ;;  %6767 = vmatprep.mubr.bf16.mxu1 %v8379_v5  ;;  %v8392_v2 = vld [vmem:[#allocation2 + $0x88] sm:$0xff] }
  0x91   : > { %6796 = vmatpush3.bf16.msra.mxu1 %v7525_v22 }
  0x92   : > { %6797 = vmatprep.subr.bf16.mxu1 %v7527_v9 }
  0x95   : > { %6798 = vmatpush3.bf16.msra.mxu1 %v7527_v9 }
  0x96   : > { %6799 = vmatprep.subr.bf16.mxu1 %v7528_v1 }
  0x97   : > { %1259 = vmatmul.mubr.bf16.gmra.mrb[52].mxu0 %v8268_v51  ;;  %6768 = vmatmul.mubr.bf16.gmra.mrb[4].mxu1 %v8389_v3  ;;  %v7533_v51 = vld [vmem:[%s9838_s1 + $0x228] sm:$0xff]  }
  0x98   : > { %1266 = vmatprep.mubr.bf16.mxu0 %v8189_v19  ;;  %6771 = vmatprep.mubr.bf16.mxu1 %v8392_v2  ;;  %v1483_v19 = vld [vmem:[#allocation2 + $0x20] sm:$0xff] }
  0x99   : > { %6800 = vmatpush3.bf16.msra.mxu1 %v7528_v1 }
  0x9a   : > { %6801 = vmatprep.subr.bf16.mxu1 %v7530_v58 }
  0x9d   : > { %6802 = vmatpush3.bf16.msra.mxu1 %v7530_v58 }
  0x9e   : > { %6803 = vmatprep.subr.bf16.mxu1 %v7532_v53 }
  0x9f   : > { %1267 = vmatmul.mubr.bf16.gmra.mrb[56].mxu0 %v8293_v16  ;;  %6772 = vmatmul.mubr.bf16.gmra.mrb[8].mxu1 %v8014_v56  ;;  %v7537_v16 = vld [vmem:[%s9838_s1 + $0x238] sm:$0xff]   ;;  %v7526_v56 = vld [vmem:[%s9838_s1 + $0x180] sm:$0xff]  }
  0xa0   : > { %1274 = vmatprep.mubr.bf16.mxu0 %v8205_v44  ;;  %6775 = vmatprep.mubr.bf16.mxu1 %v8048_v14  ;;  %v1482_v44 = vld [vmem:[#allocation2 + $0x18] sm:$0xff]  ;;  %v7529_v14 = vld [vmem:[%s9838_s1 + $0x1c8] sm:$0xff]  }
  0xa1   : > { %6804 = vmatpush3.bf16.msra.mxu1 %v7532_v53 }
  0xa2   : > { %6805 = vmatprep.subr.bf16.mxu1 %v7533_v51 }
  0xa5   : > { %6806 = vmatpush3.bf16.msra.mxu1 %v7533_v51 }
  0xa6   : > { %6807 = vmatprep.subr.bf16.mxu1 %v7535_v8 }
  0xa7   : > { %1275 = vmatmul.mubr.bf16.gmra.mrb[60].mxu0 %v8316_v24  ;;  %6776 = vmatmul.mubr.bf16.gmra.mrb[12].mxu1 %v8072_v35  ;;  %v8434_v35 = vld [vmem:[#allocation2 + $0x30] sm:$0xff]  ;;  %v8460_v24 = vld [vmem:[#allocation2 + $0x68] sm:$0xff] }
  0xa8   : > { %1754 = vmatprep.mubr.bf16.mxu0 %v1483_v19  ;;  %6779 = vmatprep.mubr.bf16.mxu1 %v8094_v57  ;;  %v7536_v57 = vld [vmem:[%s9838_s1 + $0x190] sm:$0xff]  }
  0xa9   : > { %6808 = vmatpush3.bf16.msra.mxu1 %v7535_v8 }
  0xaa   : > { %6809 = vmatprep.subr.bf16.mxu1 %v7537_v16 }
  0xad   : > { %6810 = vmatpush3.bf16.msra.mxu1 %v7537_v16 }
  0xaf   : > { %1755 = vmatmul.mubr.bf16.vlgmr.msra.gmra.mrb[64].mxu0 %v1482_v44  ;;  %6780 = vmatmul.mubr.bf16.gmra.mrb[16].mxu1 %v8137_v12  ;;  %v7540_v12 = vld [vmem:[%s9838_s1 + $0x1e0] sm:$0xff]  }
  0xb0   : > { %6132 = vmatpush3.bf16.msra.mxu0 %v7526_v56  ;;  %1762 = vmatprep.mubr.bf16.mxu0 %v8421_v60 }
  0xb1   : > { %6133 = vmatprep.subr.bf16.mxu0 %v7529_v14  ;;  %6783 = vmatprep.mubr.bf16.mxu1 %v8151_v42  ;;  %v7541_v42 = vld [vmem:[%s9838_s1 + $0x1a0] sm:$0xff]  }
  0xb4   : > { %6134 = vmatpush3.bf16.msra.mxu0 %v7531_v11 }
  0xb5   : > { %6135 = vmatprep.subr.bf16.mxu0 %v7534_v17 }
  0xb7   : > { %1763 = vmatmul.mubr.bf16.gmra.mrb[68].mxu0 %v8434_v35  ;;  %6784 = vmatmul.mubr.bf16.gmra.mrb[20].mxu1 %v8179_v62  ;;  %v7544_v62 = vld [vmem:[%s9838_s1 + $0x1f0] sm:$0xff]  }
  0xb8   : > { %1770 = vmatprep.mubr.bf16.mxu0 %v8440_v32  ;;  %6136 = vmatpush3.bf16.msra.mxu0 %v7536_v57 }
  0xb9   : > { %6137 = vmatprep.subr.bf16.mxu0 %v7538_v46  ;;  %6787 = vmatprep.mubr.bf16.mxu1 %v8196_v29  ;;  %v7545_v29 = vld [vmem:[%s9838_s1 + $0x1b0] sm:$0xff]  }
  0xbc   : > { %6138 = vmatpush3.bf16.msra.mxu0 %v7539_v18 }
  0xbd   : > { %6139 = vmatprep.subr.bf16.mxu0 %v7540_v12 }
  0xbf   : > { %1771 = vmatmul.mubr.bf16.gmra.mrb[72].mxu0 %v8454_v20  ;;  %6788 = vmatmul.mubr.bf16.gmra.mrb[24].mxu1 %v8221_v61 }
  0xc0   : > { %1778 = vmatprep.mubr.bf16.mxu0 %v8460_v24  ;;  %6140 = vmatpush3.bf16.msra.mxu0 %v7541_v42 }
  0xc1   : > { %6141 = vmatprep.subr.bf16.mxu0 %v7542_v25  ;;  %6791 = vmatprep.mubr.bf16.mxu1 %v8244_v21 }
  0xc4   : > { %6142 = vmatpush3.bf16.msra.mxu0 %v7543_v27 }
  0xc5   : > { %6143 = vmatprep.subr.bf16.mxu0 %v7544_v62 }
  0xc7   : > { %1779 = vmatmul.mubr.bf16.gmra.mrb[76].mxu0 %v8474_v4  ;;  %6792 = vmatmul.mubr.bf16.gmra.mrb[28].mxu1 %v8369_v34 }
  0xc8   : > { %1786 = vmatprep.mubr.bf16.mxu0 %v8480_v59  ;;  %6144 = vmatpush3.bf16.msra.mxu0 %v7545_v29 }
  0xc9   : > { %6145 = vmatprep.subr.bf16.mxu0 %v7546_v6  ;;  %6811 = vmatprep.mubr.bf16.mxu1 %v8376_v47 }
  0xcc   : > { %6146 = vmatpush3.bf16.msra.mxu0 %v7547_v30 }
  0xcf   : > { %1787 = vmatmul.mubr.bf16.gmra.mrb[80].mxu0 %v7644_v13  ;;  %6812 = vmatmul.mubr.bf16.vlgmr.msra.gmra.mrb[0].mxu1 %v8379_v5 }
  0xd0   : > { %1794 = vmatprep.mubr.bf16.mxu0 %v8493_v38  ;;  %6815 = vmatprep.mubr.bf16.mxu1 %v8389_v3 }
  0xd7   : > { %1795 = vmatmul.mubr.bf16.gmra.mrb[84].mxu0 %v7645_v36  ;;  %6816 = vmatmul.mubr.bf16.gmra.mrb[4].mxu1 %v8392_v2  ;;  %v8531_v2 = vld [vmem:[#allocation2 + $0x8] sm:$0xff] }
  0xd8   : > { %1802 = vmatprep.mubr.bf16.mxu0 %v8498_v33  ;;  %6819 = vmatprep.mubr.bf16.mxu1 %v2091_v45 }
  0xdf   : > { %1803 = vmatmul.mubr.bf16.gmra.mrb[88].mxu0 %v8225_v0  ;;  %6820 = vmatmul.mubr.bf16.gmra.mrb[8].mxu1 %v2094_v48  ;;  %v2106_v0 = vld [vmem:[#allocation2 + $0x118] sm:$0xff] }
  0xe0   : > { %1810 = vmatprep.mubr.bf16.mxu0 %v8502_v43  ;;  %6823 = vmatprep.mubr.bf16.mxu1 %v2097_v49 }
  0xe7   : > { %1811 = vmatmul.mubr.bf16.gmra.mrb[92].mxu0 %v8262_v37  ;;  %6824 = vmatmul.mubr.bf16.gmra.mrb[12].mxu1 %v2100_v26  ;;  %v7647_v37 = vld [vmem:[#allocation2 + $0x148] sm:$0xff] }
  0xe8   : > { %1818 = vmatprep.mubr.bf16.mxu0 %v8506_v63  ;;  %6827 = vmatprep.mubr.bf16.mxu1 %v2103_v40 }
  0xef   : > { %1819 = vmatmul.mubr.bf16.gmra.mrb[96].mxu0 %v8281_v52  ;;  %6828 = vmatmul.mubr.bf16.gmra.mrb[16].mxu1 %v2106_v0 }
  0xf0   : > { %1826 = vmatprep.mubr.bf16.mxu0 %v8510_v39  ;;  %6831 = vmatprep.mubr.bf16.mxu1 %v7646_v54 }
  0xf7   : > { %1827 = vmatmul.mubr.bf16.gmra.mrb[100].mxu0 %v8301_v15  ;;  %6832 = vmatmul.mubr.bf16.gmra.mrb[20].mxu1 %v7647_v37 }
  0xf8   : > { %1834 = vmatprep.mubr.bf16.mxu0 %v8514_v31  ;;  %6835 = vmatprep.mubr.bf16.mxu1 %v8221_v61 }
  0xff   : > { %1835 = vmatmul.mubr.bf16.gmra.mrb[104].mxu0 %v8330_v10  ;;  %6836 = vmatmul.mubr.bf16.gmra.mrb[24].mxu1 %v8244_v21 }
 0x100   : > { %1842 = vmatprep.mubr.bf16.mxu0 %v8519_v55  ;;  %6839 = vmatprep.mubr.bf16.mxu1 %v8369_v34 }
 0x102   : > { %v5875_v22 = vpop.f32.mrb[0].mxu0 }
 0x103   : > { %v5876_v47 = vpop.f32.mrb[1].mxu0 }
 0x104   : > { %v8524_v5 = vadd.f32 %v5876_v47, %v5875_v22  ;;  %v5878_v9 = vpop.f32.mrb[2].mxu0 }
 0x105   : > { %v5879_v1 = vpop.f32.mrb[3].mxu0 }
 0x106   : > { %v8527_v3 = vadd.f32 %v5879_v1, %v5878_v9 }
 0x107   : > { %1843 = vmatmul.mubr.bf16.gmra.mrb[108].mxu0 %v8344_v23  ;;  %6840 = vmatmul.mubr.bf16.gmra.mrb[28].mxu1 %v8531_v2 }
 0x108   : > { %2349 = vmatprep.mubr.bf16.mxu0 %v8421_v60  ;;  %6859 = vmatprep.mubr.bf16.mxu1 %v8531_v2 }
 0x10a   : > { %v5881_v61 = vpop.f32.mrb[4].mxu0 }
 0x10b   : > { %v5882_v58 = vpop.f32.mrb[5].mxu0 }
 0x10c   : > { %v8534_v21 = vadd.f32 %v5882_v58, %v5881_v61  ;;  %v5884_v53 = vpop.f32.mrb[6].mxu0 }
 0x10d   : > { %v5885_v51 = vpop.f32.mrb[7].mxu0 }
 0x10e   : > { %v8537_v34 = vadd.f32 %v5885_v51, %v5884_v53 }
 0x10f   : > { %2350 = vmatmul.mubr.bf16.vlgmr.msra.gmra.mrb[112].mxu0 %v8434_v35 }
 0x110   : > { %2357 = vmatprep.mubr.bf16.mxu0 %v8440_v32 }
 0x112   : > { %v5887_v19 = vpop.f32.mrb[8].mxu0 }
 0x113   : > { %v5888_v8 = vpop.f32.mrb[9].mxu0 }
 0x114   : > { %v8541_v16 = vadd.f32 %v5888_v8, %v5887_v19  ;;  %v5890_v44 = vpop.f32.mrb[10].mxu0 }
 0x115   : > { %v5891_v56 = vpop.f32.mrb[11].mxu0 }
 0x116   : > { %v8543_v60 = vadd.f32 %v5891_v56, %v5890_v44 }
 0x117   : > { %2358 = vmatmul.mubr.bf16.gmra.mrb[116].mxu0 %v8454_v20  ;;  %v2086_v20 = vld [vmem:[#allocation2 + $0x78] sm:$0xff] }
 0x118   : > { %2365 = vmatprep.mubr.bf16.mxu0 %v8460_v24 }
 0x11a   : > { %v5893_v14 = vpop.f32.mrb[12].mxu0 }
 0x11b   : > { %v5894_v11 = vpop.f32.mrb[13].mxu0 }
 0x11c   : > { %v8547_v17 = vadd.f32 %v5894_v11, %v5893_v14  ;;  %v5896_v57 = vpop.f32.mrb[14].mxu0 }
 0x11d   : > { %v5897_v35 = vpop.f32.mrb[15].mxu0 }
 0x11e   : > { %v8549_v46 = vadd.f32 %v5897_v35, %v5896_v57 }
 0x11f   : > { %2366 = vmatmul.mubr.bf16.gmra.mrb[120].mxu0 %v8474_v4  ;;  %v2089_v4 = vld [vmem:[#allocation2 + $0x90] sm:$0xff] }
 0x120   : > { %2373 = vmatprep.mubr.bf16.mxu0 %v8480_v59 }
 0x122   : > { %v5899_v32 = vpop.f32.mrb[16].mxu0 }
 0x123   : > { %v5900_v18 = vpop.f32.mrb[17].mxu0 }
 0x124   : > { %v8553_v12 = vadd.f32 %v5900_v18, %v5899_v32  ;;  %v5902_v42 = vpop.f32.mrb[18].mxu0 }
 0x125   : > { %v5903_v25 = vpop.f32.mrb[19].mxu0 }
 0x126   : > { %v8555_v24 = vadd.f32 %v5903_v25, %v5902_v42 }
 0x127   : > { %2374 = vmatmul.mubr.bf16.gmra.mrb[124].mxu0 %v2086_v20 }
 0x128   : > { %2381 = vmatprep.mubr.bf16.mxu0 %v8493_v38  ;;  %v7649_v38 = vld [vmem:[#allocation2 + $0xa8] sm:$0xff] }
 0x12a   : > { %v5905_v27 = vpop.f32.mrb[20].mxu0 }
 0x12b   : > { %v5906_v62 = vpop.f32.mrb[21].mxu0 }
 0x12c   : > { %v8558_v29 = vadd.f32 %v5906_v62, %v5905_v27  ;;  %v5908_v6 = vpop.f32.mrb[22].mxu0 }
 0x12d   : > { %v5909_v30 = vpop.f32.mrb[23].mxu0 }
 0x12e   : > { %v8560_v59 = vadd.f32 %v5909_v30, %v5908_v6  ;;  %v7548_v6 = vld [vmem:[%s9840_s3 + $0x40] sm:$0xff]  }
 0x12f   : > { %2382 = vmatmul.mubr.bf16.gmra.mrb[128].mxu0 %v2089_v4  ;;  %v7549_v30 = vld [vmem:[%s9840_s3] sm:$0xff]   ;;  %6267 = vmatprep.subr.bf16.mxu0 %v7548_v6 }
 0x130   : > { %2389 = vmatprep.mubr.bf16.mxu0 %v8498_v33  ;;  %v7650_v33 = vld [vmem:[#allocation2 + $0xc0] sm:$0xff]  ;;  %6268 = vmatpush3.bf16.msra.mxu0 %v7549_v30 }
 0x132   : > { %v5911_v13 = vpop.f32.mrb[24].mxu0 }
 0x133   : > { %v5912_v36 = vpop.f32.mrb[25].mxu0 }
 0x134   : > { %v8563_v45 = vadd.f32 %v5912_v36, %v5911_v13  ;;  %v5914_v48 = vpop.f32.mrb[26].mxu0 }
 0x135   : > { %v5915_v49 = vpop.f32.mrb[27].mxu0 }
 0x136   : > { %v8565_v26 = vadd.f32 %v5915_v49, %v5914_v48  ;;  %v7550_v49 = vld [vmem:[%s9840_s3 + $0x48] sm:$0xff]  }
 0x137   : > { %2390 = vmatmul.mubr.bf16.gmra.mrb[132].mxu0 %v7649_v38  ;;  %6269 = vmatprep.subr.bf16.mxu0 %v7550_v49  ;;  %v2110_v49 = vld [vmem:[#allocation2 + $0x138] sm:$0xff] }
 0x138   : > { %2397 = vmatprep.mubr.bf16.mxu0 %v8502_v43 }
 0x13a   : > { %v5917_v40 = vpop.f32.mrb[28].mxu0 }
 0x13b   : > { %v5918_v0 = vpop.f32.mrb[29].mxu0 }
 0x13c   : > { %v8568_v54 = vadd.f32 %v5918_v0, %v5917_v40  ;;  %v5920_v37 = vpop.f32.mrb[30].mxu0  ;;  %v7551_v40 = vld [vmem:[%s9840_s3 + $0x8] sm:$0xff]  }
 0x13d   : > { %v5921_v22 = vpop.f32.mrb[31].mxu0  ;;  %6270 = vmatpush3.bf16.msra.mxu0 %v7551_v40 }
 0x13e   : > { %v8570_v47 = vadd.f32 %v5921_v22, %v5920_v37 }
 0x13f   : > { %2398 = vmatmul.mubr.bf16.gmra.mrb[136].mxu0 %v7650_v33 }
 0x140   : > { %2405 = vmatprep.mubr.bf16.mxu0 %v8506_v63 }
 0x142   : > { %v5923_v9 = vpop.f32.mrb[32].mxu0  ;;  %v6083_v43 = vpop.f32.mrb[32].mxu1 }
 0x143   : > { %v5924_v1 = vpop.f32.mrb[33].mxu0  ;;  %v6084_v19 = vpop.f32.mrb[33].mxu1 }
 0x144   : > { %v8573_v61 = vadd.f32 %v5924_v1, %v5923_v9  ;;  %v5926_v58 = vpop.f32.mrb[34].mxu0  ;;  %v8579_v8 = vadd.f32 %v6084_v19, %v6083_v43  ;;  %v6086_v44 = vpop.f32.mrb[34].mxu1  ;;  %v7553_v1 = vld [vmem:[%s9840_s3 + $0x80] sm:$0xff]  }
 0x145   : > { %v5927_v53 = vpop.f32.mrb[35].mxu0  ;;  %v6087_v56 = vpop.f32.mrb[35].mxu1  ;;  %6843 = vmatprep.subr.bf16.mxu1 %v7553_v1 }
 0x146   : > { %v8575_v51 = vadd.f32 %v5927_v53, %v5926_v58  ;;  %v8581_v63 = vadd.f32 %v6087_v56, %v6086_v44  ;;  %v2111_v44 = vld [vmem:[#allocation2 + $0x140] sm:$0xff]  ;;  %6844 = vmatpush3.bf16.msra.mxu1 %v7553_v1  ;;  %v7562_v1 = vld [vmem:[%s9840_s3 + $0x98] sm:$0xff]  }
 0x147   : > { %2406 = vmatmul.mubr.bf16.gmra.mrb[140].mxu0 %v8281_v52 }
 0x148   : > { %2413 = vmatprep.mubr.bf16.mxu0 %v8510_v39 }
 0x14a   : > { %v5929_v14 = vpop.f32.mrb[36].mxu0  ;;  %v6089_v42 = vpop.f32.mrb[36].mxu1 }
 0x14b   : > { %v5930_v11 = vpop.f32.mrb[37].mxu0  ;;  %v6090_v52 = vpop.f32.mrb[37].mxu1 }
 0x14c   : > { %v8583_v57 = vadd.f32 %v5930_v11, %v5929_v14  ;;  %v5932_v35 = vpop.f32.mrb[38].mxu0  ;;  %v8589_v39 = vadd.f32 %v6090_v52, %v6089_v42  ;;  %v6092_v20 = vpop.f32.mrb[38].mxu1  ;;  %v7555_v11 = vld [vmem:[%s9840_s3 + $0x58] sm:$0xff]  }
 0x14d   : > { %v5933_v32 = vpop.f32.mrb[39].mxu0  ;;  %v6093_v25 = vpop.f32.mrb[39].mxu1  ;;  %v7557_v42 = vld [vmem:[%s9840_s3 + $0x18] sm:$0xff]  }
 0x14e   : > { %v8585_v18 = vadd.f32 %v5933_v32, %v5932_v35  ;;  %v8591_v62 = vadd.f32 %v6093_v25, %v6092_v20  ;;  %v7556_v35 = vld [vmem:[%s9840_s3 + $0x88] sm:$0xff]  }
 0x14f   : > { %2414 = vmatmul.mubr.bf16.gmra.mrb[144].mxu0 %v8301_v15  ;;  %6845 = vmatprep.subr.bf16.mxu1 %v7556_v35 }
 0x150   : > { %2421 = vmatprep.mubr.bf16.mxu0 %v8514_v31  ;;  %6846 = vmatpush3.bf16.msra.mxu1 %v7556_v35 }
 0x152   : > { %v5935_v27 = vpop.f32.mrb[40].mxu0  ;;  %v6095_v48 = vpop.f32.mrb[40].mxu1 }
 0x153   : > { %v5936_v4 = vpop.f32.mrb[41].mxu0  ;;  %v6096_v38 = vpop.f32.mrb[41].mxu1 }
 0x154   : > { %v8599_v15 = vadd.f32 %v5936_v4, %v5935_v27  ;;  %v5938_v13 = vpop.f32.mrb[42].mxu0  ;;  %v8611_v0 = vadd.f32 %v6096_v38, %v6095_v48  ;;  %v6098_v37 = vpop.f32.mrb[42].mxu1  ;;  %v7559_v4 = vld [vmem:[%s9840_s3 + $0x90] sm:$0xff]   ;;  %v8654_v38 = vld [vmem:[%s9839_s2] ss:$0 sm:$0xff] }
 0x155   : > { %v5939_v31 = vpop.f32.mrb[43].mxu0  ;;  %v6099_v22 = vpop.f32.mrb[43].mxu1  ;;  %6847 = vmatprep.subr.bf16.mxu1 %v7559_v4 }
 0x156   : > { %v8601_v36 = vadd.f32 %v5939_v31, %v5938_v13  ;;  %v8613_v9 = vadd.f32 %v6099_v22, %v6098_v37  ;;  %v7560_v13 = vld [vmem:[%s9840_s3 + $0x20] sm:$0xff]   ;;  %v2114_v37 = vld [vmem:[#allocation2 + $0x158] sm:$0xff]  ;;  %6848 = vmatpush3.bf16.msra.mxu1 %v7559_v4  ;;  %v7568_v4 = vld [vmem:[%s9840_s3 + $0xa8] sm:$0xff]  }
 0x157   : > { %2422 = vmatmul.mubr.bf16.gmra.mrb[148].mxu0 %v8330_v10  ;;  %v7552_v10 = vld [vmem:[%s9840_s3 + $0x50] sm:$0xff]   ;;  %6849 = vmatprep.subr.bf16.mxu1 %v7562_v1 }
 0x158   : > { %2429 = vmatprep.mubr.bf16.mxu0 %v8519_v55  ;;  %v7554_v55 = vld [vmem:[%s9840_s3 + $0x10] sm:$0xff]   ;;  %6271 = vmatprep.subr.bf16.mxu0 %v7552_v10  ;;  %v7561_v10 = vld [vmem:[%s9840_s3 + $0x68] sm:$0xff]  }
 0x159   : > { %6272 = vmatpush3.bf16.msra.mxu0 %v7554_v55 }
 0x15a   : > { %v5941_v33 = vpop.f32.mrb[44].mxu0  ;;  %v6101_v14 = vpop.f32.mrb[44].mxu1  ;;  %6273 = vmatprep.subr.bf16.mxu0 %v7555_v11  ;;  %6850 = vmatpush3.bf16.msra.mxu1 %v7562_v1  ;;  %v7565_v11 = vld [vmem:[%s9840_s3 + $0xa0] sm:$0xff]  }
 0x15b   : > { %v5942_v58 = vpop.f32.mrb[45].mxu0  ;;  %v6102_v32 = vpop.f32.mrb[45].mxu1  ;;  %6851 = vmatprep.subr.bf16.mxu1 %v7565_v11 }
 0x15c   : > { %v8624_v53 = vadd.f32 %v5942_v58, %v5941_v33  ;;  %v5944_v43 = vpop.f32.mrb[46].mxu0  ;;  %v8638_v52 = vadd.f32 %v6102_v32, %v6101_v14  ;;  %v6104_v20 = vpop.f32.mrb[46].mxu1  ;;  %v7563_v58 = vld [vmem:[%s9840_s3 + $0x28] sm:$0xff]   ;;  %v7564_v14 = vld [vmem:[%s9840_s3 + $0x70] sm:$0xff]  }
 0x15d   : > { %v5945_v19 = vpop.f32.mrb[47].mxu0  ;;  %v6105_v25 = vpop.f32.mrb[47].mxu1  ;;  %6274 = vmatpush3.bf16.msra.mxu0 %v7557_v42 }
 0x15e   : > { %v8626_v56 = vadd.f32 %v5945_v19, %v5944_v43  ;;  %v8640_v6 = vadd.f32 %v6105_v25, %v6104_v20  ;;  %v2117_v20 = vld [vmem:[#allocation2 + $0x170] sm:$0xff]  ;;  %6852 = vmatpush3.bf16.msra.mxu1 %v7565_v11 }
 0x15f   : > { %2430 = vmatmul.mubr.bf16.gmra.mrb[152].mxu0 %v8344_v23  ;;  %v7558_v23 = vld [vmem:[%s9840_s3 + $0x60] sm:$0xff]   ;;  %6853 = vmatprep.subr.bf16.mxu1 %v7568_v4 }
 0x160   : > { %2437 = vmatprep.mubr.bf16.mxu0 %v2111_v44  ;;  %6275 = vmatprep.subr.bf16.mxu0 %v7558_v23  ;;  %v7567_v23 = vld [vmem:[%s9840_s3 + $0x78] sm:$0xff]  }
 0x161   : > { %6276 = vmatpush3.bf16.msra.mxu0 %v7560_v13  ;;  %v2791_v13 = vld [vmem:[#allocation3 + $0x18] sm:$0x1] }
 0x162   : > { %v5947_v27 = vpop.f32.mrb[48].mxu0  ;;  %6277 = vmatprep.subr.bf16.mxu0 %v7561_v10  ;;  %6854 = vmatpush3.bf16.msra.mxu1 %v7568_v4 }
 0x163   : > { %v5948_v30 = vpop.f32.mrb[49].mxu0 }
 0x164   : > { %v5949_v31 = vadd.f32 %v5948_v30, %v5947_v27  ;;  %v5950_v48 = vpop.f32.mrb[50].mxu0  ;;  %v7651_v30 = vld [vmem:[#allocation2 + $0x150] sm:$0xff] }
 0x165   : > { %v5951_v40 = vpop.f32.mrb[51].mxu0  ;;  %6278 = vmatpush3.bf16.msra.mxu0 %v7563_v58 }
 0x166   : > { %v7151_v22 = vadd.f32 %v5949_v31, %v8654_v38  ;;  %v5952_v33 = vadd.f32 %v5951_v40, %v5950_v48  ;;  %6279 = vmatprep.subr.bf16.mxu0 %v7564_v14  ;;  %v2839_v31 = vld [vmem:[#allocation3 + $0x28] sm:$0x80] }
 0x167   : > { %2438 = vmatmul.mubr.bf16.gmra.mrb[156].mxu0 %v2110_v49  ;;  %v7569_v48 = vld [vmem:[%s9840_s3 + $0x38] sm:$0xff]  }
 0x168   : > { %v7159_v55 = vadd.f32 %v5952_v33, %v8654_v38  ;;  %v8668_v43 = vadd.f32 %v7151_v22, %v8579_v8  ;;  %2445 = vmatprep.mubr.bf16.mxu0 %v2114_v37  ;;  %v7566_v8 = vld [vmem:[%s9840_s3 + $0x30] sm:$0xff]   ;;  %v2792_v37 = vsel %vm7845_vm11, 0, %v2791_v13  ;;  %v2840_v22 = vsel %vm7829_vm5, 0, %v2839_v31 }
 0x169   : > { %6280 = vmatpush3.bf16.msra.mxu0 %v7566_v8  ;;  %2793 = vst [vmem:[#allocation3 + $0x18] sm:$0x1] %v2792_v37  ;;  %2841 = vst [vmem:[#allocation3 + $0x28] sm:$0x80] %v2840_v22  ;;  %v7654_v37 = vld [vmem:[#allocation2 + $0x180] sm:$0xff] }
 0x16a   : > { %9852 = vst [vmem:[#allocation4_spill] sm:$0xff] %v8668_v43  ;;  %v8671_v19 = vadd.f32 %v7159_v55, %v8581_v63  ;;  %v5953_v44 = vpop.f32.mrb[52].mxu0  ;;  %6281 = vmatprep.subr.bf16.mxu0 %v7567_v23 }
 0x16b   : > { %v5954_v35 = vpop.f32.mrb[53].mxu0 }
 0x16c   : > { %9853 = vst [vmem:[#allocation5_spill] sm:$0xff] %v8671_v19  ;;  %v5955_v32 = vadd.f32 %v5954_v35, %v5953_v44  ;;  %v5956_v42 = vpop.f32.mrb[54].mxu0  ;;  %v7652_v35 = vld [vmem:[#allocation2 + $0x168] sm:$0xff] }
 0x16d   : > { %v5957_v63 = vpop.f32.mrb[55].mxu0  ;;  %6282 = vmatpush3.bf16.msra.mxu0 %v7569_v48 }
 0x16e   : > { %v7147_v25 = vadd.f32 %v5955_v32, %v8654_v38  ;;  %v5958_v27 = vadd.f32 %v5957_v63, %v5956_v42  ;;  %v7653_v42 = vld [vmem:[#allocation2 + $0x188] sm:$0xff]  ;;  %v2794_v63 = vld [vmem:[#allocation3 + $0x30] sm:$0x1] }
 0x16f   : > { %2446 = vmatmul.mubr.bf16.gmra.mrb[160].mxu0 %v7651_v30 }
 0x170   : > { %v7155_v49 = vadd.f32 %v5958_v27, %v8654_v38  ;;  %v8694_v40 = vadd.f32 %v7147_v25, %v8589_v39  ;;  %2453 = vmatprep.mubr.bf16.mxu0 %v2117_v20  ;;  %v7570_v39 = vld [vmem:[%s9840_s3 + $0xb0] sm:$0xff]   ;;  %v2795_v20 = vsel %vm7845_vm11, 0, %v2794_v63  ;;  %v7063_v63 = vadd.f32 %v8527_v3, %v8654_v38 }
 0x171   : > { %6855 = vmatprep.subr.bf16.mxu1 %v7570_v39  ;;  %v2842_v25 = vld [vmem:[#allocation3 + $0x40] sm:$0x80]  ;;  %2796 = vst [vmem:[#allocation3 + $0x30] sm:$0x1] %v2795_v20  ;;  %v2800_v20 = vld [vmem:[#allocation3 + $0x60] sm:$0x1]  ;;  %v7051_v3 = vadd.f32 %v8534_v21, %v8654_v38 }
 0x172   : > { %9854 = vst [vmem:[#allocation6_spill] sm:$0xff] %v8694_v40  ;;  %v8701_v33 = vadd.f32 %v7155_v49, %v8591_v62  ;;  %v5959_v10 = vpop.f32.mrb[56].mxu0  ;;  %6856 = vmatpush3.bf16.msra.mxu1 %v7570_v39  ;;  %v7571_v62 = vld [vmem:[%s9840_s3 + $0xb8] sm:$0xff]   ;;  %v2843_v4 = vsel %vm7829_vm5, 0, %v2842_v25  ;;  %v2845_v39 = vld [vmem:[#allocation3 + $0x58] sm:$0x80] }
 0x173   : > { %v5960_v1 = vpop.f32.mrb[57].mxu0  ;;  %6857 = vmatprep.subr.bf16.mxu1 %v7571_v62  ;;  %2844 = vst [vmem:[#allocation3 + $0x40] sm:$0x80] %v2843_v4  ;;  %v2848_v25 = vld [vmem:[#allocation3 + $0x70] sm:$0x80] }
 0x174   : > { %9855 = vst [vmem:[#allocation7_spill] sm:$0xff] %v8701_v33  ;;  %v5961_v58 = vadd.f32 %v5960_v1, %v5959_v10  ;;  %v5962_v55 = vpop.f32.mrb[58].mxu0  ;;  %v2797_v10 = vld [vmem:[#allocation3 + $0x48] sm:$0x1] }
 0x175   : > { %v5963_v44 = vpop.f32.mrb[59].mxu0  ;;  %v2798_v1 = vsel %vm7845_vm11, 0, %v2797_v10  ;;  %v2803_v10 = vld [vmem:[#allocation3 + $0x78] sm:$0x1] }
 0x176   : > { %v7167_v14 = vadd.f32 %v5961_v58, %v8654_v38  ;;  %v5964_v11 = vadd.f32 %v5963_v44, %v5962_v55  ;;  %6858 = vmatpush3.bf16.msra.mxu1 %v7571_v62  ;;  %v2846_v58 = vsel %vm7829_vm5, 0, %v2845_v39  ;;  %2799 = vst [vmem:[#allocation3 + $0x48] sm:$0x1] %v2798_v1  ;;  %v2851_v39 = vld [vmem:[#allocation3 + $0x88] sm:$0x80]  ;;  %v2804_v1 = vsel %vm7845_vm11, 0, %v2803_v10 }
 0x177   : > { %2454 = vmatmul.mubr.bf16.gmra.mrb[164].mxu0 %v7652_v35  ;;  %2847 = vst [vmem:[#allocation3 + $0x58] sm:$0x80] %v2846_v58  ;;  %v2852_v21 = vsel %vm7829_vm5, 0, %v2851_v39  ;;  %2805 = vst [vmem:[#allocation3 + $0x78] sm:$0x1] %v2804_v1 }
 0x178   : > { %v7175_v8 = vadd.f32 %v5964_v11, %v8654_v38  ;;  %v8712_v32 = vadd.f32 %v7167_v14, %v8611_v0  ;;  %2461 = vmatprep.mubr.bf16.mxu0 %v7653_v42  ;;  %2853 = vst [vmem:[#allocation3 + $0x88] sm:$0x80] %v2852_v21  ;;  %v2857_v10 = vld [vmem:[#allocation3 + $0xb8] sm:$0x80] }
 0x179   : > { %v2858_v1 = vsel %vm7829_vm5, 0, %v2857_v10 }
 0x17a   : > { %9856 = vst [vmem:[#allocation8_spill] sm:$0xff] %v8712_v32  ;;  %v8717_v27 = vadd.f32 %v7175_v8, %v8613_v9  ;;  %v5965_v23 = vpop.f32.mrb[60].mxu0  ;;  %2859 = vst [vmem:[#allocation3 + $0xb8] sm:$0x80] %v2858_v1 }
 0x17b   : > { %v5966_v30 = vpop.f32.mrb[61].mxu0 }
 0x17c   : > { %9857 = vst [vmem:[#allocation9_spill] sm:$0xff] %v8717_v27  ;;  %v5967_v0 = vadd.f32 %v5966_v30, %v5965_v23  ;;  %v5968_v13 = vpop.f32.mrb[62].mxu0  ;;  %v2801_v23 = vsel %vm7845_vm11, 0, %v2800_v20  ;;  %v2854_v20 = vld [vmem:[#allocation3 + $0xa0] sm:$0x80] }
 0x17d   : > { %v5969_v31 = vpop.f32.mrb[63].mxu0  ;;  %2802 = vst [vmem:[#allocation3 + $0x60] sm:$0x1] %v2801_v23  ;;  %v2855_v23 = vsel %vm7829_vm5, 0, %v2854_v20 }
 0x17e   : > { %v7163_v48 = vadd.f32 %v5967_v0, %v8654_v38  ;;  %v5970_v49 = vadd.f32 %v5969_v31, %v5968_v13  ;;  %2856 = vst [vmem:[#allocation3 + $0xa0] sm:$0x80] %v2855_v23  ;;  %v2860_v23 = vld [vmem:[#allocation3 + $0xd0] sm:$0x80] }
 0x17f   : > { %2462 = vmatmul.mubr.bf16.gmra.mrb[168].mxu0 %v7654_v37  ;;  %v7059_v37 = vadd.f32 %v8537_v34, %v8654_v38  ;;  %v7071_v34 = vadd.f32 %v8541_v16, %v8654_v38 }
 0x180   : > { %v7171_v22 = vadd.f32 %v5970_v49, %v8654_v38  ;;  %v8724_v9 = vadd.f32 %v7163_v48, %v8638_v52  ;;  %2469 = vmatprep.mubr.bf16.mxu0 %v8531_v2  ;;  %v7055_v52 = vadd.f32 %v8524_v5, %v8654_v38  ;;  %v2849_v5 = vsel %vm7829_vm5, 0, %v2848_v25 }
 0x181   : > { %2850 = vst [vmem:[#allocation3 + $0x70] sm:$0x80] %v2849_v5 }
 0x182   : > { %9858 = vst [vmem:[#allocation10_spill] sm:$0xff] %v8724_v9  ;;  %v8732_v55 = vadd.f32 %v7171_v22, %v8640_v6  ;;  %v6011_v44 = vpop.f32.mrb[64].mxu0 }
 0x183   : > { %v6012_v14 = vpop.f32.mrb[65].mxu0 }
 0x184   : > { %9859 = vst [vmem:[#allocation11_spill] sm:$0xff] %v8732_v55  ;;  %v6013_v11 = vadd.f32 %v6012_v14, %v6011_v44  ;;  %v6014_v62 = vpop.f32.mrb[66].mxu0 }
 0x185   : > { %v6015_v35 = vpop.f32.mrb[67].mxu0 }
 0x186   : > { %v8736_v8 = vadd.f32 %v7055_v52, %v6013_v11  ;;  %v6016_v42 = vadd.f32 %v6015_v35, %v6014_v62  ;;  %v7079_v35 = vadd.f32 %v8543_v60, %v8654_v38 }
 0x187   : > { %2470 = vmatmul.mubr.bf16.gmra.mrb[172].mxu0 %v8531_v2 }
 0x188   : > { %v8741_v6 = vadd.f32 %v7063_v63, %v6016_v42  ;;  %3448 = vmatprep.mubr.bf16.mxu0 %v8531_v2  ;;  %v2806_v63 = vld [vmem:[#allocation3 + $0x90] sm:$0x1] }
 0x189   : > { %v2807_v25 = vsel %vm7845_vm11, 0, %v2806_v63 }
 0x18a   : > { %v6017_v4 = vpop.f32.mrb[68].mxu0  ;;  %2808 = vst [vmem:[#allocation3 + $0x90] sm:$0x1] %v2807_v25  ;;  %v2812_v25 = vld [vmem:[#allocation3 + $0xc0] sm:$0x1] }
 0x18b   : > { %v6018_v30 = vpop.f32.mrb[69].mxu0 }
 0x18c   : > { %v6019_v0 = vadd.f32 %v6018_v30, %v6017_v4  ;;  %v6020_v13 = vpop.f32.mrb[70].mxu0  ;;  %v7067_v30 = vadd.f32 %v8547_v17, %v8654_v38 }
 0x18d   : > { %v6021_v31 = vpop.f32.mrb[71].mxu0 }
 0x18e   : > { %v8750_v48 = vadd.f32 %v7051_v3, %v6019_v0  ;;  %v6022_v49 = vadd.f32 %v6021_v31, %v6020_v13  ;;  %v7075_v31 = vadd.f32 %v8549_v46, %v8654_v38 }
 0x18f   : > { %3449 = vmatmul.mubr.bf16.vlgmr.msra.gmra.mrb[176].mxu0 %v8531_v2 }
 0x190   : > { %v8755_v22 = vadd.f32 %v7059_v37, %v6022_v49  ;;  %v2809_v37 = vld [vmem:[#allocation3 + $0xa8] sm:$0x1] }
 0x191   : > { %v2810_v39 = vsel %vm7845_vm11, 0, %v2809_v37 }
 0x192   : > { %v6023_v58 = vpop.f32.mrb[72].mxu0  ;;  %2811 = vst [vmem:[#allocation3 + $0xa8] sm:$0x1] %v2810_v39  ;;  %v7091_v39 = vadd.f32 %v8560_v59, %v8654_v38 }
 0x193   : > { %v6024_v44 = vpop.f32.mrb[73].mxu0 }
 0x194   : > { %v6025_v14 = vadd.f32 %v6024_v44, %v6023_v58  ;;  %v6026_v11 = vpop.f32.mrb[74].mxu0  ;;  %v7087_v44 = vadd.f32 %v8553_v12, %v8654_v38  ;;  %v2813_v12 = vsel %vm7845_vm11, 0, %v2812_v25  ;;  %v7103_v25 = vadd.f32 %v8563_v45, %v8654_v38 }
 0x195   : > { %v6027_v2 = vpop.f32.mrb[75].mxu0  ;;  %2814 = vst [vmem:[#allocation3 + $0xc0] sm:$0x1] %v2813_v12 }
 0x196   : > { %v8763_v52 = vadd.f32 %v7071_v34, %v6025_v14  ;;  %v6028_v62 = vadd.f32 %v6027_v2, %v6026_v11 }
 0x198   : > { %v8767_v42 = vadd.f32 %v7079_v35, %v6028_v62  ;;  %v7095_v62 = vadd.f32 %v8555_v24, %v8654_v38 }
 0x19a   : > { %v6029_v5 = vpop.f32.mrb[76].mxu0 }
 0x19b   : > { %v6030_v16 = vpop.f32.mrb[77].mxu0 }
 0x19c   : > { %v6031_v4 = vadd.f32 %v6030_v16, %v6029_v5  ;;  %v6032_v0 = vpop.f32.mrb[78].mxu0  ;;  %v2861_v16 = vsel %vm7829_vm5, 0, %v2860_v23 }
 0x19d   : > { %v6033_v60 = vpop.f32.mrb[79].mxu0  ;;  %2862 = vst [vmem:[#allocation3 + $0xd0] sm:$0x80] %v2861_v16 }
 0x19e   : > { %v8775_v3 = vadd.f32 %v7067_v30, %v6031_v4  ;;  %v6034_v13 = vadd.f32 %v6033_v60, %v6032_v0  ;;  %v7083_v0 = vadd.f32 %v8558_v29, %v8654_v38 }
 0x1a0   : > { %v8779_v49 = vadd.f32 %v7075_v31, %v6034_v13 }
 0x1a2   : > { %v6035_v21 = vpop.f32.mrb[80].mxu0  ;;  %v8787_v34 = vpop.f32.mrb[0].mxu1 }
 0x1a3   : > { %v6036_v17 = vpop.f32.mrb[81].mxu0  ;;  %v8793_v35 = vpop.f32.mrb[1].mxu1 }
 0x1a4   : > { %v6037_v58 = vadd.f32 %v6036_v17, %v6035_v21  ;;  %v6038_v14 = vpop.f32.mrb[82].mxu0  ;;  %v8795_v63 = vpop.f32.mrb[2].mxu1 }
 0x1a5   : > { %v6039_v46 = vpop.f32.mrb[83].mxu0  ;;  %v8799_v5 = vpop.f32.mrb[3].mxu1 }
 0x1a6   : > { %v8789_v11 = vadd.f32 %v7087_v44, %v6037_v58  ;;  %v6040_v2 = vadd.f32 %v6039_v46, %v6038_v14  ;;  %v2815_v58 = vld [vmem:[#allocation3 + $0xd8] sm:$0x1]  ;;  %v2863_v44 = vld [vmem:[#allocation3 + $0xe8] sm:$0x80] }
 0x1a7   : > { %v2816_v29 = vsel %vm7845_vm11, 0, %v2815_v58  ;;  %v2864_v46 = vsel %vm7829_vm5, 0, %v2863_v44 }
 0x1a8   : > { %v8797_v20 = vadd.f32 %v7095_v62, %v6040_v2  ;;  %2817 = vst [vmem:[#allocation3 + $0xd8] sm:$0x1] %v2816_v29  ;;  %2865 = vst [vmem:[#allocation3 + $0xe8] sm:$0x80] %v2864_v46 }
 0x1aa   : > { %v6041_v4 = vpop.f32.mrb[84].mxu0  ;;  %v8807_v31 = vpop.f32.mrb[4].mxu1 }
 0x1ab   : > { %v6042_v24 = vpop.f32.mrb[85].mxu0  ;;  %v8813_v1 = vpop.f32.mrb[5].mxu1 }
 0x1ac   : > { %v6043_v30 = vadd.f32 %v6042_v24, %v6041_v4  ;;  %v6044_v60 = vpop.f32.mrb[86].mxu0  ;;  %v8815_v21 = vpop.f32.mrb[6].mxu1 }
 0x1ad   : > { %v6045_v13 = vpop.f32.mrb[87].mxu0  ;;  %v8819_v14 = vpop.f32.mrb[7].mxu1 }
 0x1ae   : > { %v8809_v37 = vadd.f32 %v7083_v0, %v6043_v30  ;;  %v6046_v10 = vadd.f32 %v6045_v13, %v6044_v60  ;;  %v7111_v30 = vadd.f32 %v8565_v26, %v8654_v38 }
 0x1b0   : > { %v8817_v17 = vadd.f32 %v7091_v39, %v6046_v10  ;;  %v2818_v10 = vld [vmem:[#allocation3 + $0xf0] sm:$0x1]  ;;  %v2866_v39 = vld [vmem:[#allocation3 + $0x100] sm:$0x80] }
 0x1b1   : > { %v2819_v45 = vsel %vm7845_vm11, 0, %v2818_v10  ;;  %v2867_v44 = vsel %vm7829_vm5, 0, %v2866_v39 }
 0x1b2   : > { %v6047_v2 = vpop.f32.mrb[88].mxu0  ;;  %v8827_v16 = vpop.f32.mrb[8].mxu1  ;;  %2820 = vst [vmem:[#allocation3 + $0xf0] sm:$0x1] %v2819_v45  ;;  %2868 = vst [vmem:[#allocation3 + $0x100] sm:$0x80] %v2867_v44 }
 0x1b3   : > { %v6048_v59 = vpop.f32.mrb[89].mxu0  ;;  %v8833_v0 = vpop.f32.mrb[9].mxu1  ;;  %v2821_v45 = vld [vmem:[#allocation3 + $0x108] sm:$0x1]  ;;  %v2869_v44 = vld [vmem:[#allocation3 + $0x118] sm:$0x80] }
 0x1b4   : > { %v6049_v62 = vadd.f32 %v6048_v59, %v6047_v2  ;;  %v6050_v23 = vpop.f32.mrb[90].mxu0  ;;  %v8835_v60 = vpop.f32.mrb[10].mxu1  ;;  %v7099_v2 = vadd.f32 %v8568_v54, %v8654_v38  ;;  %v2822_v54 = vsel %vm7845_vm11, 0, %v2821_v45  ;;  %v7127_v45 = vadd.f32 %v8575_v51, %v8654_v38 }
 0x1b5   : > { %v6051_v12 = vpop.f32.mrb[91].mxu0  ;;  %v8839_v58 = vpop.f32.mrb[11].mxu1  ;;  %2823 = vst [vmem:[#allocation3 + $0x108] sm:$0x1] %v2822_v54 }
 0x1b6   : > { %v8829_v4 = vadd.f32 %v7103_v25, %v6049_v62  ;;  %v6052_v24 = vadd.f32 %v6051_v12, %v6050_v23 }
 0x1b8   : > { %v8837_v13 = vadd.f32 %v7111_v30, %v6052_v24  ;;  %v7107_v24 = vadd.f32 %v8570_v47, %v8654_v38 }
 0x1ba   : > { %v6053_v29 = vpop.f32.mrb[92].mxu0  ;;  %v8847_v25 = vpop.f32.mrb[12].mxu1 }
 0x1bb   : > { %v6054_v26 = vpop.f32.mrb[93].mxu0  ;;  %v8853_v30 = vpop.f32.mrb[13].mxu1 }
 0x1bc   : > { %v6055_v46 = vadd.f32 %v6054_v26, %v6053_v29  ;;  %v6056_v59 = vpop.f32.mrb[94].mxu0  ;;  %v8855_v10 = vpop.f32.mrb[14].mxu1  ;;  %v2870_v26 = vsel %vm7829_vm5, 0, %v2869_v44 }
 0x1bd   : > { %v6057_v62 = vpop.f32.mrb[95].mxu0  ;;  %v8859_v29 = vpop.f32.mrb[15].mxu1  ;;  %2871 = vst [vmem:[#allocation3 + $0x118] sm:$0x80] %v2870_v26  ;;  %v2824_v26 = vld [vmem:[#allocation3 + $0x120] sm:$0x1] }
 0x1be   : > { %v8849_v23 = vadd.f32 %v7099_v2, %v6055_v46  ;;  %v6058_v12 = vadd.f32 %v6057_v62, %v6056_v59  ;;  %v7119_v59 = vadd.f32 %v8573_v61, %v8654_v38  ;;  %v8882_v61 = vld [vmem:[%s9840_s3 + $0x140] sm:$0xff]  }
 0x1bf   : > { %6891 = vmatprep.subr.bf16.mxu1 %v8882_v61 }
 0x1c0   : > { %v8857_v39 = vadd.f32 %v7107_v24, %v6058_v12 }
 0x1c2   : > { %v6059_v46 = vpop.f32.mrb[96].mxu0  ;;  %v8867_v24 = vpop.f32.mrb[16].mxu1 }
 0x1c3   : > { %v6060_v47 = vpop.f32.mrb[97].mxu0  ;;  %v8873_v27 = vpop.f32.mrb[17].mxu1 }
 0x1c4   : > { %v6061_v2 = vadd.f32 %v6060_v47, %v6059_v46  ;;  %v6062_v62 = vpop.f32.mrb[98].mxu0  ;;  %v8875_v44 = vpop.f32.mrb[18].mxu1  ;;  %v2872_v46 = vld [vmem:[#allocation3 + $0x130] sm:$0x80] }
 0x1c5   : > { %v6063_v12 = vpop.f32.mrb[99].mxu0  ;;  %v8884_v47 = vpop.f32.mrb[19].mxu1  ;;  %v2873_v51 = vsel %vm7829_vm5, 0, %v2872_v46  ;;  %v7123_v46 = vadd.f32 %v8585_v18, %v8654_v38  ;;  %v7576_v18 = vld [vmem:[%s9840_s3 + $0x100] sm:$0xff]  }
 0x1c6   : > { %v8869_v55 = vadd.f32 %v7119_v59, %v6061_v2  ;;  %v6064_v9 = vadd.f32 %v6063_v12, %v6062_v62  ;;  %v2825_v2 = vsel %vm7845_vm11, 0, %v2824_v26  ;;  %2874 = vst [vmem:[#allocation3 + $0x130] sm:$0x80] %v2873_v51  ;;  %v7115_v12 = vadd.f32 %v8583_v57, %v8654_v38  ;;  %v2827_v51 = vld [vmem:[#allocation3 + $0x138] sm:$0x1]  ;;  %6403 = vmatprep.subr.bf16.mxu0 %v7576_v18 }
 0x1c7   : > { %2826 = vst [vmem:[#allocation3 + $0x120] sm:$0x1] %v2825_v2  ;;  %v2828_v57 = vsel %vm7845_vm11, 0, %v2827_v51 }
 0x1c8   : > { %v8877_v54 = vadd.f32 %v7127_v45, %v6064_v9  ;;  %2829 = vst [vmem:[#allocation3 + $0x138] sm:$0x1] %v2828_v57 }
 0x1ca   : > { %v6065_v59 = vpop.f32.mrb[100].mxu0  ;;  %v8893_v33 = vpop.f32.mrb[20].mxu1 }
 0x1cb   : > { %v6066_v9 = vpop.f32.mrb[101].mxu0  ;;  %9860 = vst [vmem:[#allocation12_spill] sm:$0xff] %v8893_v33  ;;  %v8899_v19 = vpop.f32.mrb[21].mxu1  ;;  %v7143_v33 = vadd.f32 %v8601_v36, %v8654_v38 }
 0x1cc   : > { %v6067_v62 = vadd.f32 %v6066_v9, %v6065_v59  ;;  %v6068_v45 = vpop.f32.mrb[102].mxu0  ;;  %v8901_v43 = vpop.f32.mrb[22].mxu1  ;;  %v2875_v59 = vld [vmem:[#allocation3 + $0x148] sm:$0x80] }
 0x1cd   : > { %v6069_v32 = vpop.f32.mrb[103].mxu0  ;;  %9861 = vst [vmem:[#allocation13_spill] sm:$0xff] %v8901_v43  ;;  %v8905_v9 = vpop.f32.mrb[23].mxu1 }
 0x1ce   : > { %v8895_v40 = vadd.f32 %v7115_v12, %v6067_v62  ;;  %v6070_v26 = vadd.f32 %v6069_v32, %v6068_v45  ;;  %9862 = vst [vmem:[#allocation14_spill] sm:$0xff] %v8905_v9  ;;  %v2876_v62 = vsel %vm7829_vm5, 0, %v2875_v59  ;;  %v7578_v45 = vld [vmem:[%s9840_s3 + $0xc0] sm:$0xff]   ;;  %v7579_v9 = vld [vmem:[%s9840_s3 + $0x108] sm:$0xff]  }
 0x1cf   : > { %2877 = vst [vmem:[#allocation3 + $0x148] sm:$0x80] %v2876_v62  ;;  %6404 = vmatpush3.bf16.msra.mxu0 %v7578_v45  ;;  %v2830_v45 = vld [vmem:[#allocation3 + $0x150] sm:$0x1] }
 0x1d0   : > { %v8903_v2 = vadd.f32 %v7123_v46, %v6070_v26  ;;  %v7135_v46 = vadd.f32 %v8599_v15, %v8654_v38  ;;  %v7580_v15 = vld [vmem:[%s9840_s3 + $0xc8] sm:$0xff]   ;;  %6405 = vmatprep.subr.bf16.mxu0 %v7579_v9  ;;  %v2831_v36 = vsel %vm7845_vm11, 0, %v2830_v45  ;;  %v7583_v9 = vld [vmem:[%s9840_s3 + $0xd0] sm:$0xff]   ;;  %v7131_v45 = vadd.f32 %v8624_v53, %v8654_v38  ;;  %v7585_v53 = vld [vmem:[%s9840_s3 + $0xd8] sm:$0xff]  }
 0x1d1   : > { %2832 = vst [vmem:[#allocation3 + $0x150] sm:$0x1] %v2831_v36 }
 0x1d2   : > { %v6071_v32 = vpop.f32.mrb[104].mxu0  ;;  %v8919_v59 = vpop.f32.mrb[24].mxu1 }
 0x1d3   : > { %v6072_v12 = vpop.f32.mrb[105].mxu0  ;;  %9863 = vst [vmem:[#allocation15_spill] sm:$0xff] %v8919_v59  ;;  %6406 = vmatpush3.bf16.msra.mxu0 %v7580_v15 }
 0x1d4   : > { %v6073_v26 = vadd.f32 %v6072_v12, %v6071_v32  ;;  %v6074_v51 = vpop.f32.mrb[106].mxu0  ;;  %v8928_v32 = vpop.f32.mrb[25].mxu1 }
 0x1d5   : > { %v6075_v43 = vpop.f32.mrb[107].mxu0  ;;  %9864 = vst [vmem:[#allocation16_spill] sm:$0xff] %v8928_v32  ;;  %v8933_v18 = vpop.f32.mrb[26].mxu1  ;;  %v7584_v32 = vld [vmem:[%s9840_s3 + $0x118] sm:$0xff]  }
 0x1d6   : > { %v8921_v57 = vadd.f32 %v7135_v46, %v6073_v26  ;;  %v6076_v62 = vadd.f32 %v6075_v43, %v6074_v51  ;;  %9865 = vst [vmem:[#allocation17_spill] sm:$0xff] %v8933_v18  ;;  %v2878_v26 = vld [vmem:[#allocation3 + $0x160] sm:$0x80]  ;;  %v8937_v43 = vpop.f32.mrb[27].mxu1 }
 0x1d7   : > { %9866 = vst [vmem:[#allocation18_spill] sm:$0xff] %v8937_v43  ;;  %v2879_v46 = vsel %vm7829_vm5, 0, %v2878_v26  ;;  %v7139_v43 = vadd.f32 %v8626_v56, %v8654_v38 }
 0x1d8   : > { %v8935_v12 = vadd.f32 %v7143_v33, %v6076_v62  ;;  %2880 = vst [vmem:[#allocation3 + $0x160] sm:$0x80] %v2879_v46  ;;  %v7581_v33 = vld [vmem:[%s9840_s3 + $0x110] sm:$0xff]  }
 0x1d9   : > { %6407 = vmatprep.subr.bf16.mxu0 %v7581_v33 }
 0x1da   : > { %v6077_v51 = vpop.f32.mrb[108].mxu0  ;;  %6408 = vmatpush3.bf16.msra.mxu0 %v7583_v9  ;;  %v8951_v15 = vpop.f32.mrb[28].mxu1  ;;  %v2881_v9 = vld [vmem:[#allocation3 + $0x178] sm:$0x80] }
 0x1db   : > { %v6078_v62 = vpop.f32.mrb[109].mxu0  ;;  %9867 = vst [vmem:[#allocation19_spill] sm:$0xff] %v8951_v15  ;;  %6409 = vmatprep.subr.bf16.mxu0 %v7584_v32  ;;  %v2882_v38 = vsel %vm7829_vm5, 0, %v2881_v9  ;;  %v7588_v32 = vld [vmem:[%s9840_s3 + $0xe0] sm:$0xff]  }
 0x1dc   : > { %v6079_v18 = vadd.f32 %v6078_v62, %v6077_v51  ;;  %v6080_v59 = vpop.f32.mrb[110].mxu0  ;;  %v8960_v51 = vpop.f32.mrb[29].mxu1  ;;  %2883 = vst [vmem:[#allocation3 + $0x178] sm:$0x80] %v2882_v38  ;;  %v7590_v38 = vld [vmem:[%s9840_s3 + $0xe8] sm:$0xff]  }
 0x1dd   : > { %v6081_v26 = vpop.f32.mrb[111].mxu0  ;;  %9868 = vst [vmem:[#allocation20_spill] sm:$0xff] %v8960_v51  ;;  %v8965_v33 = vpop.f32.mrb[30].mxu1 }
 0x1de   : > { %v8953_v36 = vadd.f32 %v7131_v45, %v6079_v18  ;;  %v6082_v46 = vadd.f32 %v6081_v26, %v6080_v59  ;;  %9869 = vst [vmem:[#allocation21_spill] sm:$0xff] %v8965_v33  ;;  %v2833_v18 = vld [vmem:[#allocation3 + $0x168] sm:$0x1]  ;;  %v8969_v59 = vpop.f32.mrb[31].mxu1  ;;  %6410 = vmatpush3.bf16.msra.mxu0 %v7585_v53 }
 0x1df   : > { %9870 = vst [vmem:[#allocation22_spill] sm:$0xff] %v8969_v59  ;;  %v2834_v56 = vsel %vm7845_vm11, 0, %v2833_v18 }
 0x1e0   : > { %v8967_v62 = vadd.f32 %v7139_v43, %v6082_v46  ;;  %2835 = vst [vmem:[#allocation3 + $0x168] sm:$0x1] %v2834_v56  ;;  %v7586_v43 = vld [vmem:[%s9840_s3 + $0x120] sm:$0xff]   ;;  %v7589_v56 = vld [vmem:[%s9840_s3 + $0x128] sm:$0xff]  }
 0x1e1   : > { %6411 = vmatprep.subr.bf16.mxu0 %v7586_v43 }
 0x1e2   : > { %v6147_v45 = vpop.f32.mrb[112].mxu0  ;;  %6412 = vmatpush3.bf16.msra.mxu0 %v7588_v32 }
 0x1e3   : > { %v6148_v26 = vpop.f32.mrb[113].mxu0  ;;  %6413 = vmatprep.subr.bf16.mxu0 %v7589_v56 }
 0x1e4   : > { %v6149_v46 = vadd.f32 %v6148_v26, %v6147_v45  ;;  %v6150_v33 = vpop.f32.mrb[114].mxu0  ;;  %v2836_v45 = vld [vmem:[#allocation3 + $0x180] sm:$0x1]  ;;  %v2884_v26 = vld [vmem:[#allocation3 + $0x190] sm:$0x80] }
 0x1e5   : > { %v6151_v18 = vpop.f32.mrb[115].mxu0  ;;  %v2837_v43 = vsel %vm7845_vm11, 0, %v2836_v45  ;;  %v7594_v45 = vld [vmem:[%s9840_s3 + $0x138] sm:$0xff]  }
 0x1e6   : > { %v7057_v9 = vadd.f32 %v8736_v8, %v6149_v46  ;;  %v6152_v53 = vadd.f32 %v6151_v18, %v6150_v33  ;;  %v2885_v8 = vsel %vm7829_vm5, 0, %v2884_v26  ;;  %6414 = vmatpush3.bf16.msra.mxu0 %v7590_v38  ;;  %2838 = vst [vmem:[#allocation3 + $0x180] sm:$0x1] %v2837_v43  ;;  %v7595_v43 = vld [vmem:[%s9840_s3 + $0xf8] sm:$0xff]  }
 0x1e7   : > { %2886 = vst [vmem:[#allocation3 + $0x190] sm:$0x80] %v2885_v8 }
 0x1e8   : > { %v7058_v15 = vadd.f32 %v7057_v9, %v8793_v35  ;;  %v7065_v59 = vadd.f32 %v8741_v6, %v6152_v53  ;;  %v7591_v6 = vld [vmem:[%s9840_s3 + $0x130] sm:$0xff]  }
 0x1e9   : > { %6415 = vmatprep.subr.bf16.mxu0 %v7591_v6 }
 0x1ea   : > { %v2703_v33 = vmul.f32 0.2, %v7058_v15  ;;  %v7066_v32 = vadd.f32 %v7065_v59, %v8799_v5  ;;  %v6153_v46 = vpop.f32.mrb[116].mxu0  ;;  %vm2671_vm3 = vcmp.gt.f32.partialorder %v7058_v15, 0.0  ;;  %6416 = vmatpush3.bf16.msra.mxu0 %v7593_v41 }
 0x1eb   : > { %v6154_v35 = vpop.f32.mrb[117].mxu0  ;;  %6417 = vmatprep.subr.bf16.mxu0 %v7594_v45 }
 0x1ec   : > { %vm2672_vm11 = vcmp.gt.f32.partialorder %v7066_v32, 0.0  ;;  %v2704_v28 = vmul.f32 0.2, %v7066_v32  ;;  %v6155_v18 = vadd.f32 %v6154_v35, %v6153_v46  ;;  %v6156_v9 = vpop.f32.mrb[118].mxu0  ;;  %v2735_v5 = vsel %vm2671_vm3, %v7058_v15, %v2703_v33 }
 0x1ed   : > { %v6157_v53 = vpop.f32.mrb[119].mxu0 }
 0x1ee   : > { %v2736_v59 = vsel %vm2672_vm11, %v7066_v32, %v2704_v28  ;;  %v7053_v56 = vadd.f32 %v8750_v48, %v6155_v18  ;;  %v6158_v38 = vadd.f32 %v6157_v53, %v6156_v9  ;;  %6418 = vmatpush3.bf16.msra.mxu0 %v7595_v43  ;;  %v3015_v18 = vld [vmem:[#allocation3 + $0x18] sm:$0xff]  ;;  %v3127_v9 = vld [vmem:[#allocation3 + $0x28] sm:$0xff] }
 0x1ef   : > { %v2767_v26 = vpack.c.bf16 %v2736_v59, %v2735_v5 }
 0x1f0   : > { %v7054_v8 = vadd.f32 %v7053_v56, %v8787_v34  ;;  %v7061_v46 = vadd.f32 %v8755_v22, %v6158_v38 }
 0x1f1   : > { %v2888_v6 = vshrl.u32 %v2767_v26, 16  ;;  %v2891_v15 = vshll.u32 %v2767_v26, 16  ;;  %3063 = vst [vmem:[#allocation3 + $0x20] sm:$0xff] %v2767_v26  ;;  %3456 = vmatprep.mubr.bf16.mxu0 %v2767_v26 }
 0x1f2   : > { %v2705_v48 = vmul.f32 0.2, %v7054_v8  ;;  %v7062_v33 = vadd.f32 %v7061_v46, %v8795_v63  ;;  %v6159_v32 = vpop.f32.mrb[120].mxu0  ;;  %vm2673_vm5 = vcmp.gt.f32.partialorder %v7054_v8, 0.0  ;;  %v7573_v63 = vld [vmem:[%s9840_s3 + $0x148] sm:$0xff]  }
 0x1f3   : > { %v2890_v35 = vrot.slane %v2888_v6, 7  ;;  %v3079_v41 = vrot.slane %v2891_v15, 1  ;;  %v6160_v28 = vpop.f32.mrb[121].mxu0 }
 0x1f4   : > { %vm2674_vm4 = vcmp.gt.f32.partialorder %v7062_v33, 0.0  ;;  %v2706_v34 = vmul.f32 0.2, %v7062_v33  ;;  %v6161_v53 = vadd.f32 %v6160_v28, %v6159_v32  ;;  %v6162_v22 = vpop.f32.mrb[122].mxu0  ;;  %v2737_v38 = vsel %vm2673_vm5, %v7054_v8, %v2705_v48 }
 0x1f5   : > { %v2893_v5 = vor.u32 %v2891_v15, %v2890_v35  ;;  %v3080_v59 = vor.u32 %v3079_v41, %v2888_v6  ;;  %v6163_v56 = vpop.f32.mrb[123].mxu0  ;;  %v7574_v41 = vld [vmem:[%s9840_s3 + $0x150] sm:$0xff]  }
 0x1f6   : > { %v2738_v45 = vsel %vm2674_vm4, %v7062_v33, %v2706_v34  ;;  %v7073_v26 = vadd.f32 %v8763_v52, %v6161_v53  ;;  %v6164_v43 = vadd.f32 %v6163_v56, %v6162_v22 }
 0x1f7   : > { %v3016_v46 = vsel %vm7883_vm1, %v2893_v5, %v3015_v18  ;;  %v3128_v51 = vsel %vm7856_vm13, %v3080_v59, %v3127_v9  ;;  %v2768_v32 = vpack.c.bf16 %v2738_v45, %v2737_v38  ;;  %v3130_v18 = vld [vmem:[#allocation3 + $0x40] sm:$0xff]  ;;  %v7575_v45 = vld [vmem:[%s9840_s3 + $0x158] sm:$0xff]  }
 0x1f8   : > { %3017 = vst [vmem:[#allocation3 + $0x18] sm:$0xff] %v3016_v46  ;;  %3129 = vst [vmem:[#allocation3 + $0x28] sm:$0xff] %v3128_v51  ;;  %v7074_v6 = vadd.f32 %v7073_v26, %v8813_v1  ;;  %v7081_v8 = vadd.f32 %v8767_v42, %v6164_v43  ;;  %3457 = vmatmul.mubr.bf16.gmra.mrb[180].mxu0 %v3016_v46  ;;  %6860 = vmatmul.mubr.bf16.vlgmr.msra.gmra.mrb[48].mxu1 %v3128_v51  ;;  %v3018_v51 = vld [vmem:[#allocation3 + $0x30] sm:$0xff] }
 0x1f9   : > { %v2895_v52 = vshrl.u32 %v2768_v32, 16  ;;  %v2898_v15 = vshll.u32 %v2768_v32, 16  ;;  %3064 = vst [vmem:[#allocation3 + $0x38] sm:$0xff] %v2768_v32  ;;  %3464 = vmatprep.mubr.bf16.mxu0 %v2768_v32  ;;  %6892 = vmatpush3.bf16.msra.mxu1 %v8882_v61 }
 0x1fa   : > { %v2707_v48 = vmul.f32 0.2, %v7074_v6  ;;  %v7082_v33 = vadd.f32 %v7081_v8, %v8819_v14  ;;  %v6165_v35 = vpop.f32.mrb[124].mxu0  ;;  %6893 = vmatprep.subr.bf16.mxu1 %v7573_v63  ;;  %vm2675_vm6 = vcmp.gt.f32.partialorder %v7074_v6, 0.0 }
 0x1fb   : > { %v2897_v1 = vrot.slane %v2895_v52, 7  ;;  %v3081_v28 = vrot.slane %v2898_v15, 1  ;;  %v6166_v42 = vpop.f32.mrb[125].mxu0 }
 0x1fc   : > { %vm2676_vm7 = vcmp.gt.f32.partialorder %v7082_v33, 0.0  ;;  %v2708_v9 = vmul.f32 0.2, %v7082_v33  ;;  %v6167_v34 = vadd.f32 %v6166_v42, %v6165_v35  ;;  %v6168_v53 = vpop.f32.mrb[126].mxu0  ;;  %v2739_v14 = vsel %vm2675_vm6, %v7074_v6, %v2707_v48  ;;  %v7577_v48 = vld [vmem:[%s9840_s3 + $0x160] sm:$0xff]   ;;  %v3021_v35 = vld [vmem:[#allocation3 + $0x48] sm:$0xff] }
 0x1fd   : > { %v2900_v61 = vor.u32 %v2898_v15, %v2897_v1  ;;  %v3082_v22 = vor.u32 %v3081_v28, %v2895_v52  ;;  %v6169_v5 = vpop.f32.mrb[127].mxu0  ;;  %6894 = vmatpush3.bf16.msra.mxu1 %v7573_v63  ;;  %v3133_v1 = vld [vmem:[#allocation3 + $0x58] sm:$0xff] }
 0x1fe   : > { %v2740_v59 = vsel %vm2676_vm7, %v7082_v33, %v2708_v9  ;;  %v7069_v56 = vadd.f32 %v8775_v3, %v6167_v34  ;;  %v6170_v38 = vadd.f32 %v6169_v5, %v6168_v53  ;;  %6895 = vmatprep.subr.bf16.mxu1 %v7574_v41 }
 0x1ff   : > { %v3019_v26 = vsel %vm7883_vm1, %v2900_v61, %v3018_v51  ;;  %v3131_v43 = vsel %vm7856_vm13, %v3082_v22, %v3130_v18  ;;  %v2769_v46 = vpack.c.bf16 %v2740_v59, %v2739_v14  ;;  %v7582_v22 = vld [vmem:[%s9840_s3 + $0x168] sm:$0xff]  }
 0x200   : > { %3020 = vst [vmem:[#allocation3 + $0x30] sm:$0xff] %v3019_v26  ;;  %3132 = vst [vmem:[#allocation3 + $0x40] sm:$0xff] %v3131_v43  ;;  %v7070_v63 = vadd.f32 %v7069_v56, %v8807_v31  ;;  %v7077_v32 = vadd.f32 %v8779_v49, %v6170_v38  ;;  %3465 = vmatmul.mubr.bf16.gmra.mrb[184].mxu0 %v3019_v26  ;;  %6863 = vmatprep.mubr.bf16.mxu1 %v3131_v43  ;;  %v9259_v7 = vld [vmem:[#allocation3 + $0x38] sm:$0xff] }
 0x201   : > { %v2902_v3 = vshrl.u32 %v2769_v46, 16  ;;  %v2905_v6 = vshll.u32 %v2769_v46, 16  ;;  %3065 = vst [vmem:[#allocation3 + $0x50] sm:$0xff] %v2769_v46  ;;  %3472 = vmatprep.mubr.bf16.mxu0 %v2769_v46  ;;  %6896 = vmatpush3.bf16.msra.mxu1 %v7574_v41 }
 0x202   : > { %v2709_v8 = vmul.f32 0.2, %v7070_v63  ;;  %v7078_v52 = vadd.f32 %v7077_v32, %v8815_v21  ;;  %v6171_v15 = vpop.f32.mrb[128].mxu0  ;;  %6897 = vmatprep.subr.bf16.mxu1 %v7575_v45  ;;  %vm2677_vm8 = vcmp.gt.f32.partialorder %v7070_v63, 0.0 }
 0x203   : > { %v2904_v33 = vrot.slane %v2902_v3, 7  ;;  %v3083_v31 = vrot.slane %v2905_v6, 1  ;;  %v6172_v49 = vpop.f32.mrb[129].mxu0 }
 0x204   : > { %vm2678_vm9 = vcmp.gt.f32.partialorder %v7078_v52, 0.0  ;;  %v2710_v28 = vmul.f32 0.2, %v7078_v52  ;;  %v6173_v42 = vadd.f32 %v6172_v49, %v6171_v15  ;;  %v6174_v51 = vpop.f32.mrb[130].mxu0  ;;  %v2741_v21 = vsel %vm2677_vm8, %v7070_v63, %v2709_v8  ;;  %v7587_v63 = vld [vmem:[%s9840_s3 + $0x170] sm:$0xff]  }
 0x205   : > { %v2907_v41 = vor.u32 %v2905_v6, %v2904_v33  ;;  %v3084_v18 = vor.u32 %v3083_v31, %v2902_v3  ;;  %v6175_v9 = vpop.f32.mrb[131].mxu0  ;;  %6898 = vmatpush3.bf16.msra.mxu1 %v7575_v45  ;;  %v3024_v3 = vld [vmem:[#allocation3 + $0x60] sm:$0xff]  ;;  %v3136_v6 = vld [vmem:[#allocation3 + $0x70] sm:$0xff] }
 0x206   : > { %v2742_v34 = vsel %vm2678_vm9, %v7078_v52, %v2710_v28  ;;  %v7089_v53 = vadd.f32 %v8789_v11, %v6173_v42  ;;  %v6176_v61 = vadd.f32 %v6175_v9, %v6174_v51  ;;  %6899 = vmatprep.subr.bf16.mxu1 %v7577_v48  ;;  %v7592_v28 = vld [vmem:[%s9840_s3 + $0x178] sm:$0xff]  }
 0x207   : > { %v3022_v5 = vsel %vm7883_vm1, %v2907_v41, %v3021_v35  ;;  %v3134_v14 = vsel %vm7856_vm13, %v3084_v18, %v3133_v1  ;;  %v2770_v59 = vpack.c.bf16 %v2742_v34, %v2741_v21 }
 0x208   : > { %3023 = vst [vmem:[#allocation3 + $0x48] sm:$0xff] %v3022_v5  ;;  %3135 = vst [vmem:[#allocation3 + $0x58] sm:$0xff] %v3134_v14  ;;  %v7090_v56 = vadd.f32 %v7089_v53, %v8833_v0  ;;  %v7097_v38 = vadd.f32 %v8797_v20, %v6176_v61  ;;  %3473 = vmatmul.mubr.bf16.gmra.mrb[188].mxu0 %v3022_v5  ;;  %6864 = vmatmul.mubr.bf16.gmra.mrb[52].mxu1 %v3134_v14  ;;  %v3027_v14 = vld [vmem:[#allocation3 + $0x78] sm:$0xff] }
 0x209   : > { %v2909_v11 = vshrl.u32 %v2770_v59, 16  ;;  %v2912_v45 = vshll.u32 %v2770_v59, 16  ;;  %3066 = vst [vmem:[#allocation3 + $0x68] sm:$0xff] %v2770_v59  ;;  %3480 = vmatprep.mubr.bf16.mxu0 %v2770_v59  ;;  %6900 = vmatpush3.bf16.msra.mxu1 %v7577_v48  ;;  %v3139_v59 = vld [vmem:[#allocation3 + $0x88] sm:$0xff] }
 0x20a   : > { %v2711_v26 = vmul.f32 0.2, %v7090_v56  ;;  %v7098_v43 = vadd.f32 %v7097_v38, %v8839_v58  ;;  %v6177_v46 = vpop.f32.mrb[132].mxu0  ;;  %6901 = vmatprep.subr.bf16.mxu1 %v7582_v22  ;;  %vm2679_vm10 = vcmp.gt.f32.partialorder %v7090_v56, 0.0 }
 0x20b   : > { %v2911_v32 = vrot.slane %v2909_v11, 7  ;;  %v3085_v0 = vrot.slane %v2912_v45, 1  ;;  %v6178_v20 = vpop.f32.mrb[133].mxu0 }
 0x20c   : > { %vm2680_vm12 = vcmp.gt.f32.partialorder %v7098_v43, 0.0  ;;  %v2712_v8 = vmul.f32 0.2, %v7098_v43  ;;  %v6179_v52 = vadd.f32 %v6178_v20, %v6177_v46  ;;  %v6180_v15 = vpop.f32.mrb[134].mxu0  ;;  %v2743_v58 = vsel %vm2679_vm10, %v7090_v56, %v2711_v26 }
 0x20d   : > { %v2914_v48 = vor.u32 %v2912_v45, %v2911_v32  ;;  %v3086_v33 = vor.u32 %v3085_v0, %v2909_v11  ;;  %v6181_v31 = vpop.f32.mrb[135].mxu0  ;;  %6902 = vmatpush3.bf16.msra.mxu1 %v7582_v22  ;;  %v7596_v22 = vld [vmem:[%s9840_s3 + $0x1c0] sm:$0xff]  }
 0x20e   : > { %v2744_v49 = vsel %vm2680_vm12, %v7098_v43, %v2712_v8  ;;  %v7085_v35 = vadd.f32 %v8809_v37, %v6179_v52  ;;  %v6182_v1 = vadd.f32 %v6181_v31, %v6180_v15  ;;  %6903 = vmatprep.subr.bf16.mxu1 %v7587_v63 }
 0x20f   : > { %v3025_v42 = vsel %vm7883_vm1, %v2914_v48, %v3024_v3  ;;  %v3137_v51 = vsel %vm7856_vm13, %v3086_v33, %v3136_v6  ;;  %v2771_v41 = vpack.c.bf16 %v2744_v49, %v2743_v58 }
 0x210   : > { %3026 = vst [vmem:[#allocation3 + $0x60] sm:$0xff] %v3025_v42  ;;  %3138 = vst [vmem:[#allocation3 + $0x70] sm:$0xff] %v3137_v51  ;;  %v7086_v18 = vadd.f32 %v7085_v35, %v8827_v16  ;;  %v7093_v9 = vadd.f32 %v8817_v17, %v6182_v1  ;;  %3481 = vmatmul.mubr.bf16.gmra.mrb[192].mxu0 %v3025_v42  ;;  %6867 = vmatprep.mubr.bf16.mxu1 %v3137_v51  ;;  %v3030_v35 = vld [vmem:[#allocation3 + $0x90] sm:$0xff]  ;;  %v3142_v1 = vld [vmem:[#allocation3 + $0xa0] sm:$0xff] }
 0x211   : > { %v2916_v37 = vshrl.u32 %v2771_v41, 16  ;;  %v2919_v21 = vshll.u32 %v2771_v41, 16  ;;  %3067 = vst [vmem:[#allocation3 + $0x80] sm:$0xff] %v2771_v41  ;;  %3488 = vmatprep.mubr.bf16.mxu0 %v2771_v41  ;;  %6904 = vmatpush3.bf16.msra.mxu1 %v7587_v63 }
 0x212   : > { %v2713_v34 = vmul.f32 0.2, %v7086_v18  ;;  %v7094_v53 = vadd.f32 %v7093_v9, %v8835_v60  ;;  %v6183_v61 = vpop.f32.mrb[136].mxu0  ;;  %6905 = vmatprep.subr.bf16.mxu1 %v7592_v28  ;;  %vm2681_vm14 = vcmp.gt.f32.partialorder %v7086_v18, 0.0 }
 0x213   : > { %v2918_v5 = vrot.slane %v2916_v37, 7  ;;  %v3087_v16 = vrot.slane %v2919_v21, 1  ;;  %v6184_v17 = vpop.f32.mrb[137].mxu0 }
 0x214   : > { %vm2682_vm15 = vcmp.gt.f32.partialorder %v7094_v53, 0.0  ;;  %v2714_v56 = vmul.f32 0.2, %v7094_v53  ;;  %v6185_v38 = vadd.f32 %v6184_v17, %v6183_v61  ;;  %v6186_v11 = vpop.f32.mrb[138].mxu0  ;;  %v2745_v60 = vsel %vm2681_vm14, %v7086_v18, %v2713_v34 }
 0x215   : > { %v2921_v45 = vor.u32 %v2919_v21, %v2918_v5  ;;  %v3088_v26 = vor.u32 %v3087_v16, %v2916_v37  ;;  %v6187_v43 = vpop.f32.mrb[139].mxu0  ;;  %6906 = vmatpush3.bf16.msra.mxu1 %v7592_v28 }
 0x216   : > { %v2746_v46 = vsel %vm2682_vm15, %v7094_v53, %v2714_v56  ;;  %v7105_v63 = vadd.f32 %v8829_v4, %v6185_v38  ;;  %v6188_v32 = vadd.f32 %v6187_v43, %v6186_v11  ;;  %6539 = vmatprep.subr.bf16.mxu1 %v7596_v22  ;;  %v3033_v11 = vld [vmem:[#allocation3 + $0xa8] sm:$0xff] }
 0x217   : > { %v3028_v0 = vsel %vm7883_vm1, %v2921_v45, %v3027_v14  ;;  %v3140_v20 = vsel %vm7856_vm13, %v3088_v26, %v3139_v59  ;;  %v2772_v3 = vpack.c.bf16 %v2746_v46, %v2745_v60  ;;  %v3145_v45 = vld [vmem:[#allocation3 + $0xb8] sm:$0xff] }
 0x218   : > { %3029 = vst [vmem:[#allocation3 + $0x78] sm:$0xff] %v3028_v0  ;;  %3141 = vst [vmem:[#allocation3 + $0x88] sm:$0xff] %v3140_v20  ;;  %v7106_v6 = vadd.f32 %v7105_v63, %v8853_v30  ;;  %v7113_v8 = vadd.f32 %v8837_v13, %v6188_v32  ;;  %3489 = vmatmul.mubr.bf16.gmra.mrb[196].mxu0 %v3028_v0  ;;  %6868 = vmatmul.mubr.bf16.gmra.mrb[56].mxu1 %v3140_v20 }
 0x219   : > { %v2923_v52 = vshrl.u32 %v2772_v3, 16  ;;  %v2926_v15 = vshll.u32 %v2772_v3, 16  ;;  %3068 = vst [vmem:[#allocation3 + $0x98] sm:$0xff] %v2772_v3  ;;  %3496 = vmatprep.mubr.bf16.mxu0 %v2772_v3 }
 0x21a   : > { %v2715_v4 = vmul.f32 0.2, %v7106_v6  ;;  %v7114_v48 = vadd.f32 %v7113_v8, %v8859_v29  ;;  %v6189_v33 = vpop.f32.mrb[140].mxu0  ;;  %vm2683_vm0 = vcmp.gt.f32.partialorder %v7106_v6, 0.0 }
 0x21b   : > { %v2925_v31 = vrot.slane %v2923_v52, 7  ;;  %v3089_v58 = vrot.slane %v2926_v15, 1  ;;  %v6190_v49 = vpop.f32.mrb[141].mxu0 }
 0x21c   : > { %vm2684_vm2 = vcmp.gt.f32.partialorder %v7114_v48, 0.0  ;;  %v2716_v30 = vmul.f32 0.2, %v7114_v48  ;;  %v6191_v28 = vadd.f32 %v6190_v49, %v6189_v33  ;;  %v6192_v13 = vpop.f32.mrb[142].mxu0  ;;  %v2747_v18 = vsel %vm2683_vm0, %v7106_v6, %v2715_v4 }
 0x21d   : > { %v2928_v42 = vor.u32 %v2926_v15, %v2925_v31  ;;  %v3090_v51 = vor.u32 %v3089_v58, %v2923_v52  ;;  %v6193_v41 = vpop.f32.mrb[143].mxu0 }
 0x21e   : > { %v2748_v9 = vsel %vm2684_vm2, %v7114_v48, %v2716_v30  ;;  %v7101_v37 = vadd.f32 %v8849_v23, %v6191_v28  ;;  %v6194_v21 = vadd.f32 %v6193_v41, %v6192_v13 }
 0x21f   : > { %v3031_v29 = vsel %vm7883_vm1, %v2928_v42, %v3030_v35  ;;  %v3143_v34 = vsel %vm7856_vm13, %v3090_v51, %v3142_v1  ;;  %v2773_v53 = vpack.c.bf16 %v2748_v9, %v2747_v18  ;;  %v3036_v35 = vld [vmem:[#allocation3 + $0xc0] sm:$0xff]  ;;  %v3148_v1 = vld [vmem:[#allocation3 + $0xd0] sm:$0xff] }
 0x220   : > { %3032 = vst [vmem:[#allocation3 + $0x90] sm:$0xff] %v3031_v29  ;;  %3144 = vst [vmem:[#allocation3 + $0xa0] sm:$0xff] %v3143_v34  ;;  %v7102_v61 = vadd.f32 %v7101_v37, %v8847_v25  ;;  %v7109_v22 = vadd.f32 %v8857_v39, %v6194_v21  ;;  %3497 = vmatmul.mubr.bf16.gmra.mrb[200].mxu0 %v3031_v29  ;;  %6871 = vmatprep.mubr.bf16.mxu1 %v3143_v34 }
 0x221   : > { %v2930_v5 = vshrl.u32 %v2773_v53, 16  ;;  %v2933_v16 = vshll.u32 %v2773_v53, 16  ;;  %3069 = vst [vmem:[#allocation3 + $0xb0] sm:$0xff] %v2773_v53  ;;  %3504 = vmatprep.mubr.bf16.mxu0 %v2773_v53 }
 0x222   : > { %v2717_v23 = vmul.f32 0.2, %v7102_v61  ;;  %v7110_v17 = vadd.f32 %v7109_v22, %v8855_v10  ;;  %v6195_v14 = vpop.f32.mrb[144].mxu0  ;;  %vm2685_vm3 = vcmp.gt.f32.partialorder %v7102_v61, 0.0 }
 0x223   : > { %v2932_v59 = vrot.slane %v2930_v5, 7  ;;  %v3091_v56 = vrot.slane %v2933_v16, 1  ;;  %v6196_v38 = vpop.f32.mrb[145].mxu0 }
 0x224   : > { %vm2686_vm11 = vcmp.gt.f32.partialorder %v7110_v17, 0.0  ;;  %v2718_v25 = vmul.f32 0.2, %v7110_v17  ;;  %v6197_v26 = vadd.f32 %v6196_v38, %v6195_v14  ;;  %v6198_v39 = vpop.f32.mrb[146].mxu0  ;;  %v2749_v63 = vsel %vm2685_vm3, %v7102_v61, %v2717_v23  ;;  %v3039_v14 = vld [vmem:[#allocation3 + $0xd8] sm:$0xff] }
 0x225   : > { %v2935_v43 = vor.u32 %v2933_v16, %v2932_v59  ;;  %v3092_v60 = vor.u32 %v3091_v56, %v2930_v5  ;;  %v6199_v46 = vpop.f32.mrb[147].mxu0  ;;  %v3151_v59 = vld [vmem:[#allocation3 + $0xe8] sm:$0xff] }
 0x226   : > { %v2750_v32 = vsel %vm2686_vm11, %v7110_v17, %v2718_v25  ;;  %v7121_v0 = vadd.f32 %v8869_v55, %v6197_v26  ;;  %v6200_v20 = vadd.f32 %v6199_v46, %v6198_v39 }
 0x227   : > { %v3034_v10 = vsel %vm7883_vm1, %v2935_v43, %v3033_v11  ;;  %v3146_v3 = vsel %vm7856_vm13, %v3092_v60, %v3145_v45  ;;  %v2774_v6 = vpack.c.bf16 %v2750_v32, %v2749_v63 }
 0x228   : > { %3035 = vst [vmem:[#allocation3 + $0xa8] sm:$0xff] %v3034_v10  ;;  %3147 = vst [vmem:[#allocation3 + $0xb8] sm:$0xff] %v3146_v3  ;;  %v7122_v8 = vadd.f32 %v7121_v0, %v8873_v27  ;;  %v7129_v52 = vadd.f32 %v8877_v54, %v6200_v20  ;;  %3505 = vmatmul.mubr.bf16.gmra.mrb[204].mxu0 %v3034_v10  ;;  %6872 = vmatmul.mubr.bf16.gmra.mrb[60].mxu1 %v3146_v3  ;;  %v9871_v10 = vld [vmem:[#allocation14_spill] sm:$0xff] }
 0x229   : > { %v2937_v15 = vshrl.u32 %v2774_v6, 16  ;;  %v2940_v4 = vshll.u32 %v2774_v6, 16  ;;  %3070 = vst [vmem:[#allocation3 + $0xc8] sm:$0xff] %v2774_v6  ;;  %3512 = vmatprep.mubr.bf16.mxu0 %v2774_v6 }
 0x22a   : > { %v2719_v55 = vmul.f32 0.2, %v7122_v8  ;;  %v7130_v48 = vadd.f32 %v7129_v52, %v8884_v47  ;;  %v6201_v33 = vpop.f32.mrb[148].mxu0  ;;  %vm2687_vm5 = vcmp.gt.f32.partialorder %v7122_v8, 0.0 }
 0x22b   : > { %v2939_v31 = vrot.slane %v2937_v15, 7  ;;  %v3093_v58 = vrot.slane %v2940_v4, 1  ;;  %v6202_v49 = vpop.f32.mrb[149].mxu0 }
 0x22c   : > { %vm2688_vm4 = vcmp.gt.f32.partialorder %v7130_v48, 0.0  ;;  %v2720_v27 = vmul.f32 0.2, %v7130_v48  ;;  %v6203_v30 = vadd.f32 %v6202_v49, %v6201_v33  ;;  %v6204_v54 = vpop.f32.mrb[150].mxu0  ;;  %v2751_v51 = vsel %vm2687_vm5, %v7122_v8, %v2719_v55  ;;  %v3154_v55 = vld [vmem:[#allocation3 + $0x100] sm:$0xff] }
 0x22d   : > { %v2942_v28 = vor.u32 %v2940_v4, %v2939_v31  ;;  %v3094_v13 = vor.u32 %v3093_v58, %v2937_v15  ;;  %v6205_v42 = vpop.f32.mrb[151].mxu0  ;;  %v3042_v4 = vld [vmem:[#allocation3 + $0xf0] sm:$0xff] }
 0x22e   : > { %v2752_v41 = vsel %vm2688_vm4, %v7130_v48, %v2720_v27  ;;  %v7117_v18 = vadd.f32 %v8895_v40, %v6203_v30  ;;  %v6206_v9 = vadd.f32 %v6205_v42, %v6204_v54 }
 0x22f   : > { %v3037_v47 = vsel %vm7883_vm1, %v2942_v28, %v3036_v35  ;;  %v9097_v37 = vsel %vm7856_vm13, %v3094_v13, %v3148_v1  ;;  %v2775_v21 = vpack.c.bf16 %v2752_v41, %v2751_v51  ;;  %v9872_v13 = vld [vmem:[#allocation12_spill] sm:$0xff] }
 0x230   : > { %3038 = vst [vmem:[#allocation3 + $0xc0] sm:$0xff] %v3037_v47  ;;  %3150 = vst [vmem:[#allocation3 + $0xd0] sm:$0xff] %v9097_v37  ;;  %v7118_v29 = vadd.f32 %v7117_v18, %v8867_v24  ;;  %v7125_v34 = vadd.f32 %v8903_v2, %v6206_v9  ;;  %3513 = vmatmul.mubr.bf16.gmra.mrb[208].mxu0 %v3037_v47  ;;  %6875 = vmatprep.mubr.bf16.mxu1 %v9097_v37  ;;  %v9873_v9 = vld [vmem:[#allocation13_spill] sm:$0xff] }
 0x231   : > { %v2944_v40 = vshrl.u32 %v2775_v21, 16  ;;  %v2947_v53 = vshll.u32 %v2775_v21, 16  ;;  %3071 = vst [vmem:[#allocation3 + $0xe0] sm:$0xff] %v2775_v21  ;;  %3520 = vmatprep.mubr.bf16.mxu0 %v2775_v21 }
 0x232   : > { %v2721_v61 = vmul.f32 0.2, %v7118_v29  ;;  %v7126_v22 = vadd.f32 %v7125_v34, %v8875_v44  ;;  %v6207_v5 = vpop.f32.mrb[152].mxu0  ;;  %vm2689_vm6 = vcmp.gt.f32.partialorder %v7118_v29, 0.0 }
 0x233   : > { %v2946_v16 = vrot.slane %v2944_v40, 7  ;;  %v3095_v23 = vrot.slane %v2947_v53, 1  ;;  %v6208_v17 = vpop.f32.mrb[153].mxu0 }
 0x234   : > { %vm2690_vm7 = vcmp.gt.f32.partialorder %v7126_v22, 0.0  ;;  %v2722_v24 = vmul.f32 0.2, %v7126_v22  ;;  %v6209_v2 = vadd.f32 %v6208_v17, %v6207_v5  ;;  %v6210_v56 = vpop.f32.mrb[154].mxu0  ;;  %v2753_v25 = vsel %vm2689_vm6, %v7118_v29, %v2721_v61 }
 0x235   : > { %v2949_v38 = vor.u32 %v2947_v53, %v2946_v16  ;;  %v3096_v11 = vor.u32 %v3095_v23, %v2944_v40  ;;  %v6211_v45 = vpop.f32.mrb[155].mxu0  ;;  %v3157_v53 = vld [vmem:[#allocation3 + $0x118] sm:$0xff] }
 0x236   : > { %v2754_v26 = vsel %vm2690_vm7, %v7126_v22, %v2722_v24  ;;  %v7137_v39 = vadd.f32 %v8921_v57, %v6209_v2  ;;  %v6212_v43 = vadd.f32 %v6211_v45, %v6210_v56  ;;  %v9874_v24 = vld [vmem:[#allocation4_spill] sm:$0xff] }
 0x237   : > { %v3040_v44 = vsel %vm7883_vm1, %v2949_v38, %v3039_v14  ;;  %v9109_v60 = vsel %vm7856_vm13, %v3096_v11, %v3151_v59  ;;  %v2776_v46 = vpack.c.bf16 %v2754_v26, %v2753_v25  ;;  %v9875_v25 = vld [vmem:[#allocation16_spill] sm:$0xff] }
 0x238   : > { %3041 = vst [vmem:[#allocation3 + $0xd8] sm:$0xff] %v3040_v44  ;;  %3153 = vst [vmem:[#allocation3 + $0xe8] sm:$0xff] %v9109_v60  ;;  %v7138_v63 = vadd.f32 %v7137_v39, %v8899_v19  ;;  %v7145_v32 = vadd.f32 %v8935_v12, %v6212_v43  ;;  %3521 = vmatmul.mubr.bf16.gmra.mrb[212].mxu0 %v3040_v44  ;;  %6876 = vmatmul.mubr.bf16.gmra.mrb[64].mxu1 %v9109_v60  ;;  %v9876_v39 = vld [vmem:[#allocation5_spill] sm:$0xff] }
 0x239   : > { %v2951_v57 = vshrl.u32 %v2776_v46, 16  ;;  %v2954_v0 = vshll.u32 %v2776_v46, 16  ;;  %3072 = vst [vmem:[#allocation3 + $0xf8] sm:$0xff] %v2776_v46  ;;  %3528 = vmatprep.mubr.bf16.mxu0 %v2776_v46 }
 0x23a   : > { %v2723_v20 = vmul.f32 0.2, %v7138_v63  ;;  %v7146_v3 = vadd.f32 %v7145_v32, %v9871_v10  ;;  %v6213_v6 = vpop.f32.mrb[156].mxu0  ;;  %vm2691_vm8 = vcmp.gt.f32.partialorder %v7138_v63, 0.0  ;;  %v9877_v32 = vld [vmem:[#allocation18_spill] sm:$0xff] }
 0x23b   : > { %v2953_v8 = vrot.slane %v2951_v57, 7  ;;  %v3097_v52 = vrot.slane %v2954_v0, 1  ;;  %v6214_v15 = vpop.f32.mrb[157].mxu0 }
 0x23c   : > { %vm2692_vm9 = vcmp.gt.f32.partialorder %v7146_v3, 0.0  ;;  %v2724_v19 = vmul.f32 0.2, %v7146_v3  ;;  %v6215_v12 = vadd.f32 %v6214_v15, %v6213_v6  ;;  %v6216_v48 = vpop.f32.mrb[158].mxu0  ;;  %v2755_v49 = vsel %vm2691_vm8, %v7138_v63, %v2723_v20  ;;  %v3048_v6 = vld [vmem:[#allocation3 + $0x120] sm:$0xff] }
 0x23d   : > { %v2956_v33 = vor.u32 %v2954_v0, %v2953_v8  ;;  %v3098_v31 = vor.u32 %v3097_v52, %v2951_v57  ;;  %v6217_v58 = vpop.f32.mrb[159].mxu0  ;;  %v3160_v8 = vld [vmem:[#allocation3 + $0x130] sm:$0xff] }
 0x23e   : > { %v2756_v35 = vsel %vm2692_vm9, %v7146_v3, %v2724_v19  ;;  %v7133_v1 = vadd.f32 %v8953_v36, %v6215_v12  ;;  %v6218_v27 = vadd.f32 %v6217_v58, %v6216_v48 }
 0x23f   : > { %v3043_v30 = vsel %vm7883_vm1, %v2956_v33, %v3042_v4  ;;  %v9121_v54 = vsel %vm7856_vm13, %v3098_v31, %v3154_v55  ;;  %v9123_v28 = vpack.c.bf16 %v2756_v35, %v2755_v49  ;;  %v9878_v31 = vld [vmem:[#allocation6_spill] sm:$0xff] }
 0x240   : > { %3044 = vst [vmem:[#allocation3 + $0xf0] sm:$0xff] %v3043_v30  ;;  %3156 = vst [vmem:[#allocation3 + $0x100] sm:$0xff] %v9121_v54  ;;  %v7134_v42 = vadd.f32 %v7133_v1, %v9872_v13  ;;  %v7141_v51 = vadd.f32 %v8967_v62, %v6218_v27  ;;  %3529 = vmatmul.mubr.bf16.gmra.mrb[216].mxu0 %v3043_v30  ;;  %6879 = vmatprep.mubr.bf16.mxu1 %v9121_v54  ;;  %v3045_v62 = vld [vmem:[#allocation3 + $0x108] sm:$0xff] }
 0x241   : > { %v2958_v36 = vshrl.u32 %v9123_v28, 16  ;;  %v2961_v41 = vshll.u32 %v9123_v28, 16  ;;  %3073 = vst [vmem:[#allocation3 + $0x110] sm:$0xff] %v9123_v28  ;;  %3536 = vmatprep.mubr.bf16.mxu0 %v9123_v28  ;;  %v9879_v30 = vld [vmem:[#allocation15_spill] sm:$0xff] }
 0x242   : > { %v2725_v18 = vmul.f32 0.2, %v7134_v42  ;;  %v7142_v47 = vadd.f32 %v7141_v51, %v9873_v9  ;;  %v6219_v21 = vpop.f32.mrb[160].mxu0  ;;  %vm2693_vm10 = vcmp.gt.f32.partialorder %v7134_v42, 0.0  ;;  %v9881_v9 = vld [vmem:[#allocation17_spill] sm:$0xff] }
 0x243   : > { %v2960_v29 = vrot.slane %v2958_v36, 7  ;;  %v3099_v34 = vrot.slane %v2961_v41, 1  ;;  %v6220_v40 = vpop.f32.mrb[161].mxu0 }
 0x244   : > { %vm2694_vm12 = vcmp.gt.f32.partialorder %v7142_v47, 0.0  ;;  %v2726_v61 = vmul.f32 0.2, %v7142_v47  ;;  %v6221_v22 = vadd.f32 %v6220_v40, %v6219_v21  ;;  %v6222_v5 = vpop.f32.mrb[162].mxu0  ;;  %v2757_v14 = vsel %vm2693_vm10, %v7134_v42, %v2725_v18  ;;  %v9880_v42 = vld [vmem:[#allocation7_spill] sm:$0xff] }
 0x245   : > { %v2963_v16 = vor.u32 %v2961_v41, %v2960_v29  ;;  %v3100_v23 = vor.u32 %v3099_v34, %v2958_v36  ;;  %v6223_v17 = vpop.f32.mrb[163].mxu0 }
 0x246   : > { %v2758_v59 = vsel %vm2694_vm12, %v7142_v47, %v2726_v61  ;;  %v7153_v2 = vadd.f32 %v9874_v24, %v6221_v22  ;;  %v6224_v56 = vadd.f32 %v6223_v17, %v6222_v5  ;;  %v9882_v24 = vld [vmem:[#allocation8_spill] sm:$0xff] }
 0x247   : > { %v9137_v38 = vsel %vm7883_vm1, %v2963_v16, %v3045_v62  ;;  %v9141_v11 = vsel %vm7856_vm13, %v3100_v23, %v3157_v53  ;;  %v9143_v45 = vpack.c.bf16 %v2758_v59, %v2757_v14  ;;  %v3051_v62 = vld [vmem:[#allocation3 + $0x138] sm:$0xff]  ;;  %v3163_v53 = vld [vmem:[#allocation3 + $0x148] sm:$0xff] }
 0x248   : > { %3047 = vst [vmem:[#allocation3 + $0x108] sm:$0xff] %v9137_v38  ;;  %3159 = vst [vmem:[#allocation3 + $0x118] sm:$0xff] %v9141_v11  ;;  %v7154_v26 = vadd.f32 %v7153_v2, %v9875_v25  ;;  %v7161_v43 = vadd.f32 %v9876_v39, %v6224_v56  ;;  %3537 = vmatmul.mubr.bf16.gmra.mrb[220].mxu0 %v9137_v38  ;;  %6880 = vmatmul.mubr.bf16.gmra.mrb[68].mxu1 %v9141_v11 }
 0x249   : > { %v2965_v44 = vshrl.u32 %v9143_v45, 16  ;;  %v2968_v46 = vshll.u32 %v9143_v45, 16  ;;  %3074 = vst [vmem:[#allocation3 + $0x128] sm:$0xff] %v9143_v45  ;;  %3544 = vmatprep.mubr.bf16.mxu0 %v9143_v45 }
 0x24a   : > { %v2727_v63 = vmul.f32 0.2, %v7154_v26  ;;  %v7162_v57 = vadd.f32 %v7161_v43, %v9877_v32  ;;  %v6225_v0 = vpop.f32.mrb[164].mxu0  ;;  %vm2695_vm14 = vcmp.gt.f32.partialorder %v7154_v26, 0.0  ;;  %v9883_v43 = vld [vmem:[#allocation20_spill] sm:$0xff] }
 0x24b   : > { %v2967_v20 = vrot.slane %v2965_v44, 7  ;;  %v3101_v10 = vrot.slane %v2968_v46, 1  ;;  %v6226_v3 = vpop.f32.mrb[165].mxu0 }
 0x24c   : > { %vm2696_vm15 = vcmp.gt.f32.partialorder %v7162_v57, 0.0  ;;  %v2728_v52 = vmul.f32 0.2, %v7162_v57  ;;  %v6227_v15 = vadd.f32 %v6226_v3, %v6225_v0  ;;  %v6228_v4 = vpop.f32.mrb[166].mxu0  ;;  %v2759_v48 = vsel %vm2695_vm14, %v7154_v26, %v2727_v63 }
 0x24d   : > { %v2970_v55 = vor.u32 %v2968_v46, %v2967_v20  ;;  %v3102_v19 = vor.u32 %v3101_v10, %v2965_v44  ;;  %v6229_v12 = vpop.f32.mrb[167].mxu0  ;;  %v9884_v46 = vld [vmem:[#allocation9_spill] sm:$0xff]  ;;  %v9885_v20 = vld [vmem:[#allocation22_spill] sm:$0xff] }
 0x24e   : > { %v2760_v33 = vsel %vm2696_vm15, %v7162_v57, %v2728_v52  ;;  %v7149_v58 = vadd.f32 %v9878_v31, %v6227_v15  ;;  %v6230_v49 = vadd.f32 %v6229_v12, %v6228_v4  ;;  %v3054_v15 = vld [vmem:[#allocation3 + $0x150] sm:$0xff]  ;;  %v3166_v4 = vld [vmem:[#allocation3 + $0x160] sm:$0xff] }
 0x24f   : > { %v9159_v35 = vsel %vm7883_vm1, %v2970_v55, %v3048_v6  ;;  %v9163_v1 = vsel %vm7856_vm13, %v3102_v19, %v3160_v8  ;;  %v9165_v27 = vpack.c.bf16 %v2760_v33, %v2759_v48 }
 0x250   : > { %3050 = vst [vmem:[#allocation3 + $0x120] sm:$0xff] %v9159_v35  ;;  %3162 = vst [vmem:[#allocation3 + $0x130] sm:$0xff] %v9163_v1  ;;  %v7150_v13 = vadd.f32 %v7149_v58, %v9879_v30  ;;  %v7157_v51 = vadd.f32 %v9880_v42, %v6230_v49  ;;  %3545 = vmatmul.mubr.bf16.gmra.mrb[224].mxu0 %v9159_v35  ;;  %6883 = vmatprep.mubr.bf16.mxu1 %v9163_v1  ;;  %v9886_v30 = vld [vmem:[#allocation10_spill] sm:$0xff] }
 0x251   : > { %v2972_v36 = vshrl.u32 %v9165_v27, 16  ;;  %v2975_v41 = vshll.u32 %v9165_v27, 16  ;;  %3075 = vst [vmem:[#allocation3 + $0x140] sm:$0xff] %v9165_v27  ;;  %3552 = vmatprep.mubr.bf16.mxu0 %v9165_v27 }
 0x252   : > { %v2729_v18 = vmul.f32 0.2, %v7150_v13  ;;  %v7158_v47 = vadd.f32 %v7157_v51, %v9881_v9  ;;  %v6231_v21 = vpop.f32.mrb[168].mxu0  ;;  %vm2697_vm0 = vcmp.gt.f32.partialorder %v7150_v13, 0.0 }
 0x253   : > { %v2974_v29 = vrot.slane %v2972_v36, 7  ;;  %v3103_v34 = vrot.slane %v2975_v41, 1  ;;  %v6232_v40 = vpop.f32.mrb[169].mxu0 }
 0x254   : > { %vm2698_vm2 = vcmp.gt.f32.partialorder %v7158_v47, 0.0  ;;  %v2730_v61 = vmul.f32 0.2, %v7158_v47  ;;  %v6233_v22 = vadd.f32 %v6232_v40, %v6231_v21  ;;  %v6234_v5 = vpop.f32.mrb[170].mxu0  ;;  %v2761_v14 = vsel %vm2697_vm0, %v7150_v13, %v2729_v18  ;;  %v9887_v18 = vld [vmem:[#allocation19_spill] sm:$0xff] }
 0x255   : > { %v2977_v16 = vor.u32 %v2975_v41, %v2974_v29  ;;  %v3104_v23 = vor.u32 %v3103_v34, %v2972_v36  ;;  %v6235_v17 = vpop.f32.mrb[171].mxu0 }
 0x256   : > { %v2762_v59 = vsel %vm2698_vm2, %v7158_v47, %v2730_v61  ;;  %v7169_v2 = vadd.f32 %v9882_v24, %v6233_v22  ;;  %v6236_v56 = vadd.f32 %v6235_v17, %v6234_v5  ;;  %v9888_v47 = vld [vmem:[#allocation11_spill] sm:$0xff]  ;;  %v3169_v17 = vld [vmem:[#allocation3 + $0x178] sm:$0xff] }
 0x257   : > { %v9181_v25 = vsel %vm7883_vm1, %v2977_v16, %v3051_v62  ;;  %v9185_v26 = vsel %vm7856_vm13, %v3104_v23, %v3163_v53  ;;  %v9187_v39 = vpack.c.bf16 %v2762_v59, %v2761_v14  ;;  %v9889_v62 = vld [vmem:[#allocation21_spill] sm:$0xff]  ;;  %v3057_v23 = vld [vmem:[#allocation3 + $0x168] sm:$0xff] }
 0x258   : > { %3053 = vst [vmem:[#allocation3 + $0x138] sm:$0xff] %v9181_v25  ;;  %3165 = vst [vmem:[#allocation3 + $0x148] sm:$0xff] %v9185_v26  ;;  %v7170_v44 = vadd.f32 %v7169_v2, %v9883_v43  ;;  %v7177_v63 = vadd.f32 %v9884_v46, %v6236_v56  ;;  %3553 = vmatmul.mubr.bf16.gmra.mrb[228].mxu0 %v9181_v25  ;;  %6884 = vmatmul.mubr.bf16.gmra.mrb[72].mxu1 %v9185_v26 }
 0x259   : > { %v2979_v32 = vshrl.u32 %v9187_v39, 16  ;;  %v2982_v57 = vshll.u32 %v9187_v39, 16  ;;  %3560 = vmatprep.mubr.bf16.mxu0 %v9187_v39 }
 0x25a   : > { %v2731_v0 = vmul.f32 0.2, %v7170_v44  ;;  %v7178_v10 = vadd.f32 %v7177_v63, %v9885_v20  ;;  %v6237_v3 = vpop.f32.mrb[172].mxu0  ;;  %vm2699_vm3 = vcmp.gt.f32.partialorder %v7170_v44, 0.0  ;;  %v3777_v20 = vld [vmem:[#allocation3 + $0x20] sm:$0xff] }
 0x25b   : > { %v2981_v6 = vrot.slane %v2979_v32, 7  ;;  %v3105_v8 = vrot.slane %v2982_v57, 1  ;;  %v6238_v52 = vpop.f32.mrb[173].mxu0 }
 0x25c   : > { %vm2700_vm11 = vcmp.gt.f32.partialorder %v7178_v10, 0.0  ;;  %v2732_v55 = vmul.f32 0.2, %v7178_v10  ;;  %v6239_v19 = vadd.f32 %v6238_v52, %v6237_v3  ;;  %v6240_v12 = vpop.f32.mrb[174].mxu0  ;;  %v2763_v58 = vsel %vm2699_vm3, %v7170_v44, %v2731_v0 }
 0x25d   : > { %v2984_v48 = vor.u32 %v2982_v57, %v2981_v6  ;;  %v3106_v33 = vor.u32 %v3105_v8, %v2979_v32  ;;  %v6241_v31 = vpop.f32.mrb[175].mxu0 }
 0x25e   : > { %v2764_v49 = vsel %vm2700_vm11, %v7178_v10, %v2732_v55  ;;  %v7165_v13 = vadd.f32 %v9886_v30, %v6239_v19  ;;  %v6242_v42 = vadd.f32 %v6241_v31, %v6240_v12  ;;  %v3778_v10 = vld [vmem:[#allocation3 + $0x28] sm:$0xff]  ;;  %v7597_v12 = vld [vmem:[%s9840_s3 + $0x180] sm:$0xff]   ;;  %v3776_v31 = vld [vmem:[#allocation3 + $0x18] sm:$0xff] }
 0x25f   : > { %v9202_v51 = vsel %vm7883_vm1, %v2984_v48, %v3054_v15  ;;  %v9206_v36 = vsel %vm7856_vm13, %v3106_v33, %v3166_v4  ;;  %v9208_v41 = vpack.c.bf16 %v2764_v49, %v2763_v58  ;;  %v3060_v15 = vld [vmem:[#allocation3 + $0x180] sm:$0xff]  ;;  %v3172_v4 = vld [vmem:[#allocation3 + $0x190] sm:$0xff]  ;;  %v7598_v49 = vld [vmem:[%s9840_s3 + $0x1c8] sm:$0xff]  }
 0x260   : > { %3056 = vst [vmem:[#allocation3 + $0x150] sm:$0xff] %v9202_v51  ;;  %3168 = vst [vmem:[#allocation3 + $0x160] sm:$0xff] %v9206_v36  ;;  %v7166_v9 = vadd.f32 %v7165_v13, %v9887_v18  ;;  %v7173_v21 = vadd.f32 %v9888_v47, %v6242_v42  ;;  %3561 = vmatmul.mubr.bf16.gmra.mrb[232].mxu0 %v9202_v51  ;;  %6887 = vmatprep.mubr.bf16.mxu1 %v9206_v36  ;;  %v9251_v58 = vld [vmem:[#allocation3 + $0x40] sm:$0xff]  ;;  %v9261_v30 = vld [vmem:[#allocation3 + $0x58] sm:$0xff] }
 0x261   : > { %v2986_v29 = vshrl.u32 %v9208_v41, 16  ;;  %v2989_v34 = vshll.u32 %v9208_v41, 16  ;;  %3568 = vmatprep.mubr.bf16.mxu0 %v9208_v41  ;;  %v7600_v13 = vld [vmem:[%s9840_s3 + $0x1d0] sm:$0xff]   ;;  %v9274_v18 = vld [vmem:[#allocation3 + $0x30] sm:$0xff]  ;;  %v7602_v47 = vld [vmem:[%s9840_s3 + $0x1d8] sm:$0xff]  }
 0x262   : > { %v2733_v40 = vmul.f32 0.2, %v7166_v9  ;;  %v7174_v53 = vadd.f32 %v7173_v21, %v9889_v62  ;;  %v6283_v61 = vpop.f32.mrb[176].mxu0  ;;  %vm2701_vm5 = vcmp.gt.f32.partialorder %v7166_v9, 0.0  ;;  %v7601_v42 = vld [vmem:[%s9840_s3 + $0x190] sm:$0xff]   ;;  %v9283_v21 = vld [vmem:[#allocation3 + $0x50] sm:$0xff] }
 0x263   : > { %v2988_v22 = vrot.slane %v2986_v29, 7  ;;  %v3107_v5 = vrot.slane %v2989_v34, 1  ;;  %v6284_v16 = vpop.f32.mrb[177].mxu0  ;;  %v7605_v62 = vld [vmem:[%s9840_s3 + $0x1a0] sm:$0xff]  }
 0x264   : > { %vm2702_vm4 = vcmp.gt.f32.partialorder %v7174_v53, 0.0  ;;  %v2734_v14 = vmul.f32 0.2, %v7174_v53  ;;  %v9220_v59 = vadd.f32 %v6284_v16, %v6283_v61  ;;  %v6286_v24 = vpop.f32.mrb[178].mxu0  ;;  %v2765_v44 = vsel %vm2701_vm5, %v7166_v9, %v2733_v40  ;;  %v9276_v9 = vld [vmem:[#allocation3 + $0x70] sm:$0xff]  ;;  %v9300_v61 = vld [vmem:[#allocation3 + $0xa0] sm:$0xff] }
 0x265   : > { %v2991_v2 = vor.u32 %v2989_v34, %v2988_v22  ;;  %v3108_v56 = vor.u32 %v3107_v5, %v2986_v29  ;;  %v6287_v43 = vpop.f32.mrb[179].mxu0  ;;  %v9285_v29 = vld [vmem:[#allocation3 + $0x88] sm:$0xff]  ;;  %v7604_v40 = vld [vmem:[%s9840_s3 + $0x1e0] sm:$0xff]   ;;  %v7606_v22 = vld [vmem:[%s9840_s3 + $0x1e8] sm:$0xff]  }
 0x266   : > { %v2766_v46 = vsel %vm2702_vm4, %v7174_v53, %v2734_v14  ;;  %v9222_v63 = vadd.f32 %v6287_v43, %v6286_v24  ;;  %v7603_v34 = vld [vmem:[%s9840_s3 + $0x198] sm:$0xff]   ;;  %v9309_v16 = vld [vmem:[#allocation3 + $0xb8] sm:$0xff]  ;;  %v7609_v14 = vld [vmem:[%s9840_s3 + $0x1b0] sm:$0xff]  }
 0x267   : > { %v9226_v32 = vsel %vm7883_vm1, %v2991_v2, %v3057_v23  ;;  %v9230_v57 = vsel %vm7856_vm13, %v3108_v56, %v3169_v17  ;;  %v9232_v0 = vpack.c.bf16 %v2766_v46, %v2765_v44  ;;  %v9298_v53 = vld [vmem:[#allocation3 + $0x48] sm:$0xff]  ;;  %v7607_v23 = vld [vmem:[%s9840_s3 + $0x1a8] sm:$0xff]   ;;  %v7608_v17 = vld [vmem:[%s9840_s3 + $0x1f0] sm:$0xff]  }
 0x268   : > { %3059 = vst [vmem:[#allocation3 + $0x168] sm:$0xff] %v9226_v32  ;;  %3171 = vst [vmem:[#allocation3 + $0x178] sm:$0xff] %v9230_v57  ;;  %3569 = vmatmul.mubr.bf16.gmra.mrb[236].mxu0 %v9226_v32  ;;  %6888 = vmatmul.mubr.bf16.gmra.mrb[76].mxu1 %v9230_v57  ;;  %v9307_v5 = vld [vmem:[#allocation3 + $0x68] sm:$0xff]  ;;  %v3785_v24 = vld [vmem:[#allocation3 + $0x60] sm:$0xff] }
 0x269   : > { %v2993_v3 = vshrl.u32 %v9232_v0, 16  ;;  %v2996_v6 = vshll.u32 %v9232_v0, 16  ;;  %4048 = vmatprep.mubr.bf16.mxu0 %v3777_v20  ;;  %6907 = vmatprep.mubr.bf16.mxu1 %v3778_v10  ;;  %v7610_v2 = vld [vmem:[%s9840_s3 + $0x1f8] sm:$0xff]   ;;  %v3789_v56 = vld [vmem:[#allocation3 + $0x80] sm:$0xff]  ;;  %v7612_v44 = vld [vmem:[%s9840_s3 + $0x200] sm:$0xff]  }
 0x26a   : > { %v7611_v43 = vld [vmem:[%s9840_s3 + $0x1b8] sm:$0xff]   ;;  %v3788_v46 = vld [vmem:[#allocation3 + $0x78] sm:$0xff]  ;;  %v9339_v20 = vld [vmem:[#allocation3 + $0xb0] sm:$0xff] }
 0x26b   : > { %v2995_v8 = vrot.slane %v2993_v3, 7  ;;  %v3109_v52 = vrot.slane %v2996_v6, 1  ;;  %v9343_v10 = vld [vmem:[#allocation3 + $0xa8] sm:$0xff] }
 0x26d   : > { %v2998_v55 = vor.u32 %v2996_v6, %v2995_v8  ;;  %v3110_v19 = vor.u32 %v3109_v52, %v2993_v3  ;;  %v7614_v3 = vld [vmem:[%s9840_s3 + $0x210] sm:$0xff]   ;;  %v9373_v6 = vld [vmem:[#allocation3 + $0xf0] sm:$0xff]  ;;  %v7615_v8 = vld [vmem:[%s9840_s3 + $0x218] sm:$0xff]  }
 0x26e   : > { %v7616_v52 = vld [vmem:[%s9840_s3 + $0x220] sm:$0xff]  }
 0x26f   : > { %v9245_v48 = vsel %vm7883_vm1, %v2998_v55, %v3060_v15  ;;  %v9249_v33 = vsel %vm7856_vm13, %v3110_v19, %v3172_v4  ;;  %v7617_v15 = vld [vmem:[%s9840_s3 + $0x228] sm:$0xff]   ;;  %v7619_v4 = vld [vmem:[%s9840_s3 + $0x238] sm:$0xff]  }
 0x270   : > { %3062 = vst [vmem:[#allocation3 + $0x180] sm:$0xff] %v9245_v48  ;;  %3174 = vst [vmem:[#allocation3 + $0x190] sm:$0xff] %v9249_v33  ;;  %4049 = vmatmul.mubr.bf16.vlgmr.msra.gmra.mrb[240].mxu0 %v3776_v31  ;;  %6908 = vmatmul.mubr.bf16.vlgmr.msra.gmra.mrb[48].mxu1 %v9251_v58 }
 0x271   : > { %4056 = vmatprep.mubr.bf16.mxu0 %v9259_v7  ;;  %6911 = vmatprep.mubr.bf16.mxu1 %v9261_v30 }
 0x272   : > { %6540 = vmatpush3.bf16.msra.mxu1 %v7597_v12 }
 0x273   : > { %6541 = vmatprep.subr.bf16.mxu1 %v7598_v49 }
 0x276   : > { %6542 = vmatpush3.bf16.msra.mxu1 %v7599_v50 }
 0x277   : > { %6543 = vmatprep.subr.bf16.mxu1 %v7600_v13 }
 0x278   : > { %4057 = vmatmul.mubr.bf16.gmra.mrb[244].mxu0 %v9274_v18  ;;  %6912 = vmatmul.mubr.bf16.gmra.mrb[52].mxu1 %v9276_v9 }
 0x279   : > { %4064 = vmatprep.mubr.bf16.mxu0 %v9283_v21  ;;  %6915 = vmatprep.mubr.bf16.mxu1 %v9285_v29 }
 0x27a   : > { %6544 = vmatpush3.bf16.msra.mxu1 %v7601_v42 }
 0x27b   : > { %6545 = vmatprep.subr.bf16.mxu1 %v7602_v47 }
 0x27e   : > { %6546 = vmatpush3.bf16.msra.mxu1 %v7603_v34 }
 0x27f   : > { %6547 = vmatprep.subr.bf16.mxu1 %v7604_v40 }
 0x280   : > { %4065 = vmatmul.mubr.bf16.gmra.mrb[248].mxu0 %v9298_v53  ;;  %6916 = vmatmul.mubr.bf16.gmra.mrb[56].mxu1 %v9300_v61 }
 0x281   : > { %4072 = vmatprep.mubr.bf16.mxu0 %v9307_v5  ;;  %6919 = vmatprep.mubr.bf16.mxu1 %v9309_v16 }
 0x282   : > { %6548 = vmatpush3.bf16.msra.mxu1 %v7605_v62 }
 0x283   : > { %6549 = vmatprep.subr.bf16.mxu1 %v7606_v22 }
 0x286   : > { %6550 = vmatpush3.bf16.msra.mxu1 %v7607_v23 }
 0x287   : > { %6551 = vmatprep.subr.bf16.mxu1 %v7608_v17 }
 0x288   : > { %4073 = vmatmul.mubr.bf16.gmra.mrb[252].mxu0 %v3785_v24  ;;  %6920 = vmatmul.mubr.bf16.gmra.mrb[60].mxu1 %v9097_v37  ;;  %v3792_v37 = vld [vmem:[#allocation3 + $0x98] sm:$0xff] }
 0x289   : > { %4080 = vmatprep.mubr.bf16.mxu0 %v3789_v56  ;;  %6923 = vmatprep.mubr.bf16.mxu1 %v9109_v60  ;;  %v9335_v60 = vld [vmem:[#allocation3 + $0x90] sm:$0xff] }
 0x28a   : > { %6552 = vmatpush3.bf16.msra.mxu1 %v7609_v14 }
 0x28b   : > { %6553 = vmatprep.subr.bf16.mxu1 %v7610_v2 }
 0x28e   : > { %6554 = vmatpush3.bf16.msra.mxu1 %v7611_v43  ;;  %v4399_v43 = vld [vmem:[#allocation3 + $0x110] sm:$0xff] }
 0x28f   : > { %6939 = vmatprep.subr.bf16.mxu1 %v7612_v44 }
 0x290   : > { %4081 = vmatmul.mubr.bf16.gmra.mrb[0].mxu0 %v3788_v46  ;;  %6924 = vmatmul.mubr.bf16.gmra.mrb[64].mxu1 %v9121_v54  ;;  %v9347_v54 = vld [vmem:[#allocation3 + $0xc8] sm:$0xff] }
 0x291   : > { %4088 = vmatprep.mubr.bf16.mxu0 %v3792_v37  ;;  %6927 = vmatprep.mubr.bf16.mxu1 %v9141_v11  ;;  %v9351_v11 = vld [vmem:[#allocation3 + $0xc0] sm:$0xff] }
 0x298   : > { %4089 = vmatmul.mubr.bf16.gmra.mrb[4].mxu0 %v9335_v60  ;;  %6928 = vmatmul.mubr.bf16.gmra.mrb[68].mxu1 %v9163_v1  ;;  %v9355_v1 = vld [vmem:[#allocation3 + $0xe0] sm:$0xff] }
 0x299   : > { %4096 = vmatprep.mubr.bf16.mxu0 %v9339_v20  ;;  %6931 = vmatprep.mubr.bf16.mxu1 %v9185_v26  ;;  %v9359_v26 = vld [vmem:[#allocation3 + $0xd8] sm:$0xff] }
 0x2a0   : > { %4097 = vmatmul.mubr.bf16.gmra.mrb[8].mxu0 %v9343_v10  ;;  %6932 = vmatmul.mubr.bf16.gmra.mrb[72].mxu1 %v9206_v36  ;;  %v7613_v36 = vld [vmem:[%s9840_s3 + $0x208] sm:$0xff]  }
 0x2a1   : > { %4104 = vmatprep.mubr.bf16.mxu0 %v9347_v54  ;;  %6935 = vmatprep.mubr.bf16.mxu1 %v9230_v57  ;;  %v9366_v57 = vld [vmem:[#allocation3 + $0xf8] sm:$0xff] }
 0x2a8   : > { %4105 = vmatmul.mubr.bf16.gmra.mrb[12].mxu0 %v9351_v11  ;;  %6936 = vmatmul.mubr.bf16.gmra.mrb[76].mxu1 %v9249_v33 }
 0x2a9   : > { %4112 = vmatprep.mubr.bf16.mxu0 %v9355_v1  ;;  %4643 = vmatprep.mubr.bf16.mxu1 %v9259_v7 }
 0x2b0   : > { %4113 = vmatmul.mubr.bf16.gmra.mrb[16].mxu0 %v9359_v26  ;;  %4644 = vmatmul.mubr.bf16.vlgmr.msra.gmra.mrb[80].mxu1 %v9274_v18 }
 0x2b1   : > { %4120 = vmatprep.mubr.bf16.mxu0 %v9366_v57  ;;  %4651 = vmatprep.mubr.bf16.mxu1 %v9283_v21 }
 0x2b2   : > { %6940 = vmatpush3.bf16.msra.mxu1 %v7612_v44 }
 0x2b3   : > { %6941 = vmatprep.subr.bf16.mxu1 %v7613_v36 }
 0x2b6   : > { %6942 = vmatpush3.bf16.msra.mxu1 %v7613_v36 }
 0x2b7   : > { %6943 = vmatprep.subr.bf16.mxu1 %v7614_v3 }
 0x2b8   : > { %4121 = vmatmul.mubr.bf16.gmra.mrb[20].mxu0 %v9373_v6  ;;  %4652 = vmatmul.mubr.bf16.gmra.mrb[84].mxu1 %v9298_v53 }
 0x2b9   : > { %4128 = vmatprep.mubr.bf16.mxu0 %v9123_v28  ;;  %4659 = vmatprep.mubr.bf16.mxu1 %v9307_v5  ;;  %v7618_v28 = vld [vmem:[%s9840_s3 + $0x230] sm:$0xff]  }
 0x2ba   : > { %6944 = vmatpush3.bf16.msra.mxu1 %v7614_v3 }
 0x2bb   : > { %6945 = vmatprep.subr.bf16.mxu1 %v7615_v8 }
 0x2be   : > { %6946 = vmatpush3.bf16.msra.mxu1 %v7615_v8  ;;  %v4401_v8 = vld [vmem:[#allocation3 + $0x120] sm:$0xff] }
 0x2bf   : > { %6947 = vmatprep.subr.bf16.mxu1 %v7616_v52 }
 0x2c0   : > { %4129 = vmatmul.mubr.bf16.gmra.mrb[24].mxu0 %v9137_v38  ;;  %4660 = vmatmul.mubr.bf16.gmra.mrb[88].mxu1 %v3785_v24 }
 0x2c1   : > { %4136 = vmatprep.mubr.bf16.mxu0 %v9143_v45  ;;  %4667 = vmatprep.mubr.bf16.mxu1 %v3789_v56  ;;  %v9401_v45 = vld [vmem:[%s9842_s5] sm:$0xff]  }
 0x2c2   : > { %6948 = vmatpush3.bf16.msra.mxu1 %v7616_v52  ;;  %v4405_v52 = vld [vmem:[#allocation3 + $0x140] sm:$0xff] }
 0x2c3   : > { %6949 = vmatprep.subr.bf16.mxu1 %v7617_v15 }
 0x2c6   : > { %6950 = vmatpush3.bf16.msra.mxu1 %v7617_v15 }
 0x2c7   : > { %6951 = vmatprep.subr.bf16.mxu1 %v7618_v28 }
 0x2c8   : > { %4137 = vmatmul.mubr.bf16.gmra.mrb[28].mxu0 %v9159_v35  ;;  %4668 = vmatmul.mubr.bf16.gmra.mrb[92].mxu1 %v3788_v46 }
 0x2c9   : > { %4144 = vmatprep.mubr.bf16.mxu0 %v9165_v27  ;;  %4675 = vmatprep.mubr.bf16.mxu1 %v3792_v37 }
 0x2ca   : > { %6952 = vmatpush3.bf16.msra.mxu1 %v7618_v28 }
 0x2cb   : > { %v6289_v38 = vpop.f32.mrb[180].mxu0  ;;  %6953 = vmatprep.subr.bf16.mxu1 %v7619_v4 }
 0x2cc   : > { %v6290_v55 = vpop.f32.mrb[181].mxu0 }
 0x2cd   : > { %v9403_v19 = vadd.f32 %v6290_v55, %v6289_v38  ;;  %v6292_v12 = vpop.f32.mrb[182].mxu0 }
 0x2ce   : > { %v6293_v33 = vpop.f32.mrb[183].mxu0  ;;  %6954 = vmatpush3.bf16.msra.mxu1 %v7619_v4 }
 0x2cf   : > { %v9405_v31 = vadd.f32 %v6293_v33, %v6292_v12  ;;  %6987 = vmatprep.subr.bf16.mxu1 %v9401_v45  ;;  %v4404_v33 = vld [vmem:[#allocation3 + $0x138] sm:$0xff] }
 0x2d0   : > { %4145 = vmatmul.mubr.bf16.gmra.mrb[32].mxu0 %v9181_v25  ;;  %4676 = vmatmul.mubr.bf16.gmra.mrb[96].mxu1 %v9335_v60 }
 0x2d1   : > { %4152 = vmatprep.mubr.bf16.mxu0 %v9187_v39  ;;  %4683 = vmatprep.mubr.bf16.mxu1 %v9339_v20 }
 0x2d3   : > { %v6295_v35 = vpop.f32.mrb[184].mxu0 }
 0x2d4   : > { %v6296_v27 = vpop.f32.mrb[185].mxu0 }
 0x2d5   : > { %v9412_v49 = vadd.f32 %v6296_v27, %v6295_v35  ;;  %v6298_v7 = vpop.f32.mrb[186].mxu0 }
 0x2d6   : > { %v6299_v50 = vpop.f32.mrb[187].mxu0 }
 0x2d7   : > { %v9414_v13 = vadd.f32 %v6299_v50, %v6298_v7 }
 0x2d8   : > { %4153 = vmatmul.mubr.bf16.gmra.mrb[36].mxu0 %v9202_v51  ;;  %4684 = vmatmul.mubr.bf16.gmra.mrb[100].mxu1 %v9343_v10 }
 0x2d9   : > { %4160 = vmatprep.mubr.bf16.mxu0 %v9208_v41  ;;  %4691 = vmatprep.mubr.bf16.mxu1 %v9347_v54  ;;  %v4398_v54 = vld [vmem:[#allocation3 + $0x108] sm:$0xff] }
 0x2db   : > { %v6301_v25 = vpop.f32.mrb[188].mxu0 }
 0x2dc   : > { %v6302_v42 = vpop.f32.mrb[189].mxu0 }
 0x2dd   : > { %v9420_v18 = vadd.f32 %v6302_v42, %v6301_v25  ;;  %v6304_v47 = vpop.f32.mrb[190].mxu0 }
 0x2de   : > { %v6305_v21 = vpop.f32.mrb[191].mxu0 }
 0x2df   : > { %v9422_v34 = vadd.f32 %v6305_v21, %v6304_v47  ;;  %v4407_v47 = vld [vmem:[#allocation3 + $0x150] sm:$0xff] }
 0x2e0   : > { %4161 = vmatmul.mubr.bf16.gmra.mrb[40].mxu0 %v9226_v32  ;;  %4692 = vmatmul.mubr.bf16.gmra.mrb[104].mxu1 %v9351_v11  ;;  %v4402_v11 = vld [vmem:[#allocation3 + $0x128] sm:$0xff] }
 0x2e1   : > { %4168 = vmatprep.mubr.bf16.mxu0 %v9232_v0  ;;  %4699 = vmatprep.mubr.bf16.mxu1 %v9355_v1 }
 0x2e3   : > { %v6307_v51 = vpop.f32.mrb[192].mxu0 }
 0x2e4   : > { %v6308_v40 = vpop.f32.mrb[193].mxu0 }
 0x2e5   : > { %v9428_v62 = vadd.f32 %v6308_v40, %v6307_v51  ;;  %v6310_v53 = vpop.f32.mrb[194].mxu0 }
 0x2e6   : > { %v6311_v22 = vpop.f32.mrb[195].mxu0 }
 0x2e7   : > { %v9430_v5 = vadd.f32 %v6311_v22, %v6310_v53 }
 0x2e8   : > { %4169 = vmatmul.mubr.bf16.gmra.mrb[44].mxu0 %v9245_v48  ;;  %4700 = vmatmul.mubr.bf16.gmra.mrb[108].mxu1 %v9359_v26 }
 0x2e9   : > { %4707 = vmatprep.mubr.bf16.mxu1 %v9366_v57 }
 0x2eb   : > { %v6313_v23 = vpop.f32.mrb[196].mxu0 }
 0x2ec   : > { %v6314_v17 = vpop.f32.mrb[197].mxu0 }
 0x2ed   : > { %v9435_v14 = vadd.f32 %v6314_v17, %v6313_v23  ;;  %v6316_v24 = vpop.f32.mrb[198].mxu0 }
 0x2ee   : > { %v6317_v2 = vpop.f32.mrb[199].mxu0 }
 0x2ef   : > { %v9437_v56 = vadd.f32 %v6317_v2, %v6316_v24 }
 0x2f0   : > { %4708 = vmatmul.mubr.bf16.gmra.mrb[112].mxu1 %v9373_v6 }
 0x2f1   : > { %4715 = vmatprep.mubr.bf16.mxu1 %v4399_v43 }
 0x2f3   : > { %v6319_v44 = vpop.f32.mrb[200].mxu0 }
 0x2f4   : > { %v6320_v46 = vpop.f32.mrb[201].mxu0 }
 0x2f5   : > { %v9440_v37 = vadd.f32 %v6320_v46, %v6319_v44  ;;  %v6322_v60 = vpop.f32.mrb[202].mxu0 }
 0x2f6   : > { %v6323_v20 = vpop.f32.mrb[203].mxu0 }
 0x2f7   : > { %v9442_v10 = vadd.f32 %v6323_v20, %v6322_v60 }
 0x2f8   : > { %4716 = vmatmul.mubr.bf16.gmra.mrb[116].mxu1 %v4398_v54 }
 0x2f9   : > { %4723 = vmatprep.mubr.bf16.mxu1 %v4402_v11 }
 0x2fb   : > { %v6325_v1 = vpop.f32.mrb[204].mxu0 }
 0x2fc   : > { %v6326_v26 = vpop.f32.mrb[205].mxu0 }
 0x2fd   : > { %v9444_v36 = vadd.f32 %v6326_v26, %v6325_v1  ;;  %v6328_v57 = vpop.f32.mrb[206].mxu0 }
 0x2fe   : > { %v6329_v3 = vpop.f32.mrb[207].mxu0 }
 0x2ff   : > { %v9446_v6 = vadd.f32 %v6329_v3, %v6328_v57  ;;  %v7621_v3 = vld [vmem:[%s9842_s5 + $0x8] sm:$0xff]  }
 0x300   : > { %4724 = vmatmul.mubr.bf16.gmra.mrb[120].mxu1 %v4401_v8 }
 0x301   : > { %4731 = vmatprep.mubr.bf16.mxu1 %v4405_v52 }
 0x303   : > { %v6331_v15 = vpop.f32.mrb[208].mxu0 }
 0x304   : > { %v6332_v28 = vpop.f32.mrb[209].mxu0 }
 0x305   : > { %v9448_v4 = vadd.f32 %v6332_v28, %v6331_v15  ;;  %v6334_v38 = vpop.f32.mrb[210].mxu0 }
 0x306   : > { %v6335_v55 = vpop.f32.mrb[211].mxu0 }
 0x307   : > { %v9450_v12 = vadd.f32 %v6335_v55, %v6334_v38 }
 0x308   : > { %4732 = vmatmul.mubr.bf16.gmra.mrb[124].mxu1 %v4404_v33 }
 0x309   : > { %4739 = vmatprep.mubr.bf16.mxu1 %v9187_v39 }
 0x30b   : > { %v6337_v35 = vpop.f32.mrb[212].mxu0 }
 0x30c   : > { %v6338_v27 = vpop.f32.mrb[213].mxu0 }
 0x30d   : > { %v9453_v7 = vadd.f32 %v6338_v27, %v6337_v35  ;;  %v6340_v50 = vpop.f32.mrb[214].mxu0 }
 0x30e   : > { %v6341_v25 = vpop.f32.mrb[215].mxu0 }
 0x30f   : > { %v9455_v42 = vadd.f32 %v6341_v25, %v6340_v50 }
 0x310   : > { %4740 = vmatmul.mubr.bf16.gmra.mrb[128].mxu1 %v4407_v47 }
 0x311   : > { %4747 = vmatprep.mubr.bf16.mxu1 %v9208_v41  ;;  %v9469_v41 = vld [vmem:[#allocation2 + $0x8] sm:$0xff] }
 0x313   : > { %v6343_v21 = vpop.f32.mrb[216].mxu0 }
 0x314   : > { %v6344_v51 = vpop.f32.mrb[217].mxu0 }
 0x315   : > { %v9458_v40 = vadd.f32 %v6344_v51, %v6343_v21  ;;  %v6346_v53 = vpop.f32.mrb[218].mxu0  ;;  %v9514_v21 = vld [vmem:[%s9841_s4] ss:$0 sm:$0xff]  ;;  %v7626_v51 = vld [vmem:[%s9842_s5 + $0x30] sm:$0xff]  }
 0x316   : > { %v6347_v22 = vpop.f32.mrb[219].mxu0 }
 0x317   : > { %v9460_v23 = vadd.f32 %v6347_v22, %v6346_v53  ;;  %v7183_v53 = vadd.f32 %v9220_v59, %v9514_v21  ;;  %v4397_v59 = vld [vmem:[#allocation3 + $0x100] sm:$0xff] }
 0x318   : > { %4748 = vmatmul.mubr.bf16.gmra.mrb[132].mxu1 %v9226_v32 }
 0x319   : > { %4755 = vmatprep.mubr.bf16.mxu1 %v9232_v0 }
 0x31b   : > { %v6349_v39 = vpop.f32.mrb[220].mxu0 }
 0x31c   : > { %v6350_v17 = vpop.f32.mrb[221].mxu0 }
 0x31d   : > { %v9464_v24 = vadd.f32 %v6350_v17, %v6349_v39  ;;  %v6352_v2 = vpop.f32.mrb[222].mxu0 }
 0x31e   : > { %v6353_v43 = vpop.f32.mrb[223].mxu0 }
 0x31f   : > { %v9466_v44 = vadd.f32 %v6353_v43, %v6352_v2 }
 0x320   : > { %4756 = vmatmul.mubr.bf16.gmra.mrb[136].mxu1 %v9245_v48 }
 0x321   : > { %4763 = vmatprep.mubr.bf16.mxu1 %v9469_v41 }
 0x323   : > { %v6355_v46 = vpop.f32.mrb[224].mxu0 }
 0x324   : > { %v6356_v60 = vpop.f32.mrb[225].mxu0 }
 0x325   : > { %v9472_v20 = vadd.f32 %v6356_v60, %v6355_v46  ;;  %v6358_v32 = vpop.f32.mrb[226].mxu0  ;;  %v7627_v46 = vld [vmem:[%s9842_s5 + $0x38] sm:$0xff]  }
 0x326   : > { %v6359_v0 = vpop.f32.mrb[227].mxu0 }
 0x327   : > { %v9474_v54 = vadd.f32 %v6359_v0, %v6358_v32  ;;  %v4394_v0 = vld [vmem:[#allocation3 + $0xe8] sm:$0xff] }
 0x328   : > { %4764 = vmatmul.mubr.bf16.gmra.mrb[140].mxu1 %v9469_v41 }
 0x329   : > { %6955 = vmatprep.mubr.bf16.mxu1 %v9251_v58  ;;  %v7622_v58 = vld [vmem:[%s9842_s5 + $0x10] sm:$0xff]  }
 0x32b   : > { %v6361_v11 = vpop.f32.mrb[228].mxu0 }
 0x32c   : > { %v6362_v1 = vpop.f32.mrb[229].mxu0 }
 0x32d   : > { %v9478_v26 = vadd.f32 %v6362_v1, %v6361_v11  ;;  %v6364_v48 = vpop.f32.mrb[230].mxu0 }
 0x32e   : > { %v6365_v57 = vpop.f32.mrb[231].mxu0 }
 0x32f   : > { %v9483_v8 = vadd.f32 %v6365_v57, %v6364_v48  ;;  %v7179_v48 = vadd.f32 %v9403_v19, %v9514_v21  ;;  %v7199_v19 = vadd.f32 %v9412_v49, %v9514_v21  ;;  %v7195_v49 = vadd.f32 %v9420_v18, %v9514_v21 }
 0x330   : > { %6956 = vmatmul.mubr.bf16.vlgmr.msra.gmra.mrb[48].mxu1 %v9261_v30  ;;  %v7623_v30 = vld [vmem:[%s9842_s5 + $0x18] sm:$0xff]   ;;  %v7215_v18 = vadd.f32 %v9428_v62, %v9514_v21 }
 0x331   : > { %6959 = vmatprep.mubr.bf16.mxu1 %v9276_v9  ;;  %6988 = vmatpush3.bf16.msra.mxu1 %v9401_v45  ;;  %v7624_v45 = vld [vmem:[%s9842_s5 + $0x20] sm:$0xff]  }
 0x332   : > { %6989 = vmatprep.subr.bf16.mxu1 %v7621_v3 }
 0x333   : > { %v6367_v52 = vpop.f32.mrb[232].mxu0 }
 0x334   : > { %v6368_v15 = vpop.f32.mrb[233].mxu0 }
 0x335   : > { %v9491_v28 = vadd.f32 %v6368_v15, %v6367_v52  ;;  %v6370_v38 = vpop.f32.mrb[234].mxu0  ;;  %6990 = vmatpush3.bf16.msra.mxu1 %v7621_v3  ;;  %v7187_v52 = vadd.f32 %v9405_v31, %v9514_v21  ;;  %v7207_v31 = vadd.f32 %v9414_v13, %v9514_v21  ;;  %v7203_v13 = vadd.f32 %v9422_v34, %v9514_v21  ;;  %v7657_v34 = vld [vmem:[%s7815_s20 + $0x4] sm:$0xf] }
 0x336   : > { %v6371_v55 = vpop.f32.mrb[235].mxu0  ;;  %6991 = vmatprep.subr.bf16.mxu1 %v7622_v58 }
 0x337   : > { %v9496_v9 = vadd.f32 %v6371_v55, %v6370_v38  ;;  %v4400_v55 = vld [vmem:[#allocation3 + $0x118] sm:$0xff] }
 0x338   : > { %6960 = vmatmul.mubr.bf16.gmra.mrb[52].mxu1 %v9285_v29  ;;  %v7625_v29 = vld [vmem:[%s9842_s5 + $0x28] sm:$0xff]  }
 0x339   : > { %6963 = vmatprep.mubr.bf16.mxu1 %v9300_v61  ;;  %6992 = vmatpush3.bf16.msra.mxu1 %v7622_v58  ;;  %v4391_v61 = vld [vmem:[#allocation3 + $0xd0] sm:$0xff] }
 0x33a   : > { %6993 = vmatprep.subr.bf16.mxu1 %v7623_v30 }
 0x33b   : > { %v6373_v33 = vpop.f32.mrb[236].mxu0 }
 0x33c   : > { %v6374_v35 = vpop.f32.mrb[237].mxu0 }
 0x33d   : > { %v9503_v27 = vadd.f32 %v6374_v35, %v6373_v33  ;;  %v6376_v50 = vpop.f32.mrb[238].mxu0  ;;  %6994 = vmatpush3.bf16.msra.mxu1 %v7623_v30  ;;  %v4403_v30 = vld [vmem:[#allocation3 + $0x130] sm:$0xff] }
 0x33e   : > { %v6377_v25 = vpop.f32.mrb[239].mxu0  ;;  %6995 = vmatprep.subr.bf16.mxu1 %v7624_v45 }
 0x33f   : > { %v9508_v47 = vadd.f32 %v6377_v25, %v6376_v50 }
 0x340   : > { %6964 = vmatmul.mubr.bf16.gmra.mrb[56].mxu1 %v9309_v16  ;;  %v7191_v16 = vadd.f32 %v9222_v63, %v9514_v21 }
 0x341   : > { %6967 = vmatprep.mubr.bf16.mxu1 %v4391_v61  ;;  %6996 = vmatpush3.bf16.msra.mxu1 %v7624_v45 }
 0x342   : > { %6997 = vmatprep.subr.bf16.mxu1 %v7625_v29 }
 0x343   : > { %v6419_v22 = vpop.f32.mrb[240].mxu0 }
 0x344   : > { %v6420_v39 = vpop.f32.mrb[241].mxu0 }
 0x345   : > { %v6421_v17 = vadd.f32 %v6420_v39, %v6419_v22  ;;  %v6422_v2 = vpop.f32.mrb[242].mxu0  ;;  %6998 = vmatpush3.bf16.msra.mxu1 %v7625_v29  ;;  %v4409_v22 = vld [vmem:[#allocation3 + $0x160] sm:$0xff] }
 0x346   : > { %v6423_v43 = vpop.f32.mrb[243].mxu0  ;;  %6999 = vmatprep.subr.bf16.mxu1 %v7626_v51 }
 0x347   : > { %v9526_v60 = vadd.f32 %v7183_v53, %v6421_v17  ;;  %v6424_v32 = vadd.f32 %v6423_v43, %v6422_v2  ;;  %v4406_v53 = vld [vmem:[#allocation3 + $0x148] sm:$0xff] }
 0x348   : > { %6968 = vmatmul.mubr.bf16.gmra.mrb[60].mxu1 %v4394_v0 }
 0x349   : > { %v9528_v11 = vadd.f32 %v7191_v16, %v6424_v32  ;;  %6971 = vmatprep.mubr.bf16.mxu1 %v4397_v59  ;;  %7000 = vmatpush3.bf16.msra.mxu1 %v7626_v51  ;;  %v4412_v59 = vld [vmem:[#allocation3 + $0x178] sm:$0xff] }
 0x34a   : > { %7001 = vmatprep.subr.bf16.mxu1 %v7627_v46 }
 0x34b   : > { %v6425_v63 = vpop.f32.mrb[244].mxu0 }
 0x34c   : > { %v6426_v1 = vpop.f32.mrb[245].mxu0 }
 0x34d   : > { %v6427_v57 = vadd.f32 %v6426_v1, %v6425_v63  ;;  %v6428_v3 = vpop.f32.mrb[246].mxu0  ;;  %7002 = vmatpush3.bf16.msra.mxu1 %v7627_v46  ;;  %v4415_v63 = vld [vmem:[#allocation3 + $0x190] sm:$0xff] }
 0x34e   : > { %v6429_v58 = vpop.f32.mrb[247].mxu0 }
 0x34f   : > { %v9534_v15 = vadd.f32 %v7179_v48, %v6427_v57  ;;  %v6430_v38 = vadd.f32 %v6429_v58, %v6428_v3 }
 0x350   : > { %6972 = vmatmul.mubr.bf16.gmra.mrb[64].mxu1 %v4400_v55 }
 0x351   : > { %v9536_v45 = vadd.f32 %v7187_v52, %v6430_v38  ;;  %6975 = vmatprep.mubr.bf16.mxu1 %v4403_v30  ;;  %v7656_v52 = vld [vmem:[%s7815_s20] sm:$0xf]  ;;  %v7223_v30 = vadd.f32 %v9430_v5, %v9514_v21 }
 0x352   : > { %v5672_v38 = vcombine.low %v7656_v52, %v7657_v34  ;;  %v7239_v34 = vadd.f32 %v9442_v10, %v9514_v21  ;;  %v7668_v10 = vld [vmem:[%s7815_s20 + $0x30] sm:$0xf] }
 0x353   : > { %v6431_v33 = vpop.f32.mrb[248].mxu0 }
 0x354   : > { %v6432_v35 = vpop.f32.mrb[249].mxu0 }
 0x355   : > { %v6433_v50 = vadd.f32 %v6432_v35, %v6431_v33  ;;  %v6434_v25 = vpop.f32.mrb[250].mxu0 }
 0x356   : > { %v6435_v29 = vpop.f32.mrb[251].mxu0 }
 0x357   : > { %v9542_v61 = vadd.f32 %v7199_v19, %v6433_v50  ;;  %v6436_v51 = vadd.f32 %v6435_v29, %v6434_v25  ;;  %v7658_v25 = vld [vmem:[%s7815_s20 + $0x8] sm:$0xf]  ;;  %v7659_v29 = vld [vmem:[%s7815_s20 + $0xc] sm:$0xf] }
 0x358   : > { %6976 = vmatmul.mubr.bf16.gmra.mrb[68].mxu1 %v4406_v53 }
 0x359   : > { %v9544_v39 = vadd.f32 %v7207_v31, %v6436_v51  ;;  %6979 = vmatprep.mubr.bf16.mxu1 %v4409_v22  ;;  %v5673_v31 = vcombine.low %v7658_v25, %v7659_v29  ;;  %v7211_v51 = vadd.f32 %v9435_v14, %v9514_v21  ;;  %v7660_v22 = vld [vmem:[%s7815_s20 + $0x10] sm:$0xf]  ;;  %v7227_v29 = vadd.f32 %v9444_v36, %v9514_v21 }
 0x35b   : > { %v6437_v16 = vpop.f32.mrb[252].mxu0 }
 0x35c   : > { %v6438_v17 = vpop.f32.mrb[253].mxu0 }
 0x35d   : > { %v6439_v2 = vadd.f32 %v6438_v17, %v6437_v16  ;;  %v6440_v43 = vpop.f32.mrb[254].mxu0  ;;  %v7661_v16 = vld [vmem:[%s7815_s20 + $0x14] sm:$0xf] }
 0x35e   : > { %v6441_v46 = vpop.f32.mrb[255].mxu0  ;;  %v5674_v17 = vcombine.low %v7660_v22, %v7661_v16  ;;  %v7235_v16 = vadd.f32 %v9446_v6, %v9514_v21 }
 0x35f   : > { %v9550_v32 = vadd.f32 %v7195_v49, %v6439_v2  ;;  %v6442_v0 = vadd.f32 %v6441_v46, %v6440_v43  ;;  %v7219_v49 = vadd.f32 %v9437_v56, %v9514_v21  ;;  %v7664_v56 = vld [vmem:[%s7815_s20 + $0x20] sm:$0xf] }
 0x360   : > { %6980 = vmatmul.mubr.bf16.gmra.mrb[72].mxu1 %v4412_v59  ;;  %v7663_v59 = vld [vmem:[%s7815_s20 + $0x1c] sm:$0xf] }
 0x361   : > { %v9552_v1 = vadd.f32 %v7203_v13, %v6442_v0  ;;  %6983 = vmatprep.mubr.bf16.mxu1 %v4415_v63  ;;  %v7662_v0 = vld [vmem:[%s7815_s20 + $0x18] sm:$0xf] }
 0x362   : > { %v5675_v63 = vcombine.low %v7662_v0, %v7663_v59  ;;  %v7670_v0 = vld [vmem:[%s7815_s20 + $0x38] sm:$0xf]  ;;  %v7671_v59 = vld [vmem:[%s7815_s20 + $0x3c] sm:$0xf] }
 0x363   : > { %v6443_v48 = vpop.f32.mrb[0].mxu0 }
 0x364   : > { %v6444_v57 = vpop.f32.mrb[1].mxu0 }
 0x365   : > { %v6445_v3 = vadd.f32 %v6444_v57, %v6443_v48  ;;  %v6446_v58 = vpop.f32.mrb[2].mxu0  ;;  %v7231_v48 = vadd.f32 %v9440_v37, %v9514_v21 }
 0x366   : > { %v6447_v55 = vpop.f32.mrb[3].mxu0 }
 0x367   : > { %v9560_v33 = vadd.f32 %v7215_v18, %v6445_v3  ;;  %v6448_v35 = vadd.f32 %v6447_v55, %v6446_v58  ;;  %v7665_v3 = vld [vmem:[%s7815_s20 + $0x24] sm:$0xf] }
 0x368   : > { %6984 = vmatmul.mubr.bf16.gmra.mrb[76].mxu1 %v9469_v41  ;;  %v5676_v58 = vcombine.low %v7664_v56, %v7665_v3  ;;  %v7672_v3 = vld [vmem:[%s7815_s20 + $0x40] sm:$0xf] }
 0x369   : > { %v9563_v19 = vadd.f32 %v7223_v30, %v6448_v35  ;;  %7003 = vmatprep.mubr.bf16.mxu1 %v5672_v38 }
 0x36b   : > { %v6449_v62 = vpop.f32.mrb[4].mxu0 }
 0x36c   : > { %v6450_v50 = vpop.f32.mrb[5].mxu0 }
 0x36d   : > { %v6451_v53 = vadd.f32 %v6450_v50, %v6449_v62  ;;  %v6452_v5 = vpop.f32.mrb[6].mxu0  ;;  %v7666_v62 = vld [vmem:[%s7815_s20 + $0x28] sm:$0xf]  ;;  %v7667_v50 = vld [vmem:[%s7815_s20 + $0x2c] sm:$0xf] }
 0x36e   : > { %v6453_v41 = vpop.f32.mrb[7].mxu0  ;;  %v5677_v25 = vcombine.low %v7666_v62, %v7667_v50 }
 0x36f   : > { %v9573_v2 = vadd.f32 %v7211_v51, %v6451_v53  ;;  %v6454_v43 = vadd.f32 %v6453_v41, %v6452_v5  ;;  %v7669_v53 = vld [vmem:[%s7815_s20 + $0x34] sm:$0xf] }
 0x370   : > { %7004 = vmatmul.mubr.bf16.vlgmr.msra.gmra.mrb[48].mxu1 %v5673_v31  ;;  %v5678_v5 = vcombine.low %v7668_v10, %v7669_v53  ;;  %v7674_v53 = vld [vmem:[%s7815_s20 + $0x48] sm:$0xf] }
 0x371   : > { %v9575_v46 = vadd.f32 %v7219_v49, %v6454_v43  ;;  %7007 = vmatprep.mubr.bf16.mxu1 %v5674_v17 }
 0x373   : > { %v6455_v14 = vpop.f32.mrb[8].mxu0 }
 0x374   : > { %v6456_v13 = vpop.f32.mrb[9].mxu0 }
 0x375   : > { %v6457_v57 = vadd.f32 %v6456_v13, %v6455_v14  ;;  %v6458_v18 = vpop.f32.mrb[10].mxu0 }
 0x376   : > { %v6459_v52 = vpop.f32.mrb[11].mxu0 }
 0x377   : > { %v9585_v38 = vadd.f32 %v7231_v48, %v6457_v57  ;;  %v6460_v55 = vadd.f32 %v6459_v52, %v6458_v18  ;;  %v7247_v48 = vadd.f32 %v9448_v4, %v9514_v21 }
 0x378   : > { %7008 = vmatmul.mubr.bf16.gmra.mrb[52].mxu1 %v5675_v63  ;;  %v5679_v63 = vcombine.low %v7670_v0, %v7671_v59 }
 0x379   : > { %v9587_v30 = vadd.f32 %v7239_v34, %v6460_v55  ;;  %7011 = vmatprep.mubr.bf16.mxu1 %v5676_v58  ;;  %v7673_v58 = vld [vmem:[%s7815_s20 + $0x44] sm:$0xf]  ;;  %v7255_v34 = vadd.f32 %v9450_v12, %v9514_v21 }
 0x37a   : > { %v5680_v52 = vcombine.low %v7672_v3, %v7673_v58 }
 0x37b   : > { %v6461_v37 = vpop.f32.mrb[12].mxu0 }
 0x37c   : > { %v6462_v35 = vpop.f32.mrb[13].mxu0 }
 0x37d   : > { %v6463_v31 = vadd.f32 %v6462_v35, %v6461_v37  ;;  %v6464_v51 = vpop.f32.mrb[14].mxu0 }
 0x37e   : > { %v6465_v22 = vpop.f32.mrb[15].mxu0 }
 0x37f   : > { %v9597_v17 = vadd.f32 %v7227_v29, %v6463_v31  ;;  %v6466_v41 = vadd.f32 %v6465_v22, %v6464_v51 }
 0x380   : > { %7012 = vmatmul.mubr.bf16.gmra.mrb[56].mxu1 %v5677_v25 }
 0x381   : > { %v9599_v49 = vadd.f32 %v7235_v16, %v6466_v41  ;;  %7015 = vmatprep.mubr.bf16.mxu1 %v5678_v5  ;;  %v7675_v5 = vld [vmem:[%s7815_s20 + $0x4c] sm:$0xf] }
 0x382   : > { %v5681_v22 = vcombine.low %v7674_v53, %v7675_v5 }
 0x383   : > { %v6467_v36 = vpop.f32.mrb[16].mxu0  ;;  %v6555_v43 = vpop.f32.mrb[80].mxu1 }
 0x384   : > { %v6468_v14 = vpop.f32.mrb[17].mxu0  ;;  %v6556_v13 = vpop.f32.mrb[81].mxu1 }
 0x385   : > { %v6469_v6 = vadd.f32 %v6468_v14, %v6467_v36  ;;  %v6557_v57 = vadd.f32 %v6556_v13, %v6555_v43  ;;  %v6470_v18 = vpop.f32.mrb[18].mxu0  ;;  %v6558_v56 = vpop.f32.mrb[82].mxu1  ;;  %v7676_v14 = vld [vmem:[%s7815_s20 + $0x50] sm:$0xf]  ;;  %v7677_v13 = vld [vmem:[%s7815_s20 + $0x54] sm:$0xf] }
 0x386   : > { %v6471_v55 = vpop.f32.mrb[19].mxu0  ;;  %v6559_v37 = vpop.f32.mrb[83].mxu1  ;;  %v5682_v0 = vcombine.low %v7676_v14, %v7677_v13 }
 0x387   : > { %v9609_v35 = vadd.f32 %v7247_v48, %v6469_v6  ;;  %v6472_v62 = vadd.f32 %v6471_v55, %v6470_v18  ;;  %v6560_v50 = vadd.f32 %v6559_v37, %v6558_v56  ;;  %v9612_v4 = vadd.f32 %v9526_v60, %v6557_v57  ;;  %v7679_v55 = vld [vmem:[%s7815_s20 + $0x5c] sm:$0xf] }
 0x388   : > { %7016 = vmatmul.mubr.bf16.gmra.mrb[60].mxu1 %v5679_v63  ;;  %v7243_v60 = vadd.f32 %v9453_v7, %v9514_v21 }
 0x389   : > { %v9614_v25 = vadd.f32 %v7255_v34, %v6472_v62  ;;  %7019 = vmatprep.mubr.bf16.mxu1 %v5680_v52  ;;  %v9617_v29 = vadd.f32 %v9528_v11, %v6560_v50  ;;  %v7251_v11 = vadd.f32 %v9455_v42, %v9514_v21  ;;  %v7678_v34 = vld [vmem:[%s7815_s20 + $0x58] sm:$0xf] }
 0x38a   : > { %v5683_v37 = vcombine.low %v7678_v34, %v7679_v55 }
 0x38b   : > { %v6473_v12 = vpop.f32.mrb[20].mxu0  ;;  %v6561_v31 = vpop.f32.mrb[84].mxu1 }
 0x38c   : > { %v6474_v51 = vpop.f32.mrb[21].mxu0  ;;  %v6562_v10 = vpop.f32.mrb[85].mxu1 }
 0x38d   : > { %v6475_v16 = vadd.f32 %v6474_v51, %v6473_v12  ;;  %v6563_v41 = vadd.f32 %v6562_v10, %v6561_v31  ;;  %v6476_v36 = vpop.f32.mrb[22].mxu0  ;;  %v6564_v43 = vpop.f32.mrb[86].mxu1  ;;  %v7680_v51 = vld [vmem:[%s7815_s20 + $0x60] sm:$0xf]  ;;  %v7681_v10 = vld [vmem:[%s7815_s20 + $0x64] sm:$0xf] }
 0x38e   : > { %v6477_v59 = vpop.f32.mrb[23].mxu0  ;;  %v6565_v63 = vpop.f32.mrb[87].mxu1  ;;  %v5684_v53 = vcombine.low %v7680_v51, %v7681_v10 }
 0x38f   : > { %v9627_v48 = vadd.f32 %v7243_v60, %v6475_v16  ;;  %v6478_v6 = vadd.f32 %v6477_v59, %v6476_v36  ;;  %v6566_v57 = vadd.f32 %v6565_v63, %v6564_v43  ;;  %v9630_v7 = vadd.f32 %v9534_v15, %v6563_v41  ;;  %v7683_v59 = vld [vmem:[%s7815_s20 + $0x6c] sm:$0xf] }
 0x390   : > { %7020 = vmatmul.mubr.bf16.gmra.mrb[64].mxu1 %v5681_v22  ;;  %v7263_v15 = vadd.f32 %v9458_v40, %v9514_v21 }
 0x391   : > { %v9632_v18 = vadd.f32 %v7251_v11, %v6478_v6  ;;  %7023 = vmatprep.mubr.bf16.mxu1 %v5682_v0  ;;  %v9635_v56 = vadd.f32 %v9536_v45, %v6566_v57  ;;  %v7271_v45 = vadd.f32 %v9460_v23, %v9514_v21  ;;  %v7682_v11 = vld [vmem:[%s7815_s20 + $0x68] sm:$0xf] }
 0x392   : > { %v5685_v63 = vcombine.low %v7682_v11, %v7683_v59 }
 0x393   : > { %v6479_v42 = vpop.f32.mrb[24].mxu0  ;;  %v6567_v3 = vpop.f32.mrb[88].mxu1 }
 0x394   : > { %v6480_v58 = vpop.f32.mrb[25].mxu0  ;;  %v6568_v52 = vpop.f32.mrb[89].mxu1 }
 0x395   : > { %v6481_v62 = vadd.f32 %v6480_v58, %v6479_v42  ;;  %v6569_v50 = vadd.f32 %v6568_v52, %v6567_v3  ;;  %v6482_v12 = vpop.f32.mrb[26].mxu0  ;;  %v6570_v31 = vpop.f32.mrb[90].mxu1  ;;  %v7684_v58 = vld [vmem:[%s7815_s20 + $0x70] sm:$0xf]  ;;  %v7685_v52 = vld [vmem:[%s7815_s20 + $0x74] sm:$0xf] }
 0x396   : > { %v6483_v5 = vpop.f32.mrb[27].mxu0  ;;  %v6571_v22 = vpop.f32.mrb[91].mxu1  ;;  %v5686_v34 = vcombine.low %v7684_v58, %v7685_v52 }
 0x397   : > { %v9645_v60 = vadd.f32 %v7263_v15, %v6481_v62  ;;  %v6484_v16 = vadd.f32 %v6483_v5, %v6482_v12  ;;  %v6572_v41 = vadd.f32 %v6571_v22, %v6570_v31  ;;  %v9648_v40 = vadd.f32 %v9542_v61, %v6569_v50  ;;  %v7687_v5 = vld [vmem:[%s7815_s20 + $0x7c] sm:$0xf] }
 0x398   : > { %7024 = vmatmul.mubr.bf16.gmra.mrb[68].mxu1 %v5683_v37  ;;  %v7259_v61 = vadd.f32 %v9464_v24, %v9514_v21 }
 0x399   : > { %v9650_v36 = vadd.f32 %v7271_v45, %v6484_v16  ;;  %7027 = vmatprep.mubr.bf16.mxu1 %v5684_v53  ;;  %v9653_v43 = vadd.f32 %v9544_v39, %v6572_v41  ;;  %v7267_v39 = vadd.f32 %v9466_v44, %v9514_v21  ;;  %v7686_v45 = vld [vmem:[%s7815_s20 + $0x78] sm:$0xf]  ;;  %v7279_v16 = vadd.f32 %v9472_v20, %v9514_v21 }
 0x39a   : > { %v5687_v22 = vcombine.low %v7686_v45, %v7687_v5 }
 0x39b   : > { %v6485_v23 = vpop.f32.mrb[28].mxu0  ;;  %v6573_v14 = vpop.f32.mrb[92].mxu1 }
 0x39c   : > { %v6486_v13 = vpop.f32.mrb[29].mxu0  ;;  %v6574_v0 = vpop.f32.mrb[93].mxu1 }
 0x39d   : > { %v6487_v6 = vadd.f32 %v6486_v13, %v6485_v23  ;;  %v6575_v57 = vadd.f32 %v6574_v0, %v6573_v14  ;;  %v6488_v42 = vpop.f32.mrb[30].mxu0  ;;  %v6576_v3 = vpop.f32.mrb[94].mxu1  ;;  %v7287_v13 = vadd.f32 %v9474_v54, %v9514_v21  ;;  %v7275_v54 = vadd.f32 %v9478_v26, %v9514_v21 }
 0x39e   : > { %v6489_v55 = vpop.f32.mrb[31].mxu0  ;;  %v6577_v37 = vpop.f32.mrb[95].mxu1 }
 0x39f   : > { %v9663_v15 = vadd.f32 %v7259_v61, %v6487_v6  ;;  %v6490_v62 = vadd.f32 %v6489_v55, %v6488_v42  ;;  %v6578_v50 = vadd.f32 %v6577_v37, %v6576_v3  ;;  %v9666_v24 = vadd.f32 %v9550_v32, %v6575_v57 }
 0x3a0   : > { %7028 = vmatmul.mubr.bf16.gmra.mrb[72].mxu1 %v5685_v63 }
 0x3a1   : > { %v9668_v12 = vadd.f32 %v7267_v39, %v6490_v62  ;;  %7031 = vmatprep.mubr.bf16.mxu1 %v5686_v34  ;;  %v9671_v31 = vadd.f32 %v9552_v1, %v6578_v50 }
 0x3a3   : > { %v6491_v51 = vpop.f32.mrb[32].mxu0  ;;  %v6579_v10 = vpop.f32.mrb[96].mxu1 }
 0x3a4   : > { %v6492_v44 = vpop.f32.mrb[33].mxu0  ;;  %v6580_v53 = vpop.f32.mrb[97].mxu1 }
 0x3a5   : > { %v6493_v41 = vadd.f32 %v6492_v44, %v6491_v51  ;;  %v6581_v32 = vadd.f32 %v6580_v53, %v6579_v10  ;;  %v6494_v23 = vpop.f32.mrb[34].mxu0  ;;  %v6582_v14 = vpop.f32.mrb[98].mxu1 }
 0x3a6   : > { %v6495_v0 = vpop.f32.mrb[35].mxu0  ;;  %v6583_v1 = vpop.f32.mrb[99].mxu1 }
 0x3a7   : > { %v9679_v11 = vadd.f32 %v7279_v16, %v6493_v41  ;;  %v6496_v59 = vadd.f32 %v6495_v0, %v6494_v23  ;;  %v6584_v63 = vadd.f32 %v6583_v1, %v6582_v14  ;;  %v9682_v61 = vadd.f32 %v9560_v33, %v6581_v32 }
 0x3a8   : > { %7032 = vmatmul.mubr.bf16.gmra.mrb[76].mxu1 %v5687_v22  ;;  %v7283_v33 = vadd.f32 %v9483_v8, %v9514_v21  ;;  %v7295_v8 = vadd.f32 %v9491_v28, %v9514_v21 }
 0x3a9   : > { %v9684_v6 = vadd.f32 %v7287_v13, %v6496_v59  ;;  %v9687_v20 = vadd.f32 %v9563_v19, %v6584_v63 }
 0x3ab   : > { %v6497_v57 = vpop.f32.mrb[36].mxu0  ;;  %v6585_v42 = vpop.f32.mrb[100].mxu1 }
 0x3ac   : > { %v6498_v3 = vpop.f32.mrb[37].mxu0  ;;  %v6586_v58 = vpop.f32.mrb[101].mxu1 }
 0x3ad   : > { %v6499_v52 = vadd.f32 %v6498_v3, %v6497_v57  ;;  %v6587_v34 = vadd.f32 %v6586_v58, %v6585_v42  ;;  %v6500_v39 = vpop.f32.mrb[38].mxu0  ;;  %v6588_v55 = vpop.f32.mrb[102].mxu1 }
 0x3ae   : > { %v6501_v37 = vpop.f32.mrb[39].mxu0  ;;  %v6589_v62 = vpop.f32.mrb[103].mxu1 }
 0x3af   : > { %v9693_v50 = vadd.f32 %v7275_v54, %v6499_v52  ;;  %v6502_v19 = vadd.f32 %v6501_v37, %v6500_v39  ;;  %v6590_v51 = vadd.f32 %v6589_v62, %v6588_v55  ;;  %v9696_v10 = vadd.f32 %v9573_v2, %v6587_v34 }
 0x3b0   : > { %v7303_v2 = vadd.f32 %v9496_v9, %v9514_v21  ;;  %v7291_v9 = vadd.f32 %v9503_v27, %v9514_v21 }
 0x3b1   : > { %v9698_v44 = vadd.f32 %v7283_v33, %v6502_v19  ;;  %v9701_v26 = vadd.f32 %v9575_v46, %v6590_v51 }
 0x3b3   : > { %v6503_v53 = vpop.f32.mrb[40].mxu0  ;;  %v6591_v45 = vpop.f32.mrb[104].mxu1 }
 0x3b4   : > { %v6504_v5 = vpop.f32.mrb[41].mxu0  ;;  %v6592_v22 = vpop.f32.mrb[105].mxu1 }
 0x3b5   : > { %v6505_v16 = vadd.f32 %v6504_v5, %v6503_v53  ;;  %v6593_v41 = vadd.f32 %v6592_v22, %v6591_v45  ;;  %v6506_v32 = vpop.f32.mrb[42].mxu0  ;;  %v6594_v23 = vpop.f32.mrb[106].mxu1 }
 0x3b6   : > { %v6507_v14 = vpop.f32.mrb[43].mxu0  ;;  %v6595_v13 = vpop.f32.mrb[107].mxu1 }
 0x3b7   : > { %v9707_v0 = vadd.f32 %v7295_v8, %v6505_v16  ;;  %v6508_v46 = vadd.f32 %v6507_v14, %v6506_v32  ;;  %v6596_v1 = vadd.f32 %v6595_v13, %v6594_v23  ;;  %v9710_v59 = vadd.f32 %v9585_v38, %v6593_v41 }
 0x3b8   : > { %v7299_v38 = vadd.f32 %v9508_v47, %v9514_v21 }
 0x3b9   : > { %v9712_v63 = vadd.f32 %v7303_v2, %v6508_v46  ;;  %v9715_v28 = vadd.f32 %v9587_v30, %v6596_v1 }
 0x3bb   : > { %v6509_v57 = vpop.f32.mrb[44].mxu0  ;;  %v6597_v42 = vpop.f32.mrb[108].mxu1 }
 0x3bc   : > { %v6510_v3 = vpop.f32.mrb[45].mxu0  ;;  %v6598_v58 = vpop.f32.mrb[109].mxu1 }
 0x3bd   : > { %v6511_v54 = vadd.f32 %v6510_v3, %v6509_v57  ;;  %v6599_v52 = vadd.f32 %v6598_v58, %v6597_v42  ;;  %v6512_v34 = vpop.f32.mrb[46].mxu0  ;;  %v6600_v39 = vpop.f32.mrb[110].mxu1 }
 0x3be   : > { %v6513_v55 = vpop.f32.mrb[47].mxu0  ;;  %v6601_v33 = vpop.f32.mrb[111].mxu1 }
 0x3bf   : > { %v9721_v37 = vadd.f32 %v7291_v9, %v6511_v54  ;;  %v6514_v30 = vadd.f32 %v6513_v55, %v6512_v34  ;;  %v6602_v62 = vadd.f32 %v6601_v33, %v6600_v39  ;;  %v9724_v19 = vadd.f32 %v9597_v17, %v6599_v52 }
 0x3c1   : > { %v9726_v51 = vadd.f32 %v7299_v38, %v6514_v30  ;;  %v9729_v27 = vadd.f32 %v9599_v49, %v6602_v62 }
 0x3c3   : > { %v6603_v53 = vpop.f32.mrb[112].mxu1 }
 0x3c4   : > { %v6604_v45 = vpop.f32.mrb[113].mxu1 }
 0x3c5   : > { %v6605_v5 = vadd.f32 %v6604_v45, %v6603_v53  ;;  %v6606_v22 = vpop.f32.mrb[114].mxu1 }
 0x3c6   : > { %v6607_v8 = vpop.f32.mrb[115].mxu1 }
 0x3c7   : > { %v6608_v47 = vadd.f32 %v6607_v8, %v6606_v22  ;;  %v9732_v21 = vadd.f32 %v9609_v35, %v6605_v5 }
 0x3c9   : > { %v9735_v16 = vadd.f32 %v9614_v25, %v6608_v47 }
 0x3cb   : > { %v6609_v41 = vpop.f32.mrb[116].mxu1 }
 0x3cc   : > { %v6610_v17 = vpop.f32.mrb[117].mxu1 }
 0x3cd   : > { %v6611_v32 = vadd.f32 %v6610_v17, %v6609_v41  ;;  %v6612_v23 = vpop.f32.mrb[118].mxu1 }
 0x3ce   : > { %v6613_v2 = vpop.f32.mrb[119].mxu1 }
 0x3cf   : > { %v6614_v14 = vadd.f32 %v6613_v2, %v6612_v23  ;;  %v9738_v49 = vadd.f32 %v9627_v48, %v6611_v32 }
 0x3d1   : > { %v9741_v13 = vadd.f32 %v9632_v18, %v6614_v14 }
 0x3d3   : > { %v6615_v46 = vpop.f32.mrb[120].mxu1 }
 0x3d4   : > { %v6616_v1 = vpop.f32.mrb[121].mxu1 }
 0x3d5   : > { %v6617_v57 = vadd.f32 %v6616_v1, %v6615_v46  ;;  %v6618_v35 = vpop.f32.mrb[122].mxu1 }
 0x3d6   : > { %v6619_v42 = vpop.f32.mrb[123].mxu1 }
 0x3d7   : > { %v6620_v3 = vadd.f32 %v6619_v42, %v6618_v35  ;;  %v9744_v25 = vadd.f32 %v9645_v60, %v6617_v57 }
 0x3d9   : > { %v9747_v58 = vadd.f32 %v9650_v36, %v6620_v3 }
 0x3db   : > { %v6621_v9 = vpop.f32.mrb[124].mxu1 }
 0x3dc   : > { %v6622_v54 = vpop.f32.mrb[125].mxu1 }
 0x3dd   : > { %v6623_v52 = vadd.f32 %v6622_v54, %v6621_v9  ;;  %v6624_v48 = vpop.f32.mrb[126].mxu1 }
 0x3de   : > { %v6625_v34 = vpop.f32.mrb[127].mxu1 }
 0x3df   : > { %v6626_v39 = vadd.f32 %v6625_v34, %v6624_v48  ;;  %v9750_v18 = vadd.f32 %v9663_v15, %v6623_v52 }
 0x3e1   : > { %v9753_v38 = vadd.f32 %v9668_v12, %v6626_v39 }
 0x3e3   : > { %v6627_v55 = vpop.f32.mrb[128].mxu1 }
 0x3e4   : > { %v6628_v33 = vpop.f32.mrb[129].mxu1 }
 0x3e5   : > { %v6629_v30 = vadd.f32 %v6628_v33, %v6627_v55  ;;  %v6630_v60 = vpop.f32.mrb[130].mxu1 }
 0x3e6   : > { %v6631_v62 = vpop.f32.mrb[131].mxu1 }
 0x3e7   : > { %v6632_v53 = vadd.f32 %v6631_v62, %v6630_v60  ;;  %v9756_v36 = vadd.f32 %v9679_v11, %v6629_v30 }
 0x3e9   : > { %v9759_v45 = vadd.f32 %v9684_v6, %v6632_v53 }
 0x3eb   : > { %v6633_v5 = vpop.f32.mrb[132].mxu1 }
 0x3ec   : > { %v6634_v22 = vpop.f32.mrb[133].mxu1 }
 0x3ed   : > { %v6635_v8 = vadd.f32 %v6634_v22, %v6633_v5  ;;  %v6636_v15 = vpop.f32.mrb[134].mxu1 }
 0x3ee   : > { %v6637_v47 = vpop.f32.mrb[135].mxu1 }
 0x3ef   : > { %v6638_v41 = vadd.f32 %v6637_v47, %v6636_v15  ;;  %v9762_v12 = vadd.f32 %v9693_v50, %v6635_v8 }
 0x3f1   : > { %v9765_v17 = vadd.f32 %v9698_v44, %v6638_v41 }
 0x3f3   : > { %v6639_v32 = vpop.f32.mrb[136].mxu1 }
 0x3f4   : > { %v6640_v23 = vpop.f32.mrb[137].mxu1 }
 0x3f5   : > { %v6641_v2 = vadd.f32 %v6640_v23, %v6639_v32  ;;  %v6642_v11 = vpop.f32.mrb[138].mxu1 }
 0x3f6   : > { %v6643_v14 = vpop.f32.mrb[139].mxu1 }
 0x3f7   : > { %v6644_v46 = vadd.f32 %v6643_v14, %v6642_v11  ;;  %v9768_v6 = vadd.f32 %v9707_v0, %v6641_v2 }
 0x3f9   : > { %v9771_v1 = vadd.f32 %v9712_v63, %v6644_v46 }
 0x3fb   : > { %v6645_v57 = vpop.f32.mrb[140].mxu1 }
 0x3fc   : > { %v6646_v35 = vpop.f32.mrb[141].mxu1 }
 0x3fd   : > { %v6647_v50 = vadd.f32 %v6646_v35, %v6645_v57  ;;  %v6648_v42 = vpop.f32.mrb[142].mxu1 }
 0x3fe   : > { %v6649_v3 = vpop.f32.mrb[143].mxu1 }
 0x3ff   : > { %v6650_v44 = vadd.f32 %v6649_v3, %v6648_v42  ;;  %v9774_v9 = vadd.f32 %v9721_v37, %v6647_v50 }
 0x401   : > { %v9777_v54 = vadd.f32 %v9726_v51, %v6650_v44 }
 0x443   : > { %v7005_v52 = vpop.f32.mrb[48].mxu1 }
 0x444   : > { %v7182_v0 = vadd.f32 %v9630_v7, %v7005_v52  ;;  %v5159_v48 = vpop.f32.mrb[49].mxu1 }
 0x445   : > { %v7186_v63 = vadd.f32 %v9612_v4, %v5159_v48  ;;  %v7006_v34 = vpop.f32.mrb[50].mxu1 }
 0x446   : > { %v7190_v39 = vadd.f32 %v9635_v56, %v7006_v34  ;;  %v5162_v55 = vpop.f32.mrb[51].mxu1 }
 0x447   : > { %v7194_v37 = vadd.f32 %v9617_v29, %v5162_v55 }
 0x448   : > { %v5772_v7 = vpack.c.bf16 %v7190_v39, %v7182_v0 }
 0x449   : > { %v5767_v51 = vpack.c.bf16 %v7194_v37, %v7186_v63 }
 0x44a   : > { %5844 = vst [vmem:[%s9787_s8 + $0x8] sm:$0xff] %v5772_v7  }
 0x44b   : > { %5768 = vst [vmem:[%s9787_s8] sm:$0xff] %v5767_v51   ;;  %v7009_v4 = vpop.f32.mrb[52].mxu1 }
 0x44c   : > { %v7198_v56 = vadd.f32 %v9666_v24, %v7009_v4  ;;  %v5175_v33 = vpop.f32.mrb[53].mxu1 }
 0x44d   : > { %v7202_v30 = vadd.f32 %v9648_v40, %v5175_v33  ;;  %v7010_v60 = vpop.f32.mrb[54].mxu1 }
 0x44e   : > { %v7206_v62 = vadd.f32 %v9671_v31, %v7010_v60  ;;  %v5178_v53 = vpop.f32.mrb[55].mxu1 }
 0x44f   : > { %v7210_v5 = vadd.f32 %v9653_v43, %v5178_v53 }
 0x450   : > { %v5782_v29 = vpack.c.bf16 %v7206_v62, %v7198_v56 }
 0x451   : > { %v5777_v22 = vpack.c.bf16 %v7210_v5, %v7202_v30 }
 0x452   : > { %5846 = vst [vmem:[%s9787_s8 + $0x18] sm:$0xff] %v5782_v29  }
 0x453   : > { %5845 = vst [vmem:[%s9787_s8 + $0x10] sm:$0xff] %v5777_v22   ;;  %v7013_v8 = vpop.f32.mrb[56].mxu1 }
 0x454   : > { %v7214_v15 = vadd.f32 %v9696_v10, %v7013_v8  ;;  %v5191_v47 = vpop.f32.mrb[57].mxu1 }
 0x455   : > { %v7218_v24 = vadd.f32 %v9682_v61, %v5191_v47  ;;  %v7014_v41 = vpop.f32.mrb[58].mxu1 }
 0x456   : > { %v7222_v40 = vadd.f32 %v9701_v26, %v7014_v41  ;;  %v5194_v32 = vpop.f32.mrb[59].mxu1 }
 0x457   : > { %v7226_v31 = vadd.f32 %v9687_v20, %v5194_v32 }
 0x458   : > { %v5792_v43 = vpack.c.bf16 %v7222_v40, %v7214_v15 }
 0x459   : > { %v5787_v23 = vpack.c.bf16 %v7226_v31, %v7218_v24 }
 0x45a   : > { %5848 = vst [vmem:[%s9787_s8 + $0x28] sm:$0xff] %v5792_v43  }
 0x45b   : > { %5847 = vst [vmem:[%s9787_s8 + $0x20] sm:$0xff] %v5787_v23   ;;  %v7017_v2 = vpop.f32.mrb[60].mxu1 }
 0x45c   : > { %v7230_v11 = vadd.f32 %v9724_v19, %v7017_v2  ;;  %v5207_v14 = vpop.f32.mrb[61].mxu1 }
 0x45d   : > { %v7234_v10 = vadd.f32 %v9710_v59, %v5207_v14  ;;  %v7018_v46 = vpop.f32.mrb[62].mxu1 }
 0x45e   : > { %v7238_v61 = vadd.f32 %v9729_v27, %v7018_v46  ;;  %v5210_v57 = vpop.f32.mrb[63].mxu1 }
 0x45f   : > { %v7242_v26 = vadd.f32 %v9715_v28, %v5210_v57 }
 0x460   : > { %v5802_v20 = vpack.c.bf16 %v7238_v61, %v7230_v11 }
 0x461   : > { %v5797_v35 = vpack.c.bf16 %v7242_v26, %v7234_v10 }
 0x462   : > { %5850 = vst [vmem:[%s9787_s8 + $0x38] sm:$0xff] %v5802_v20  }
 0x463   : > { %5849 = vst [vmem:[%s9787_s8 + $0x30] sm:$0xff] %v5797_v35   ;;  %v7021_v50 = vpop.f32.mrb[64].mxu1 }
 0x464   : > { %v7246_v42 = vadd.f32 %v9738_v49, %v7021_v50  ;;  %v5223_v3 = vpop.f32.mrb[65].mxu1 }
 0x465   : > { %v7250_v19 = vadd.f32 %v9732_v21, %v5223_v3  ;;  %v7022_v44 = vpop.f32.mrb[66].mxu1 }
 0x466   : > { %v7254_v59 = vadd.f32 %v9741_v13, %v7022_v44  ;;  %v5226_v52 = vpop.f32.mrb[67].mxu1 }
 0x467   : > { %v7258_v27 = vadd.f32 %v9735_v16, %v5226_v52 }
 0x468   : > { %v5812_v28 = vpack.c.bf16 %v7254_v59, %v7246_v42 }
 0x469   : > { %v5807_v0 = vpack.c.bf16 %v7258_v27, %v7250_v19 }
 0x46a   : > { %5852 = vst [vmem:[%s9787_s8 + $0x48] sm:$0xff] %v5812_v28  }
 0x46b   : > { %5851 = vst [vmem:[%s9787_s8 + $0x40] sm:$0xff] %v5807_v0   ;;  %v7025_v48 = vpop.f32.mrb[68].mxu1 }
 0x46c   : > { %v7262_v63 = vadd.f32 %v9750_v18, %v7025_v48  ;;  %v5239_v34 = vpop.f32.mrb[69].mxu1 }
 0x46d   : > { %v7266_v49 = vadd.f32 %v9744_v25, %v5239_v34  ;;  %v7026_v39 = vpop.f32.mrb[70].mxu1 }
 0x46e   : > { %v7270_v21 = vadd.f32 %v9753_v38, %v7026_v39  ;;  %v5242_v55 = vpop.f32.mrb[71].mxu1 }
 0x46f   : > { %v7274_v13 = vadd.f32 %v9747_v58, %v5242_v55 }
 0x470   : > { %v5822_v16 = vpack.c.bf16 %v7270_v21, %v7262_v63 }
 0x471   : > { %v5817_v37 = vpack.c.bf16 %v7274_v13, %v7266_v49 }
 0x472   : > { %5854 = vst [vmem:[%s9787_s8 + $0x58] sm:$0xff] %v5822_v16  }
 0x473   : > { %5853 = vst [vmem:[%s9787_s8 + $0x50] sm:$0xff] %v5817_v37   ;;  %v7029_v7 = vpop.f32.mrb[72].mxu1 }
 0x474   : > { %v7278_v51 = vadd.f32 %v9762_v12, %v7029_v7  ;;  %v5255_v4 = vpop.f32.mrb[73].mxu1 }
 0x475   : > { %v7282_v18 = vadd.f32 %v9756_v36, %v5255_v4  ;;  %v7030_v56 = vpop.f32.mrb[74].mxu1 }
 0x476   : > { %v7286_v25 = vadd.f32 %v9765_v17, %v7030_v56  ;;  %v5258_v33 = vpop.f32.mrb[75].mxu1 }
 0x477   : > { %v7290_v38 = vadd.f32 %v9759_v45, %v5258_v33 }
 0x478   : > { %v5832_v58 = vpack.c.bf16 %v7286_v25, %v7278_v51 }
 0x479   : > { %v5827_v30 = vpack.c.bf16 %v7290_v38, %v7282_v18 }
 0x47a   : > { %5856 = vst [vmem:[%s9787_s8 + $0x68] sm:$0xff] %v5832_v58  }
 0x47b   : > { %5855 = vst [vmem:[%s9787_s8 + $0x60] sm:$0xff] %v5827_v30   ;;  %v7033_v60 = vpop.f32.mrb[76].mxu1 }
 0x47c   : > { %v7294_v62 = vadd.f32 %v9774_v9, %v7033_v60  ;;  %v5271_v53 = vpop.f32.mrb[77].mxu1 }
 0x47d   : > { %v7298_v12 = vadd.f32 %v9768_v6, %v5271_v53  ;;  %v7034_v5 = vpop.f32.mrb[78].mxu1 }
 0x47e   : > { %v7302_v36 = vadd.f32 %v9777_v54, %v7034_v5  ;;  %v5274_v29 = vpop.f32.mrb[79].mxu1 }
 0x47f   : > { %v7306_v17 = vadd.f32 %v9771_v1, %v5274_v29 }
 0x480   : > { %v5842_v22 = vpack.c.bf16 %v7302_v36, %v7294_v62 }
 0x481   : > { %v5837_v8 = vpack.c.bf16 %v7306_v17, %v7298_v12 }
 0x482   : > { %5858 = vst [vmem:[%s9787_s8 + $0x78] sm:$0xff] %v5842_v22  }
 0x483   : > { %5857 = vst [vmem:[%s9787_s8 + $0x70] sm:$0xff] %v5837_v8  }
 0x484 PF: > { %s16_s21 = sadd.s32 1, %s7694_s21  }
 0x485   : > { %p13_p4 = scmp.ge.s32.totalorder %s16_s21, 4  }
 0x487   :  { %15 = sbr.rel (!%p13_p4) target bundleno = 1 (0x1), region = 80 }

</bundles_post_ra>
